<compile_context>
chip_gen: v7x
topology: tpu7x:2x2x1
jax: 0.10.0
libtpu: 0.0.40
codegen_flags: <defaults>
</compile_context>

<pallas_src>
import functools
import math

import jax
import jax.numpy as jnp
import numpy as np
from jax.experimental import pallas as pl
from jax.experimental.pallas import tpu as pltpu

NUM_GRAPHS = 32        # batch of graphs (PyG-style batching)
GRAPHS_PER_BLOCK = 16  # graphs per grid step -> projection M = 16 * 16 = 256 rows
NUM_NODES = 16         # nodes per graph
INPUT_DIM = 8
HIDDEN_DIM = 8         # out_channels per head
HEADS = 2              # concat=True -> output feature dim = HEADS * HIDDEN_DIM = 16


def _gt_block_kernel(x_ref, adj_ref, w_ref, b_ref, o_ref, *,
                     graphs_per_block, num_nodes, heads, head_dim):
    tb, n, nh, c = graphs_per_block, num_nodes, heads, head_dim
    d = nh * c
    cols = 3 * nh * c + d          # q/k/v per head + skip

    # 1. Fused projection: one [M, F] x [F, 4d] bf16 MXU matmul (f32 accumulation) for
    #    all heads' Q|K|V plus the skip projection; batch of graphs folded into M.
    proj = jnp.dot(x_ref[...], w_ref[...],
                   preferred_element_type=jnp.float32) + b_ref[...]     # [M, 4d] f32
    # Split rows back per graph (leading-dim regroup only; lane dim untouched).
    proj = proj.reshape(tb, n, cols)                                    # [TB, N, 4d]
    skip = proj[..., 3 * nh * c:]                                       # [TB, N, d]

    # 2. Additive attention-mask bias, computed once in f32 and shared by all heads.
    adj = adj_ref[...]                                                  # [TB, Ndst, Nsrc]
    bias = jnp.where(adj > 0.0, 0.0, -1e30)
    has_edge = jnp.max(adj, axis=-1, keepdims=True) > 0.0               # [TB, N, 1]

    scale = 1.0 / math.sqrt(c)
    head_outs = []
    for h in range(nh):            # static unroll; heads is tiny
        base = 3 * c * h           # per-head contiguous [q_h | k_h | v_h] lane slice
        qh = (proj[..., base:base + c] * scale).astype(jnp.bfloat16)
        kh = proj[..., base + c:base + 2 * c].astype(jnp.bfloat16)
        vh = proj[..., base + 2 * c:base + 3 * c].astype(jnp.bfloat16)
        # Per-graph batched scores (batch dim = graph, contract head dim, no transpose).
        s = jnp.einsum("bqc,bkc->bqk", qh, kh,
                       preferred_element_type=jnp.float32) + bias       # [TB, N, N] f32
        mx = jnp.max(s, axis=-1, keepdims=True)
        p = jnp.exp(s - mx)        # masked logits underflow to exactly 0 in f32
        denom = jnp.sum(p, axis=-1, keepdims=True)
        alpha = (p * pl.reciprocal(denom, approx=True)).astype(jnp.bfloat16)
        head_outs.append(jnp.einsum("bqk,bkc->bqc", alpha, vh,
                                    preferred_element_type=jnp.float32))  # [TB, N, C]

    out_att = jnp.concatenate(head_outs, axis=-1)                       # [TB, N, d]
    out_att = jnp.where(has_edge, out_att, 0.0)   # isolated dst nodes aggregate nothing
    # Skip connection + ReLU fused once; single full-tile store.
    o_ref[...] = jnp.maximum(out_att + skip, 0.0)


def graph_transformer_block(x, adj, params, *, heads=HEADS, head_dim=HIDDEN_DIM,
                            graphs_per_block=GRAPHS_PER_BLOCK):
    b, n, f = x.shape
    d = heads * head_dim
    assert b % graphs_per_block == 0
    num_blocks = b // graphs_per_block
    m_block = graphs_per_block * n

    # Host-side fused weight packing, per-head ordered: [q_h0|k_h0|v_h0|...|skip] so each
    # head's Q/K/V is one contiguous lane slice inside the kernel.
    def split_heads(a):
        return [a[..., h * head_dim:(h + 1) * head_dim] for h in range(heads)]

    wq, wk, wv = split_heads(params["wq"]), split_heads(params["wk"]), split_heads(params["wv"])
    bq, bk, bv = split_heads(params["bq"]), split_heads(params["bk"]), split_heads(params["bv"])
    w_cols, b_cols = [], []
    for h in range(heads):
        w_cols += [wq[h], wk[h], wv[h]]
        b_cols += [bq[h], bk[h], bv[h]]
    w_cols.append(params["ws"])
    b_cols.append(params["bs"])
    # bf16 MXU operands (f32 accumulation in-kernel); bias stays f32.
    w_all = jnp.concatenate(w_cols, axis=1).astype(jnp.bfloat16)        # [F, 4*d]
    b_all = jnp.concatenate(b_cols, axis=1).astype(jnp.float32)         # [1, 4*d]
    x_flat = x.reshape(b * n, f).astype(jnp.bfloat16)                   # fold batch into M

    kernel = functools.partial(_gt_block_kernel, graphs_per_block=graphs_per_block,
                               num_nodes=n, heads=heads, head_dim=head_dim)
    return pl.pallas_call(
        kernel,
        out_shape=jax.ShapeDtypeStruct((b, n, d), jnp.float32),
        grid_spec=pltpu.PrefetchScalarGridSpec(
            num_scalar_prefetch=0,
            grid=(num_blocks,),
            in_specs=[
                pl.BlockSpec((m_block, f), lambda i: (i, 0)),                 # x rows of block
                pl.BlockSpec((graphs_per_block, n, n), lambda i: (i, 0, 0)),  # adj of block
                pl.BlockSpec((f, 4 * d), lambda i: (0, 0)),   # weights: VMEM-resident
                pl.BlockSpec((1, 4 * d), lambda i: (0, 0)),   # bias:    VMEM-resident
            ],
            out_specs=pl.BlockSpec((graphs_per_block, n, d), lambda i: (i, 0, 0)),
        ),
        compiler_params=pltpu.CompilerParams(
            dimension_semantics=("parallel",),  # blocks shard across TCs on v7x megacore
        ),
    )(x_flat, adj, w_all, b_all)


def reference_forward(x, adj, params, heads=HEADS, head_dim=HIDDEN_DIM):
    """Pure-JAX f32 reference of TransformerConv(concat) + skip + ReLU (eval dropout)."""
    q = x @ params["wq"] + params["bq"]         # [B, N, d]
    k = x @ params["wk"] + params["bk"]
    v = x @ params["wv"] + params["bv"]
    skip = x @ params["ws"] + params["bs"]
    mask = adj > 0.0                            # [B, N_dst, N_src]
    scale = 1.0 / math.sqrt(head_dim)
    outs = []
    for h in range(heads):
        lo, hi = h * head_dim, (h + 1) * head_dim
        s = jnp.einsum("bnd,bmd->bnm", q[..., lo:hi], k[..., lo:hi]) * scale
        s = jnp.where(mask, s, -1e30)
        m = jnp.max(s, axis=-1, keepdims=True)
        p = jnp.where(mask, jnp.exp(s - m), 0.0)
        denom = jnp.sum(p, axis=-1, keepdims=True)
        denom = jnp.where(denom > 0.0, denom, 1.0)
        outs.append(jnp.einsum("bnm,bmd->bnd", p / denom, v[..., lo:hi]))
    out_att = jnp.concatenate(outs, axis=-1)
    return jnp.maximum(out_att + skip, 0.0)


def init_params(key, input_dim, hidden_dim, heads):
    out_dim = heads * hidden_dim
    ks = jax.random.split(key, 8)
    scale = 1.0 / math.sqrt(input_dim)

    def w(k):
        return jax.random.normal(k, (input_dim, out_dim), jnp.float32) * scale

    def bias(k):
        return jax.random.normal(k, (1, out_dim), jnp.float32) * 0.01

    return {"wq": w(ks[0]), "bq": bias(ks[1]),
            "wk": w(ks[2]), "bk": bias(ks[3]),
            "wv": w(ks[4]), "bv": bias(ks[5]),
            "ws": w(ks[6]), "bs": bias(ks[7])}


def build_batched_adj(num_graphs, num_nodes):
    """Dense per-graph adjacency: adj[b, dst, src] = 1 iff edge src->dst in graph b."""
    adj = np.zeros((num_graphs, num_nodes, num_nodes), np.float32)
    for g in range(num_graphs):
        for i in range(num_nodes):
            adj[g, (i + 1) % num_nodes, i] = 1.0              # ring edge i -> i+1
            adj[g, (i + 2 + g % 5) % num_nodes, i] = 1.0      # graph-dependent skip edge
        if g % 4 == 0:
            adj[g, 0, :] = 0.0   # node 0 has no incoming edge (exercises isolated-dst path)
    return jnp.asarray(adj)


if __name__ == "__main__":
    key = jax.random.PRNGKey(0)
    k_x, k_p = jax.random.split(key)

    x = jax.random.normal(k_x, (NUM_GRAPHS, NUM_NODES, INPUT_DIM), jnp.float32)
    adj = build_batched_adj(NUM_GRAPHS, NUM_NODES)
    params = init_params(k_p, INPUT_DIM, HIDDEN_DIM, HEADS)

    out = jax.block_until_ready(graph_transformer_block(x, adj, params))
    ref = jax.block_until_ready(reference_forward(x, adj, params))

    # Tolerance covers bf16 MXU operands (f32 accumulation) and the EUP approx reciprocal
    # in the softmax denominator; with f32 operands the kernel matches the reference ~5e-3.
    np.testing.assert_allclose(np.asarray(out), np.asarray(ref), rtol=2e-2, atol=2e-2)

    print("KERNEL_OK")
</pallas_src>

<mosaic_0001>
module attributes {stable_mosaic.version = 11 : i64} {
  func.func @_gt_block_kernel(%arg0: i32, %arg1: memref<256x8xbf16, #tpu.memory_space<vmem>>, %arg2: memref<16x16x16xf32, #tpu.memory_space<vmem>>, %arg3: memref<8x64xbf16, #tpu.memory_space<vmem>>, %arg4: memref<1x64xf32, #tpu.memory_space<vmem>>, %arg5: memref<16x16x16xf32, #tpu.memory_space<vmem>>) attributes {dimension_semantics = [#tpu.dimension_semantics<parallel>], iteration_bounds = array<i64: 2>, scalar_prefetch = 0 : i64, scratch_operands = 0 : i64, tpu.core_type = #tpu.core_type<tc>, window_params = [{transform_indices = @transform_0, window_bounds = array<i64: 256, 8>}, {transform_indices = @transform_1, window_bounds = array<i64: 16, 16, 16>}, {pipeline_mode = #tpu.pipeline_mode<synchronous>, transform_indices = @transform_2, window_bounds = array<i64: 8, 64>}, {pipeline_mode = #tpu.pipeline_mode<synchronous>, transform_indices = @transform_3, window_bounds = array<i64: 1, 64>}, {transform_indices = @transform_4, window_bounds = array<i64: 16, 16, 16>}]} {
    %c0 = arith.constant 0 : index
    %c0_0 = arith.constant 0 : index
    %0 = vector.load %arg1[%c0, %c0_0] : memref<256x8xbf16, #tpu.memory_space<vmem>>, vector<256x8xbf16>
    %c0_1 = arith.constant 0 : index
    %c0_2 = arith.constant 0 : index
    %1 = vector.load %arg3[%c0_1, %c0_2] : memref<8x64xbf16, #tpu.memory_space<vmem>>, vector<8x64xbf16>
    %cst = arith.constant dense<0.000000e+00> : vector<256x64xf32>
    %2 = tpu.matmul %0, %1, %cst {dimension_numbers = #tpu.dot_dimension_numbers<[1], [0], [0], [1], [0, 0, 1, 1], [], []>} : vector<256x8xbf16>, vector<8x64xbf16>, vector<256x64xf32> -> vector<256x64xf32>
    %c0_3 = arith.constant 0 : index
    %c0_4 = arith.constant 0 : index
    %3 = vector.load %arg4[%c0_3, %c0_4] : memref<1x64xf32, #tpu.memory_space<vmem>>, vector<1x64xf32>
    %4 = vector.broadcast %3 : vector<1x64xf32> to vector<256x64xf32>
    %5 = arith.addf %2, %4 : vector<256x64xf32>
    %6 = vector.shape_cast %5 : vector<256x64xf32> to vector<16x16x64xf32>
    %7 = vector.extract_strided_slice %6 {offsets = [0, 0, 48], sizes = [16, 16, 16], strides = [1, 1, 1]} : vector<16x16x64xf32> to vector<16x16x16xf32>
    %c0_5 = arith.constant 0 : index
    %c0_6 = arith.constant 0 : index
    %c0_7 = arith.constant 0 : index
    %8 = vector.load %arg2[%c0_5, %c0_6, %c0_7] : memref<16x16x16xf32, #tpu.memory_space<vmem>>, vector<16x16x16xf32>
    %cst_8 = arith.constant 0.000000e+00 : f32
    %9 = vector.broadcast %cst_8 : f32 to vector<16x16x16xf32>
    %10 = arith.cmpf ogt, %8, %9 : vector<16x16x16xf32>
    %cst_9 = arith.constant 0.000000e+00 : f32
    %cst_10 = arith.constant -1.000000e+30 : f32
    %11 = vector.broadcast %cst_9 : f32 to vector<16x16x16xf32>
    %12 = vector.broadcast %cst_10 : f32 to vector<16x16x16xf32>
    %13 = arith.select %10, %11, %12 : vector<16x16x16xi1>, vector<16x16x16xf32>
    %cst_11 = arith.constant dense<0xFF800000> : vector<16x16xf32>
    %14 = vector.multi_reduction <maximumf>, %8, %cst_11 [2] : vector<16x16x16xf32> to vector<16x16xf32>
    %15 = vector.shape_cast %14 : vector<16x16xf32> to vector<16x16x1xf32>
    %cst_12 = arith.constant 0.000000e+00 : f32
    %16 = vector.broadcast %cst_12 : f32 to vector<16x16x1xf32>
    %17 = arith.cmpf ogt, %15, %16 : vector<16x16x1xf32>
    %18 = vector.extract_strided_slice %6 {offsets = [0, 0, 0], sizes = [16, 16, 8], strides = [1, 1, 1]} : vector<16x16x64xf32> to vector<16x16x8xf32>
    %cst_13 = arith.constant 0.353553385 : f32
    %19 = vector.broadcast %cst_13 : f32 to vector<16x16x8xf32>
    %20 = arith.mulf %18, %19 : vector<16x16x8xf32>
    %21 = arith.truncf %20 : vector<16x16x8xf32> to vector<16x16x8xbf16>
    %22 = vector.extract_strided_slice %6 {offsets = [0, 0, 8], sizes = [16, 16, 8], strides = [1, 1, 1]} : vector<16x16x64xf32> to vector<16x16x8xf32>
    %23 = arith.truncf %22 : vector<16x16x8xf32> to vector<16x16x8xbf16>
    %24 = vector.extract_strided_slice %6 {offsets = [0, 0, 16], sizes = [16, 16, 8], strides = [1, 1, 1]} : vector<16x16x64xf32> to vector<16x16x8xf32>
    %25 = arith.truncf %24 : vector<16x16x8xf32> to vector<16x16x8xbf16>
    "tpu.trace_start"() <{level = 10 : i32, message = "bqc,bkc->bqk"}> : () -> ()
    %cst_14 = arith.constant dense<0.000000e+00> : vector<16x16x16xf32>
    %26 = tpu.matmul %21, %23, %cst_14 {dimension_numbers = #tpu.dot_dimension_numbers<[2], [2], [1], [1], [0, 0, 0, 1, 1, 1], [0], [0]>} : vector<16x16x8xbf16>, vector<16x16x8xbf16>, vector<16x16x16xf32> -> vector<16x16x16xf32>
    "tpu.trace_stop"() : () -> ()
    %27 = arith.addf %26, %13 : vector<16x16x16xf32>
    %cst_15 = arith.constant dense<0xFF800000> : vector<16x16xf32>
    %28 = vector.multi_reduction <maximumf>, %27, %cst_15 [2] : vector<16x16x16xf32> to vector<16x16xf32>
    %29 = vector.shape_cast %28 : vector<16x16xf32> to vector<16x16x1xf32>
    %30 = vector.broadcast %29 : vector<16x16x1xf32> to vector<16x16x16xf32>
    %31 = arith.subf %27, %30 : vector<16x16x16xf32>
    %32 = math.exp %31 : vector<16x16x16xf32>
    %cst_16 = arith.constant dense<0.000000e+00> : vector<16x16xf32>
    %33 = vector.multi_reduction <add>, %32, %cst_16 [2] : vector<16x16x16xf32> to vector<16x16xf32>
    %34 = vector.shape_cast %33 : vector<16x16xf32> to vector<16x16x1xf32>
    %35 = tpu.reciprocal %34 {approx = true} : vector<16x16x1xf32> -> vector<16x16x1xf32>
    %36 = vector.broadcast %35 : vector<16x16x1xf32> to vector<16x16x16xf32>
    %37 = arith.mulf %32, %36 : vector<16x16x16xf32>
    %38 = arith.truncf %37 : vector<16x16x16xf32> to vector<16x16x16xbf16>
    "tpu.trace_start"() <{level = 10 : i32, message = "bqk,bkc->bqc"}> : () -> ()
    %cst_17 = arith.constant dense<0.000000e+00> : vector<16x16x8xf32>
    %39 = tpu.matmul %38, %25, %cst_17 {dimension_numbers = #tpu.dot_dimension_numbers<[2], [1], [1], [2], [0, 0, 0, 1, 1, 2], [0], [0]>} : vector<16x16x16xbf16>, vector<16x16x8xbf16>, vector<16x16x8xf32> -> vector<16x16x8xf32>
    "tpu.trace_stop"() : () -> ()
    %40 = vector.extract_strided_slice %6 {offsets = [0, 0, 24], sizes = [16, 16, 8], strides = [1, 1, 1]} : vector<16x16x64xf32> to vector<16x16x8xf32>
    %cst_18 = arith.constant 0.353553385 : f32
    %41 = vector.broadcast %cst_18 : f32 to vector<16x16x8xf32>
    %42 = arith.mulf %40, %41 : vector<16x16x8xf32>
    %43 = arith.truncf %42 : vector<16x16x8xf32> to vector<16x16x8xbf16>
    %44 = vector.extract_strided_slice %6 {offsets = [0, 0, 32], sizes = [16, 16, 8], strides = [1, 1, 1]} : vector<16x16x64xf32> to vector<16x16x8xf32>
    %45 = arith.truncf %44 : vector<16x16x8xf32> to vector<16x16x8xbf16>
    %46 = vector.extract_strided_slice %6 {offsets = [0, 0, 40], sizes = [16, 16, 8], strides = [1, 1, 1]} : vector<16x16x64xf32> to vector<16x16x8xf32>
    %47 = arith.truncf %46 : vector<16x16x8xf32> to vector<16x16x8xbf16>
    "tpu.trace_start"() <{level = 10 : i32, message = "bqc,bkc->bqk"}> : () -> ()
    %cst_19 = arith.constant dense<0.000000e+00> : vector<16x16x16xf32>
    %48 = tpu.matmul %43, %45, %cst_19 {dimension_numbers = #tpu.dot_dimension_numbers<[2], [2], [1], [1], [0, 0, 0, 1, 1, 1], [0], [0]>} : vector<16x16x8xbf16>, vector<16x16x8xbf16>, vector<16x16x16xf32> -> vector<16x16x16xf32>
    "tpu.trace_stop"() : () -> ()
    %49 = arith.addf %48, %13 : vector<16x16x16xf32>
    %cst_20 = arith.constant dense<0xFF800000> : vector<16x16xf32>
    %50 = vector.multi_reduction <maximumf>, %49, %cst_20 [2] : vector<16x16x16xf32> to vector<16x16xf32>
    %51 = vector.shape_cast %50 : vector<16x16xf32> to vector<16x16x1xf32>
    %52 = vector.broadcast %51 : vector<16x16x1xf32> to vector<16x16x16xf32>
    %53 = arith.subf %49, %52 : vector<16x16x16xf32>
    %54 = math.exp %53 : vector<16x16x16xf32>
    %cst_21 = arith.constant dense<0.000000e+00> : vector<16x16xf32>
    %55 = vector.multi_reduction <add>, %54, %cst_21 [2] : vector<16x16x16xf32> to vector<16x16xf32>
    %56 = vector.shape_cast %55 : vector<16x16xf32> to vector<16x16x1xf32>
    %57 = tpu.reciprocal %56 {approx = true} : vector<16x16x1xf32> -> vector<16x16x1xf32>
    %58 = vector.broadcast %57 : vector<16x16x1xf32> to vector<16x16x16xf32>
    %59 = arith.mulf %54, %58 : vector<16x16x16xf32>
    %60 = arith.truncf %59 : vector<16x16x16xf32> to vector<16x16x16xbf16>
    "tpu.trace_start"() <{level = 10 : i32, message = "bqk,bkc->bqc"}> : () -> ()
    %cst_22 = arith.constant dense<0.000000e+00> : vector<16x16x8xf32>
    %61 = tpu.matmul %60, %47, %cst_22 {dimension_numbers = #tpu.dot_dimension_numbers<[2], [1], [1], [2], [0, 0, 0, 1, 1, 2], [0], [0]>} : vector<16x16x16xbf16>, vector<16x16x8xbf16>, vector<16x16x8xf32> -> vector<16x16x8xf32>
    "tpu.trace_stop"() : () -> ()
    %62 = tpu.concatenate %39, %61 in 2 : vector<16x16x8xf32>, vector<16x16x8xf32> -> vector<16x16x16xf32>
    %cst_23 = arith.constant 0.000000e+00 : f32
    %63 = vector.shape_cast %17 : vector<16x16x1xi1> to vector<16x16x1xi1>
    %64 = vector.broadcast %63 : vector<16x16x1xi1> to vector<16x16x16xi1>
    %65 = vector.broadcast %cst_23 : f32 to vector<16x16x16xf32>
    %66 = arith.select %64, %62, %65 : vector<16x16x16xi1>, vector<16x16x16xf32>
    %67 = arith.addf %66, %7 : vector<16x16x16xf32>
    %cst_24 = arith.constant 0.000000e+00 : f32
    %68 = vector.broadcast %cst_24 : f32 to vector<16x16x16xf32>
    %69 = arith.maximumf %67, %68 : vector<16x16x16xf32>
    %c0_25 = arith.constant 0 : index
    %c0_26 = arith.constant 0 : index
    %c0_27 = arith.constant 0 : index
    %70 = vector.load %arg5[%c0_25, %c0_26, %c0_27] : memref<16x16x16xf32, #tpu.memory_space<vmem>>, vector<16x16x16xf32>
    tpu.vector_store %arg5[%c0_25, %c0_26, %c0_27], %69 {strides = array<i32>} : memref<16x16x16xf32, #tpu.memory_space<vmem>>, vector<16x16x16xf32>,
    return
  }
  func.func @transform_0(%arg0: i32) -> (i32, i32) {
    %c0_i32 = arith.constant 0 : i32
    %c0_i32_0 = arith.constant 0 : i32
    return %arg0, %c0_i32 : i32, i32
  }
  func.func @transform_1(%arg0: i32) -> (i32, i32, i32) {
    %c0_i32 = arith.constant 0 : i32
    %c0_i32_0 = arith.constant 0 : i32
    %c0_i32_1 = arith.constant 0 : i32
    return %arg0, %c0_i32, %c0_i32_0 : i32, i32, i32
  }
  func.func @transform_2(%arg0: i32) -> (i32, i32) {
    %c0_i32 = arith.constant 0 : i32
    %c0_i32_0 = arith.constant 0 : i32
    %c0_i32_1 = arith.constant 0 : i32
    return %c0_i32, %c0_i32_0 : i32, i32
  }
  func.func @transform_3(%arg0: i32) -> (i32, i32) {
    %c0_i32 = arith.constant 0 : i32
    %c0_i32_0 = arith.constant 0 : i32
    %c0_i32_1 = arith.constant 0 : i32
    return %c0_i32, %c0_i32_0 : i32, i32
  }
  func.func @transform_4(%arg0: i32) -> (i32, i32, i32) {
    %c0_i32 = arith.constant 0 : i32
    %c0_i32_0 = arith.constant 0 : i32
    %c0_i32_1 = arith.constant 0 : i32
    return %arg0, %c0_i32, %c0_i32_0 : i32, i32, i32
  }
}

</mosaic_0001>

<bundles_post_ra>
// kernel: tpu_custom_call.1
= control target key start
LH: loop header
LB: loop body
LE: loop exit
PB: predicated region body
PF: predicated region fallthrough
CT: control target
= control target key end

     0   :  { %s6317_s15 = smov 0   ;;  %s8524_s0 = inlined_call_operand.vmem [shape: bf16[512,8], index: 0, kind: input, shape index: {}]   ;;  %s8525_s1 = inlined_call_operand.vmem [shape: f32[32,16,16], index: 1, kind: input, shape index: {}]   ;;  %s8526_s2 = inlined_call_operand.vmem [shape: bf16[8,64], index: 2, kind: input, shape index: {}]   ;;  %s8527_s3 = inlined_call_operand.vmem [shape: f32[1,64], index: 3, kind: input, shape index: {}]   ;;  %s8528_s4 = inlined_call_operand.vmem [shape: f32[32,16,16], index: 4, kind: output, shape index: {}]  }
   0x1 LB: > { %s5274_s16 = sadd.s32 4294967295, %s6280_s15   ;;  %p5278_p0 = scmp.ge.s32.totalorder %s6280_s15, 1  ;;  %s6280_s15 = sphi %s6317_s15, %s14_s15  }
   0x2   : > { %p175_p1 = scmp.lt.s32.totalorder %s6280_s15, 3 }
   0x4   : > { %p176_p2 = pnand %p5278_p0, %p175_p1 }
   0x6   : > { %179 = sbr.rel (%p176_p2) target bundleno = 1966 (0x7ae), region = 36 }
   0xd   : > { %v261_v0 = vld [vmem:[%s8526_s2] sm:$0xf]  ;;  %vm398_vm0 = vcmask 1043456   ;;  %s5279_s19 = sshll.u32 %s5274_s16, 5  ;;  %vm349_vm1 = vcmask 64512   ;;  %v8538_v18 = vmov 0.0  }
   0xe   : > { %5951 = vmatprep.subr.msk.bf16.mxu0 %vm398_vm0, %v261_v0  ;;  %v400_v1 = vsel %vm398_vm0, %v261_v0, 0  ;;  %p209_p3 = scmp.lt.s32.totalorder %s5279_s19, 63  ;;  %5567 = vmatprep.subr.bf16.mxu1 %v8538_v18  ;;  %vm6283_vm2 = vmmov 0   ;;  %v6376_v20 = vld [vmem:[%s8527_s3] ss:$0 sm:$0xff]  ;;  %s6284_s26 = smov 120  }
   0xf   : > { %5534 = vmatpush3.bf16.msra.mxu0 %v400_v1  ;;  %5569 = vmatprep.mubr.msk.bf16.mxu1 %vm6283_vm2, %v8538_v18  ;;  %s6285_s27 = smov 112   ;;  %s5281_s28 = sshll.u32 %s5274_s16, 4  ;;  %vm659_vm5 = vcmask 130048  }
  0x10   : > { %s8878_s19 = smov (!%p209_p3, %s5279_s19), 63  ;;  %5615 = vmatprep.subr.bf16.mxu0 %v8538_v18  ;;  %p215_p4 = scmp.lt.s32.totalorder %s5281_s28, 31 }
  0x11   : > { %s5280_s20 = sshll.u32 %s8878_s19, 2  ;;  %s6287_s7 = smov 96  }
  0x12   : > { %s6333_s23 = scalar_lea.vmem %s8524_s0, %s5280_s20  ;;  %s8880_s28 = smov (!%p215_p4, %s5281_s28), 31 }
  0x13   : > { %v5970_v2 = vld [vmem:[%s6333_s23] sm:$0xff]   ;;  %v5971_v3 = vld [vmem:[%s6333_s23 + $0x8] sm:$0xff]   ;;  %v5972_v4 = vld [vmem:[%s6333_s23 + $0x10] sm:$0xff]   ;;  %s5386_s29 = sshll.u32 %s8880_s28, 4  ;;  %s6288_s8 = smov 104  }
  0x14   : > { %5535 = vmatprep.mubr.msk.bf16.mxu0 %vm349_vm1, %v5970_v2  ;;  %v5973_v5 = vld [vmem:[%s6333_s23 + $0x18] sm:$0xff]   ;;  %v5974_v6 = vld [vmem:[%s6333_s23 + $0x20] sm:$0xff]   ;;  %v5975_v7 = vld [vmem:[%s6333_s23 + $0x28] sm:$0xff]   ;;  %s6770_s6 = scalar_lea.vmem %s8525_s1, %s5386_s29  ;;  %s6289_s9 = smov 88  }
  0x15   : > { %5536 = vmatmul.mubr.msk.bf16.vlgmr.msra.gmra.mrb[0].mxu0 %vm349_vm1, %v5971_v3  ;;  %v5976_v8 = vld [vmem:[%s6333_s23 + $0x30] sm:$0xff]   ;;  %v5977_v9 = vld [vmem:[%s6333_s23 + $0x38] sm:$0xff]   ;;  %v5978_v10 = vld [vmem:[%s6333_s23 + $0x40] sm:$0xff]   ;;  %s6290_s10 = smov 80   ;;  %s6291_s11 = smov 8  }
  0x16   : > { %5539 = vmatprep.mubr.msk.bf16.mxu0 %vm349_vm1, %v5972_v4  ;;  %v5979_v11 = vld [vmem:[%s6333_s23 + $0x48] sm:$0xff]   ;;  %v5980_v12 = vld [vmem:[%s6333_s23 + $0x50] sm:$0xff]   ;;  %v5981_v13 = vld [vmem:[%s6333_s23 + $0x58] sm:$0xff]   ;;  %s8336_s14 = scalar_lea.vmem %s8528_s4, %s5386_s29 }
  0x17   : > { %v5982_v14 = vld [vmem:[%s6333_s23 + $0x60] sm:$0xff]   ;;  %v5983_v15 = vld [vmem:[%s6333_s23 + $0x68] sm:$0xff]   ;;  %v5984_v16 = vld [vmem:[%s6333_s23 + $0x70] sm:$0xff]  }
  0x18   : > { %v5985_v17 = vld [vmem:[%s6333_s23 + $0x78] sm:$0xff]  }
  0x1d   : > { %5540 = vmatmul.mubr.msk.bf16.gmra.mrb[4].mxu0 %vm349_vm1, %v5973_v5 }
  0x1e   : > { %5543 = vmatprep.mubr.msk.bf16.mxu0 %vm349_vm1, %v5974_v6 }
  0x25   : > { %5544 = vmatmul.mubr.msk.bf16.gmra.mrb[8].mxu0 %vm349_vm1, %v5975_v7 }
  0x26   : > { %5547 = vmatprep.mubr.msk.bf16.mxu0 %vm349_vm1, %v5976_v8 }
  0x2d   : > { %5548 = vmatmul.mubr.msk.bf16.gmra.mrb[12].mxu0 %vm349_vm1, %v5977_v9 }
  0x2e   : > { %5551 = vmatprep.mubr.msk.bf16.mxu0 %vm349_vm1, %v5978_v10 }
  0x35   : > { %5552 = vmatmul.mubr.msk.bf16.gmra.mrb[16].mxu0 %vm349_vm1, %v5979_v11 }
  0x36   : > { %5555 = vmatprep.mubr.msk.bf16.mxu0 %vm349_vm1, %v5980_v12 }
  0x3d   : > { %5556 = vmatmul.mubr.msk.bf16.gmra.mrb[20].mxu0 %vm349_vm1, %v5981_v13 }
  0x3e   : > { %5559 = vmatprep.mubr.msk.bf16.mxu0 %vm349_vm1, %v5982_v14 }
  0x45   : > { %5560 = vmatmul.mubr.msk.bf16.gmra.mrb[24].mxu0 %vm349_vm1, %v5983_v15 }
  0x46   : > { %5563 = vmatprep.mubr.msk.bf16.mxu0 %vm349_vm1, %v5984_v16 }
  0x4d   : > { %5564 = vmatmul.mubr.msk.bf16.gmra.mrb[28].mxu0 %vm349_vm1, %v5985_v17 }
  0x4e   : > { %5617 = vmatprep.mubr.msk.bf16.mxu0 %vm6283_vm2, %v8538_v18 }
  0xe8   : > { %v5537_v19 = vpop.f32.mrb[0].mxu0 }
  0xe9   : > { %v436_v21 = vpop.f32.mrb[1].mxu0  ;;  %v6392_v28 = vadd.f32 %v5537_v19, %v6376_v20 }
  0xea   : > { %v5538_v22 = vpop.f32.mrb[2].mxu0  ;;  %v6379_v24 = vadd.f32 %v6376_v20, %v436_v21 }
  0xeb   : > { %v439_v23 = vpop.f32.mrb[3].mxu0  ;;  %v6385_v26 = vadd.f32 %v5538_v22, %v6376_v20  ;;  %8624 = vst [vmem:[#allocation5_spill] sm:$0xff] %v6392_v28 }
  0xec   : > { %8621 = vst [vmem:[#allocation2_spill] sm:$0xff] %v6379_v24  ;;  %v6382_v25 = vadd.f32 %v6376_v20, %v439_v23 }
  0xed   : > { %8623 = vst [vmem:[#allocation4_spill] sm:$0xff] %v6385_v26  ;;  %v6398_v31 = vpack.c.bf16 %v6385_v26, %v6392_v28 }
  0xee   : > { %8622 = vst [vmem:[#allocation3_spill] sm:$0xff] %v6382_v25  ;;  %v6389_v27 = vpack.c.bf16 %v6382_v25, %v6379_v24 }
  0xf0   : > { %v5541_v29 = vpop.f32.mrb[4].mxu0  ;;  %853 = vrot.lane.b32.xlu0 %v6389_v27, %s6284_s26 }
  0xf1   : > { %v452_v30 = vpop.f32.mrb[5].mxu0  ;;  %v6404_v35 = vadd.f32 %v5541_v29, %v6376_v20 }
  0xf2   : > { %v6401_v32 = vadd.f32 %v6376_v20, %v452_v30  ;;  %v5542_v33 = vpop.f32.mrb[6].mxu0 }
  0xf3   : > { %v455_v34 = vpop.f32.mrb[7].mxu0  ;;  %8626 = vst [vmem:[#allocation7_spill] sm:$0xff] %v6404_v35  ;;  %v6407_v36 = vadd.f32 %v5542_v33, %v6376_v20 }
  0xf4   : > { %8625 = vst [vmem:[#allocation6_spill] sm:$0xff] %v6401_v32  ;;  %v6410_v37 = vadd.f32 %v6376_v20, %v455_v34  ;;  %903 = vrot.lane.b32.xlu0 %v6398_v31, %s6284_s26 }
  0xf5   : > { %8627 = vst [vmem:[#allocation8_spill] sm:$0xff] %v6407_v36  ;;  %v6420_v39 = vpack.c.bf16 %v6407_v36, %v6404_v35 }
  0xf6   : > { %8628 = vst [vmem:[#allocation9_spill] sm:$0xff] %v6410_v37  ;;  %v6416_v38 = vpack.c.bf16 %v6410_v37, %v6401_v32 }
  0xf8   : > { %v5545_v40 = vpop.f32.mrb[8].mxu0  ;;  %953 = vrot.lane.b32.xlu1 %v6416_v38, %s6284_s26 }
  0xf9   : > { %v6425_v41 = vadd.f32 %v5545_v40, %v6376_v20  ;;  %v468_v42 = vpop.f32.mrb[9].mxu0 }
  0xfa   : > { %v6428_v43 = vadd.f32 %v6376_v20, %v468_v42  ;;  %v5546_v44 = vpop.f32.mrb[10].mxu0 }
  0xfb   : > { %8629 = vst [vmem:[#allocation10_spill] sm:$0xff] %v6425_v41  ;;  %v6431_v45 = vadd.f32 %v5546_v44, %v6376_v20  ;;  %v471_v46 = vpop.f32.mrb[11].mxu0 }
  0xfc   : > { %8630 = vst [vmem:[#allocation11_spill] sm:$0xff] %v6428_v43  ;;  %v6434_v47 = vadd.f32 %v6376_v20, %v471_v46  ;;  %1003 = vrot.lane.b32.xlu1 %v6420_v39, %s6284_s26 }
  0xfd   : > { %8631 = vst [vmem:[#allocation12_spill] sm:$0xff] %v6431_v45  ;;  %v6440_v48 = vpack.c.bf16 %v6431_v45, %v6425_v41 }
  0xfe   : > { %8632 = vst [vmem:[#allocation13_spill] sm:$0xff] %v6434_v47  ;;  %v6444_v49 = vpack.c.bf16 %v6434_v47, %v6428_v43 }
 0x100   : > { %v5549_v50 = vpop.f32.mrb[12].mxu0  ;;  %1103 = vrot.lane.b32.xlu1 %v6440_v48, %s6284_s26  ;;  %1053 = vrot.lane.b32.xlu0 %v6444_v49, %s6284_s26 }
 0x101   : > { %v6451_v51 = vadd.f32 %v5549_v50, %v6376_v20  ;;  %v484_v52 = vpop.f32.mrb[13].mxu0 }
 0x102   : > { %v6454_v53 = vadd.f32 %v6376_v20, %v484_v52  ;;  %v5550_v54 = vpop.f32.mrb[14].mxu0 }
 0x103   : > { %8633 = vst [vmem:[#allocation14_spill] sm:$0xff] %v6451_v51  ;;  %v6457_v55 = vadd.f32 %v5550_v54, %v6376_v20  ;;  %v487_v56 = vpop.f32.mrb[15].mxu0 }
 0x104   : > { %8634 = vst [vmem:[#allocation15_spill] sm:$0xff] %v6454_v53  ;;  %v6460_v57 = vadd.f32 %v6376_v20, %v487_v56 }
 0x105   : > { %8635 = vst [vmem:[#allocation16_spill] sm:$0xff] %v6457_v55  ;;  %v6464_v58 = vpack.c.bf16 %v6457_v55, %v6451_v51 }
 0x106   : > { %8636 = vst [vmem:[#allocation17_spill] sm:$0xff] %v6460_v57  ;;  %v6468_v59 = vpack.c.bf16 %v6460_v57, %v6454_v53 }
 0x107   : > { %1203 = vrot.lane.b32.xlu1 %v6464_v58, %s6284_s26 }
 0x108   : > { %8637 = vst [vmem:[#allocation18_spill] sm:$0xff] %v6468_v59  ;;  %v5553_v60 = vpop.f32.mrb[16].mxu0  ;;  %1153 = vrot.lane.b32.xlu0 %v6468_v59, %s6284_s26 }
 0x109   : > { %v6475_v61 = vadd.f32 %v5553_v60, %v6376_v20  ;;  %v500_v62 = vpop.f32.mrb[17].mxu0 }
 0x10a   : > { %v6478_v63 = vadd.f32 %v6376_v20, %v500_v62  ;;  %v5554_v0 = vpop.f32.mrb[18].mxu0 }
 0x10b   : > { %8638 = vst [vmem:[#allocation19_spill] sm:$0xff] %v6475_v61  ;;  %v6481_v1 = vadd.f32 %v5554_v0, %v6376_v20  ;;  %v503_v2 = vpop.f32.mrb[19].mxu0 }
 0x10c   : > { %8639 = vst [vmem:[#allocation20_spill] sm:$0xff] %v6478_v63  ;;  %v6484_v3 = vadd.f32 %v6376_v20, %v503_v2  ;;  %v789_v2 = vmul.f32 0.35355338, %v6382_v25 }
 0x10d   : > { %8640 = vst [vmem:[#allocation21_spill] sm:$0xff] %v6481_v1  ;;  %v6488_v4 = vpack.c.bf16 %v6481_v1, %v6475_v61 }
 0x10e   : > { %8641 = vst [vmem:[#allocation22_spill] sm:$0xff] %v6484_v3  ;;  %v6492_v5 = vpack.c.bf16 %v6484_v3, %v6478_v63 }
 0x10f   : > { %8642 = vst [vmem:[#allocation23_spill] sm:$0xff] %v6488_v4  ;;  %1303 = vrot.lane.b32.xlu1 %v6488_v4, %s6284_s26 }
 0x110   : > { %8643 = vst [vmem:[#allocation24_spill] sm:$0xff] %v6492_v5  ;;  %v5557_v6 = vpop.f32.mrb[20].mxu0  ;;  %1253 = vrot.lane.b32.xlu0 %v6492_v5, %s6284_s26 }
 0x111   : > { %v6499_v7 = vadd.f32 %v5557_v6, %v6376_v20  ;;  %v516_v8 = vpop.f32.mrb[21].mxu0  ;;  %v788_v6 = vmul.f32 0.35355338, %v6379_v24 }
 0x112   : > { %v6502_v9 = vadd.f32 %v6376_v20, %v516_v8  ;;  %v5558_v10 = vpop.f32.mrb[22].mxu0 }
 0x113   : > { %8644 = vst [vmem:[#allocation25_spill] sm:$0xff] %v6499_v7  ;;  %v6505_v11 = vadd.f32 %v5558_v10, %v6376_v20  ;;  %v519_v12 = vpop.f32.mrb[23].mxu0  ;;  %v6602_v10 = vpack.c.bf16 %v789_v2, %v788_v6 }
 0x114   : > { %8645 = vst [vmem:[#allocation26_spill] sm:$0xff] %v6502_v9  ;;  %v6508_v13 = vadd.f32 %v6376_v20, %v519_v12 }
 0x115   : > { %8646 = vst [vmem:[#allocation27_spill] sm:$0xff] %v6505_v11  ;;  %v6512_v14 = vpack.c.bf16 %v6505_v11, %v6499_v7 }
 0x116   : > { %8647 = vst [vmem:[#allocation28_spill] sm:$0xff] %v6508_v13  ;;  %v6516_v15 = vpack.c.bf16 %v6508_v13, %v6502_v9 }
 0x117   : > { %8648 = vst [vmem:[#allocation29_spill] sm:$0xff] %v6512_v14  ;;  %1403 = vrot.lane.b32.xlu1 %v6512_v14, %s6284_s26 }
 0x118   : > { %8649 = vst [vmem:[#allocation30_spill] sm:$0xff] %v6516_v15  ;;  %v5561_v16 = vpop.f32.mrb[24].mxu0  ;;  %1353 = vrot.lane.b32.xlu0 %v6516_v15, %s6284_s26 }
 0x119   : > { %v6523_v17 = vadd.f32 %v5561_v16, %v6376_v20  ;;  %v532_v19 = vpop.f32.mrb[25].mxu0  ;;  %v791_v16 = vmul.f32 0.35355338, %v6385_v26  ;;  %v574_v26 = vld [vmem:[%s6770_s6 + $0x58] sm:$0xff] }
 0x11a   : > { %v6526_v21 = vadd.f32 %v6376_v20, %v532_v19  ;;  %v5562_v22 = vpop.f32.mrb[26].mxu0  ;;  %v790_v19 = vmul.f32 0.35355338, %v6392_v28 }
 0x11b   : > { %8650 = vst [vmem:[#allocation31_spill] sm:$0xff] %v6523_v17  ;;  %v6529_v23 = vadd.f32 %v5562_v22, %v6376_v20  ;;  %v535_v29 = vpop.f32.mrb[27].mxu0 }
 0x11c   : > { %8651 = vst [vmem:[#allocation32_spill] sm:$0xff] %v6526_v21  ;;  %v6532_v30 = vadd.f32 %v6376_v20, %v535_v29  ;;  %v6612_v22 = vpack.c.bf16 %v791_v16, %v790_v19 }
 0x11d   : > { %8652 = vst [vmem:[#allocation33_spill] sm:$0xff] %v6529_v23  ;;  %v6536_v33 = vpack.c.bf16 %v6529_v23, %v6523_v17 }
 0x11e   : > { %8653 = vst [vmem:[#allocation34_spill] sm:$0xff] %v6532_v30  ;;  %v6540_v34 = vpack.c.bf16 %v6532_v30, %v6526_v21 }
 0x11f   : > { %8654 = vst [vmem:[#allocation35_spill] sm:$0xff] %v6536_v33  ;;  %1503 = vrot.lane.b32.xlu1 %v6536_v33, %s6284_s26 }
 0x120   : > { %8655 = vst [vmem:[#allocation36_spill] sm:$0xff] %v6540_v34  ;;  %v5565_v40 = vpop.f32.mrb[28].mxu0  ;;  %1453 = vrot.lane.b32.xlu0 %v6540_v34, %s6284_s26 }
 0x121   : > { %v6547_v42 = vadd.f32 %v5565_v40, %v6376_v20  ;;  %v548_v44 = vpop.f32.mrb[29].mxu0 }
 0x122   : > { %v6550_v46 = vadd.f32 %v6376_v20, %v548_v44  ;;  %v5566_v50 = vpop.f32.mrb[30].mxu0  ;;  %v792_v44 = vmul.f32 0.35355338, %v6401_v32 }
 0x123   : > { %8656 = vst [vmem:[#allocation37_spill] sm:$0xff] %v6547_v42  ;;  %v6553_v52 = vadd.f32 %v5566_v50, %v6376_v20  ;;  %v551_v54 = vpop.f32.mrb[31].mxu0  ;;  %v793_v50 = vmul.f32 0.35355338, %v6410_v37  ;;  %v583_v37 = vld [vmem:[%s6770_s6 + $0xa0] sm:$0xff] }
 0x124   : > { %8657 = vst [vmem:[#allocation38_spill] sm:$0xff] %v6550_v46  ;;  %v6556_v56 = vadd.f32 %v6376_v20, %v551_v54 }
 0x125   : > { %8658 = vst [vmem:[#allocation39_spill] sm:$0xff] %v6553_v52  ;;  %v6560_v60 = vpack.c.bf16 %v6553_v52, %v6547_v42 }
 0x126   : > { %8659 = vst [vmem:[#allocation40_spill] sm:$0xff] %v6556_v56  ;;  %v6564_v62 = vpack.c.bf16 %v6556_v56, %v6550_v46 }
 0x127   : > { %1603 = vrot.lane.b32.xlu1 %v6560_v60, %s6284_s26 }
 0x128   : > { %1553 = vrot.lane.b32.xlu0 %v6564_v62, %s6284_s26 }
 0x12b   : > { %2020 = vrot.lane.b32.xlu1 %v6389_v27, %s6285_s27 }
 0x12c   : > { %2067 = vrot.lane.b32.xlu0 %v6398_v31, %s6285_s27 }
 0x12f   : > { %2114 = vrot.lane.b32.xlu1 %v6416_v38, %s6285_s27 }
 0x130   : > { %2161 = vrot.lane.b32.xlu0 %v6420_v39, %s6285_s27 }
 0x133   : > { %2208 = vrot.lane.b32.xlu1 %v6444_v49, %s6285_s27 }
 0x134   : > { %2255 = vrot.lane.b32.xlu0 %v6440_v48, %s6285_s27 }
 0x137   : > { %2302 = vrot.lane.b32.xlu1 %v6468_v59, %s6285_s27 }
 0x138   : > { %2349 = vrot.lane.b32.xlu0 %v6464_v58, %s6285_s27 }
 0x13b   : > { %2396 = vrot.lane.b32.xlu1 %v6492_v5, %s6285_s27 }
 0x13c   : > { %2443 = vrot.lane.b32.xlu0 %v6488_v4, %s6285_s27 }
 0x13f   : > { %2490 = vrot.lane.b32.xlu1 %v6516_v15, %s6285_s27 }
 0x140   : > { %2584 = vrot.lane.b32.xlu0 %v6540_v34, %s6285_s27 }
 0x143   : > { %2537 = vrot.lane.b32.xlu1 %v6512_v14, %s6285_s27 }
 0x147   : > { %2631 = vrot.lane.b32.xlu1 %v6536_v33, %s6285_s27 }
 0x162   : > { %v854_v20 = vpop.permute.xlu0 %853 }
 0x163   : > { %v859_v0 = vsel %vm349_vm1, %v854_v20, 0 }
 0x164   : > { %5568 = vmatpush3.bf16.xpose.msra.mxu1 %v859_v0  ;;  %v6622_v0 = vpack.c.bf16 %v793_v50, %v792_v44  ;;  %v796_v44 = vmul.f32 0.35355338, %v6428_v43  ;;  %v797_v50 = vmul.f32 0.35355338, %v6434_v47  ;;  %v798_v43 = vmul.f32 0.35355338, %v6425_v41 }
 0x165   : > { %5573 = vmatprep.subr.bf16.mxu1 %v8538_v18  ;;  %v800_v41 = vmul.f32 0.35355338, %v6454_v53 }
 0x166   : > { %v904_v8 = vpop.permute.xlu0 %903 }
 0x167   : > { %v909_v12 = vsel %vm349_vm1, %v904_v8, 0  ;;  %v794_v8 = vmul.f32 0.35355338, %v6404_v35 }
 0x16a   : > { %v954_v29 = vpop.permute.xlu1 %953 }
 0x16b   : > { %5570 = vmatmul.mubr.msk.bf16.vlgmr.msra.gmra.mrb[0].mxu1 %vm349_vm1, %v6602_v10  ;;  %v959_v40 = vsel %vm349_vm1, %v954_v29, 0 }
 0x16c   : > { %5574 = vmatpush3.bf16.xpose.msra.mxu1 %v909_v12  ;;  %5575 = vmatprep.mubr.msk.bf16.mxu1 %vm6283_vm2, %v8538_v18  ;;  %v795_v12 = vmul.f32 0.35355338, %v6407_v36 }
 0x16d   : > { %5579 = vmatprep.subr.bf16.mxu1 %v8538_v18 }
 0x16e   : > { %v1004_v20 = vpop.permute.xlu1 %1003  ;;  %v6632_v16 = vpack.c.bf16 %v795_v12, %v794_v8 }
 0x16f   : > { %v1009_v2 = vsel %vm349_vm1, %v1004_v20, 0  ;;  %v804_v20 = vmul.f32 0.35355338, %v6478_v63 }
 0x172   : > { %v1054_v54 = vpop.permute.xlu0 %1053  ;;  %v1104_v8 = vpop.permute.xlu1 %1103 }
 0x173   : > { %5576 = vmatmul.mubr.msk.bf16.vlgmr.msra.gmra.mrb[4].mxu1 %vm349_vm1, %v6612_v22  ;;  %v1059_v29 = vsel %vm349_vm1, %v1054_v54, 0  ;;  %v6646_v54 = vpack.c.bf16 %v797_v50, %v796_v44  ;;  %v799_v44 = vmul.f32 0.35355338, %v6431_v45  ;;  %v808_v50 = vmul.f32 0.35355338, %v6502_v9  ;;  %v580_v45 = vld [vmem:[%s6770_s6 + $0x88] sm:$0xff] }
 0x174   : > { %5580 = vmatpush3.bf16.xpose.msra.mxu1 %v959_v40  ;;  %5581 = vmatprep.mubr.msk.bf16.mxu1 %vm6283_vm2, %v8538_v18  ;;  %vm612_vm15 = vcmp.gt.f32.partialorder %v580_v45, 0.0 }
 0x175   : > { %5585 = vmatprep.subr.bf16.mxu1 %v8538_v18 }
 0x17a   : > { %v1154_v6 = vpop.permute.xlu0 %1153 }
 0x17b   : > { %5582 = vmatmul.mubr.msk.bf16.vlgmr.msra.gmra.mrb[8].mxu1 %vm349_vm1, %v6622_v0  ;;  %v1159_v9 = vsel %vm349_vm1, %v1154_v6, 0 }
 0x17c   : > { %5586 = vmatpush3.bf16.xpose.msra.mxu1 %v1009_v2  ;;  %5587 = vmatprep.mubr.msk.bf16.mxu1 %vm6283_vm2, %v8538_v18  ;;  %v805_v2 = vmul.f32 0.35355338, %v6484_v3 }
 0x17d   : > { %5591 = vmatprep.subr.bf16.mxu1 %v8538_v18 }
 0x17e   : > { %v6648_v12 = vpack.c.bf16 %v805_v2, %v804_v20  ;;  %v809_v20 = vmul.f32 0.35355338, %v6508_v13 }
 0x180   : > { %8660 = vst [vmem:[#allocation41_spill] sm:$0xff] %v6648_v12 }
 0x182   : > { %v1254_v19 = vpop.permute.xlu0 %1253 }
 0x183   : > { %v1259_v40 = vsel %vm349_vm1, %v1254_v19, 0  ;;  %5588 = vmatmul.mubr.msk.bf16.vlgmr.msra.gmra.mrb[12].mxu1 %vm349_vm1, %v6632_v16  ;;  %v1204_v19 = vpop.permute.xlu1 %1203 }
 0x184   : > { %5592 = vmatpush3.bf16.xpose.msra.mxu1 %v1059_v29  ;;  %5616 = vmatpush3.bf16.xpose.msra.mxu0 %v1259_v40  ;;  %v1109_v40 = vsel %vm349_vm1, %v1104_v8, 0  ;;  %v6666_v8 = vpack.c.bf16 %v799_v44, %v798_v43  ;;  %v801_v43 = vmul.f32 0.35355338, %v6460_v57  ;;  %v812_v44 = vmul.f32 0.35355338, %v6526_v21  ;;  %v572_v57 = vld [vmem:[%s6770_s6 + $0x48] sm:$0xff] }
 0x185   : > { %5593 = vmatprep.mubr.msk.bf16.mxu1 %vm6283_vm2, %v8538_v18  ;;  %5597 = vmatprep.subr.bf16.mxu1 %v8538_v18  ;;  %vm604_vm14 = vcmp.gt.f32.partialorder %v572_v57, 0.0 }
 0x186   : > { %5627 = vmatprep.subr.bf16.mxu0 %v8538_v18 }
 0x187   : > { %v1304_v2 = vpop.permute.xlu1 %1303 }
 0x18a   : > { %v1354_v29 = vpop.permute.xlu0 %1353 }
 0x18b   : > { %v1359_v63 = vsel %vm349_vm1, %v1354_v29, 0  ;;  %5594 = vmatmul.mubr.msk.bf16.vlgmr.msra.gmra.mrb[16].mxu1 %vm349_vm1, %v6646_v54  ;;  %5618 = vmatmul.mubr.msk.bf16.vlgmr.msra.gmra.mrb[32].mxu0 %vm349_vm1, %v6648_v12  ;;  %v1404_v29 = vpop.permute.xlu1 %1403 }
 0x18c   : > { %5598 = vmatpush3.bf16.xpose.msra.mxu1 %v1109_v40  ;;  %5628 = vmatpush3.bf16.xpose.msra.mxu0 %v1359_v63  ;;  %v6668_v63 = vpack.c.bf16 %v809_v20, %v808_v50  ;;  %v813_v50 = vmul.f32 0.35355338, %v6532_v30  ;;  %v6686_v20 = vpack.c.bf16 %v801_v43, %v800_v41  ;;  %v802_v30 = vmul.f32 0.35355338, %v6451_v51 }
 0x18d   : > { %5629 = vmatprep.mubr.msk.bf16.mxu0 %vm6283_vm2, %v8538_v18  ;;  %5599 = vmatprep.mubr.msk.bf16.mxu1 %vm6283_vm2, %v8538_v18  ;;  %v803_v41 = vmul.f32 0.35355338, %v6457_v55  ;;  %v816_v43 = vmul.f32 0.35355338, %v6550_v46  ;;  %v806_v46 = vmul.f32 0.35355338, %v6475_v61 }
 0x18e   : > { %5603 = vmatprep.subr.bf16.mxu1 %v8538_v18  ;;  %5639 = vmatprep.subr.bf16.mxu0 %v8538_v18  ;;  %8661 = vst [vmem:[#allocation42_spill] sm:$0xff] %v6668_v63  ;;  %8662 = vst [vmem:[#allocation43_spill] sm:$0xff] %v6686_v20  ;;  %v571_v55 = vld [vmem:[%s6770_s6 + $0x40] sm:$0xff] }
 0x18f   : > { %vm603_vm12 = vcmp.gt.f32.partialorder %v571_v55, 0.0 }
 0x191   : > { %v1504_v6 = vpop.permute.xlu1 %1503 }
 0x192   : > { %v1454_v40 = vpop.permute.xlu0 %1453 }
 0x193   : > { %v1459_v13 = vsel %vm349_vm1, %v1454_v40, 0  ;;  %5600 = vmatmul.mubr.msk.bf16.vlgmr.msra.gmra.mrb[20].mxu1 %vm349_vm1, %v6666_v8  ;;  %5630 = vmatmul.mubr.msk.bf16.vlgmr.msra.gmra.mrb[36].mxu0 %vm349_vm1, %v6668_v63  ;;  %v1209_v40 = vsel %vm349_vm1, %v1204_v19, 0  ;;  %v6706_v19 = vpack.c.bf16 %v803_v41, %v802_v30  ;;  %v810_v41 = vmul.f32 0.35355338, %v6499_v7 }
 0x194   : > { %5604 = vmatpush3.bf16.xpose.msra.mxu1 %v1159_v9  ;;  %5640 = vmatpush3.bf16.xpose.msra.mxu0 %v1459_v13  ;;  %v6688_v9 = vpack.c.bf16 %v813_v50, %v812_v44  ;;  %v817_v44 = vmul.f32 0.35355338, %v6556_v56  ;;  %v807_v56 = vmul.f32 0.35355338, %v6481_v1 }
 0x195   : > { %5641 = vmatprep.mubr.msk.bf16.mxu0 %vm6283_vm2, %v8538_v18  ;;  %5605 = vmatprep.mubr.msk.bf16.mxu1 %vm6283_vm2, %v8538_v18  ;;  %8664 = vst [vmem:[#allocation45_spill] sm:$0xff] %v6706_v19 }
 0x196   : > { %5609 = vmatprep.subr.bf16.mxu1 %v8538_v18  ;;  %5651 = vmatprep.subr.bf16.mxu0 %v8538_v18  ;;  %8663 = vst [vmem:[#allocation44_spill] sm:$0xff] %v6688_v9  ;;  %v6723_v30 = vpack.c.bf16 %v807_v56, %v806_v46  ;;  %v1509_v46 = vsel %vm349_vm1, %v1504_v6, 0  ;;  %v814_v56 = vmul.f32 0.35355338, %v6523_v17  ;;  %v818_v6 = vmul.f32 0.35355338, %v6547_v42 }
 0x197   : > { %v566_v42 = vld [vmem:[%s6770_s6 + $0x18] sm:$0xff] }
 0x198   : > { %8666 = vst [vmem:[#allocation47_spill] sm:$0xff] %v6723_v30  ;;  %vm598_vm7 = vcmp.gt.f32.partialorder %v566_v42, 0.0 }
 0x199   : > { %v1604_v50 = vpop.permute.xlu1 %1603 }
 0x19a   : > { %v1554_v13 = vpop.permute.xlu0 %1553 }
 0x19b   : > { %v1559_v21 = vsel %vm349_vm1, %v1554_v13, 0  ;;  %5606 = vmatmul.mubr.msk.bf16.vlgmr.msra.gmra.mrb[24].mxu1 %vm349_vm1, %v6686_v20  ;;  %5642 = vmatmul.mubr.msk.bf16.vlgmr.msra.gmra.mrb[40].mxu0 %vm349_vm1, %v6688_v9  ;;  %v1309_v13 = vsel %vm349_vm1, %v1304_v2, 0  ;;  %v1409_v2 = vsel %vm349_vm1, %v1404_v29, 0  ;;  %v815_v29 = vmul.f32 0.35355338, %v6529_v23 }
 0x19c   : > { %5610 = vmatpush3.bf16.xpose.msra.mxu1 %v1209_v40  ;;  %5652 = vmatpush3.bf16.xpose.msra.mxu0 %v1559_v21  ;;  %v6708_v21 = vpack.c.bf16 %v817_v44, %v816_v43  ;;  %v811_v43 = vmul.f32 0.35355338, %v6505_v11 }
 0x19d   : > { %5653 = vmatprep.mubr.msk.bf16.mxu0 %vm6283_vm2, %v8538_v18  ;;  %5611 = vmatprep.mubr.msk.bf16.mxu1 %vm6283_vm2, %v8538_v18  ;;  %v2021_v40 = vpop.permute.xlu1 %2020 }
 0x19e   : > { %5621 = vmatprep.subr.bf16.mxu1 %v8538_v18  ;;  %5663 = vmatprep.subr.bf16.mxu0 %v8538_v18  ;;  %8665 = vst [vmem:[#allocation46_spill] sm:$0xff] %v6708_v21  ;;  %v6733_v44 = vpack.c.bf16 %v811_v43, %v810_v41  ;;  %v2068_v43 = vpop.permute.xlu0 %2067 }
 0x1a0   : > { %8667 = vst [vmem:[#allocation48_spill] sm:$0xff] %v6733_v44 }
 0x1a1   : > { %v7060_v12 = vpop.permute.xlu1 %2114 }
 0x1a3   : > { %5612 = vmatmul.mubr.msk.bf16.vlgmr.msra.gmra.mrb[28].mxu1 %vm349_vm1, %v6706_v19  ;;  %5654 = vmatmul.mubr.msk.bf16.vlgmr.msra.gmra.mrb[44].mxu0 %vm349_vm1, %v6708_v21 }
 0x1a4   : > { %5622 = vmatpush3.bf16.xpose.msra.mxu1 %v1309_v13  ;;  %5664 = vmatpush3.bf16.msra.mxu0 %v2021_v40  ;;  %v6743_v13 = vpack.c.bf16 %v815_v29, %v814_v56  ;;  %v1609_v40 = vsel %vm349_vm1, %v1604_v50, 0  ;;  %v563_v50 = vld [vmem:[%s6770_s6] sm:$0xff]  ;;  %v8543_v56 = vmov -1e+30  }
 0x1a5   : > { %5623 = vmatprep.mubr.msk.bf16.mxu1 %vm6283_vm2, %v8538_v18  ;;  %5633 = vmatprep.subr.bf16.mxu1 %v8538_v18  ;;  %vm595_vm3 = vcmp.gt.f32.partialorder %v563_v50, 0.0 }
 0x1a6   : > { %5665 = vmatprep.mubr.msk.bf16.mxu0 %vm6283_vm2, %v8538_v18  ;;  %5675 = vmatprep.subr.bf16.mxu0 %v8538_v18  ;;  %8668 = vst [vmem:[#allocation49_spill] sm:$0xff] %v6743_v13  ;;  %v6775_v29 = vsel %vm595_vm3, 0.0, %v8543_v56  ;;  %vm615_vm3 = vcmp.gt.f32.partialorder %v583_v37, 0.0 }
 0x1a7   : > { %8670 = vst [vmem:[#allocation51_spill] sm:$0xff] %v6775_v29 }
 0x1ab   : > { %5624 = vmatmul.mubr.msk.bf16.vlgmr.msra.gmra.mrb[32].mxu1 %vm349_vm1, %v6723_v30 }
 0x1ac   : > { %5634 = vmatpush3.bf16.xpose.msra.mxu1 %v1409_v2  ;;  %5635 = vmatprep.mubr.msk.bf16.mxu1 %vm6283_vm2, %v8538_v18  ;;  %v819_v2 = vmul.f32 0.35355338, %v6553_v52 }
 0x1ad   : > { %5645 = vmatprep.subr.bf16.mxu1 %v8538_v18 }
 0x1ae   : > { %v6753_v41 = vpack.c.bf16 %v819_v2, %v818_v6  ;;  %v565_v2 = vld [vmem:[%s6770_s6 + $0x10] sm:$0xff] }
 0x1af   : > { %vm597_vm6 = vcmp.gt.f32.partialorder %v565_v2, 0.0 }
 0x1b0   : > { %8669 = vst [vmem:[#allocation50_spill] sm:$0xff] %v6753_v41 }
 0x1b3   : > { %5636 = vmatmul.mubr.msk.bf16.vlgmr.msra.gmra.mrb[36].mxu1 %vm349_vm1, %v6733_v44 }
 0x1b4   : > { %5646 = vmatpush3.bf16.xpose.msra.mxu1 %v1509_v46  ;;  %5647 = vmatprep.mubr.msk.bf16.mxu1 %vm6283_vm2, %v8538_v18  ;;  %v564_v46 = vld [vmem:[%s6770_s6 + $0x8] sm:$0xff] }
 0x1b5   : > { %5657 = vmatprep.subr.bf16.mxu1 %v8538_v18  ;;  %vm596_vm4 = vcmp.gt.f32.partialorder %v564_v46, 0.0 }
 0x1b6   : > { %v6778_v6 = vsel %vm596_vm4, 0.0, %v8543_v56  ;;  %vm606_vm4 = vcmp.gt.f32.partialorder %v574_v26, 0.0  ;;  %v575_v26 = vld [vmem:[%s6770_s6 + $0x60] sm:$0xff] }
 0x1b7   : > { %8671 = vst [vmem:[#allocation52_spill] sm:$0xff] %v6778_v6 }
 0x1bb   : > { %5648 = vmatmul.mubr.msk.bf16.vlgmr.msra.gmra.mrb[40].mxu1 %vm349_vm1, %v6743_v13 }
 0x1bc   : > { %5658 = vmatpush3.bf16.xpose.msra.mxu1 %v1609_v40  ;;  %5659 = vmatprep.mubr.msk.bf16.mxu1 %vm6283_vm2, %v8538_v18 }
 0x1bd   : > { %5669 = vmatprep.subr.bf16.mxu1 %v8538_v18 }
 0x1c3   : > { %5660 = vmatmul.mubr.msk.bf16.vlgmr.msra.gmra.mrb[44].mxu1 %vm349_vm1, %v6753_v41  ;;  %v592_v41 = vld [vmem:[%s6770_s6 + $0xe8] sm:$0xff] }
 0x1c4   : > { %5670 = vmatpush3.bf16.msra.mxu1 %v2068_v43  ;;  %5671 = vmatprep.mubr.msk.bf16.mxu1 %vm6283_vm2, %v8538_v18 }
 0x1c5   : > { %5681 = vmatprep.subr.bf16.mxu1 %v8538_v18 }
 0x23e   : > { %v895_v40 = vpop.f32.mrb[0].mxu1 }
 0x23f   : > { %v6782_v43 = vadd.f32 %v895_v40, %v6775_v29  ;;  %v5571_v18 = vpop.f32.mrb[1].mxu1  ;;  %v8672_v40 = vmov -1e+30   ;;  %v578_v29 = vld [vmem:[%s6770_s6 + $0x78] sm:$0xff] }
 0x240   : > { %v898_v52 = vpop.f32.mrb[2].mxu1  ;;  %v6793_v7 = vsel %vm597_vm6, 0.0, %v8672_v40  ;;  %v6796_v61 = vsel %vm598_vm7, 0.0, %v8672_v40  ;;  %v6855_v55 = vsel %vm604_vm14, 0.0, %v8672_v40  ;;  %v6862_v36 = vsel %vm612_vm15, 0.0, %v8672_v40 }
 0x241   : > { %v6786_v50 = vadd.f32 %v898_v52, %v6778_v6  ;;  %v5572_v46 = vpop.f32.mrb[3].mxu1  ;;  %v1652_v17 = vsel %vm659_vm5, %v6782_v43, -inf  ;;  %8673 = vst [vmem:[#allocation53_spill] sm:$0xff] %v6793_v7  ;;  %8674 = vst [vmem:[#allocation54_spill] sm:$0xff] %v6796_v61  ;;  %v567_v52 = vld [vmem:[%s6770_s6 + $0x20] sm:$0xff]  ;;  %vm607_vm7 = vcmp.gt.f32.partialorder %v575_v26, 0.0 }
 0x242   : > { %1653 = vmax.xlane.f32.xlu0 %v1652_v17  ;;  %v568_v17 = vld [vmem:[%s6770_s6 + $0x28] sm:$0xff]  ;;  %vm599_vm8 = vcmp.gt.f32.partialorder %v567_v52, 0.0  ;;  %8681 = vst [vmem:[#allocation61_spill] sm:$0xff] %v6855_v55  ;;  %8682 = vst [vmem:[#allocation62_spill] sm:$0xff] %v6862_v36  ;;  %vm624_vm14 = vcmp.gt.f32.partialorder %v592_v41, 0.0 }
 0x243   : > { %v1655_v56 = vsel %vm659_vm5, %v6786_v50, -inf  ;;  %vm600_vm9 = vcmp.gt.f32.partialorder %v568_v17, 0.0  ;;  %v6809_v11 = vsel %vm599_vm8, 0.0, %v8672_v40  ;;  %v6970_v41 = vsel %vm624_vm14, 0.0, %v8672_v40 }
 0x244   : > { %1656 = vmax.xlane.f32.xlu1 %v1655_v56  ;;  %8675 = vst [vmem:[#allocation55_spill] sm:$0xff] %v6809_v11  ;;  %v6814_v53 = vsel %vm600_vm9, 0.0, %v8672_v40  ;;  %8694 = vst [vmem:[#allocation74_spill] sm:$0xff] %v6970_v41 }
 0x245   : > { %8676 = vst [vmem:[#allocation56_spill] sm:$0xff] %v6814_v53 }
 0x246   : > { %v945_v18 = vpop.f32.mrb[4].mxu1 }
 0x247   : > { %v6800_v46 = vadd.f32 %v945_v18, %v6793_v7  ;;  %v5577_v23 = vpop.f32.mrb[5].mxu1 }
 0x248   : > { %v948_v2 = vpop.f32.mrb[6].mxu1 }
 0x249   : > { %v6804_v51 = vadd.f32 %v948_v2, %v6796_v61  ;;  %v5578_v42 = vpop.f32.mrb[7].mxu1  ;;  %v1658_v56 = vsel %vm659_vm5, %v6800_v46, -inf  ;;  %v569_v2 = vld [vmem:[%s6770_s6 + $0x30] sm:$0xff]  ;;  %v576_v61 = vld [vmem:[%s6770_s6 + $0x68] sm:$0xff] }
 0x24a   : > { %1659 = vmax.xlane.f32.xlu0 %v1658_v56  ;;  %v570_v56 = vld [vmem:[%s6770_s6 + $0x38] sm:$0xff]  ;;  %vm601_vm10 = vcmp.gt.f32.partialorder %v569_v2, 0.0  ;;  %vm608_vm9 = vcmp.gt.f32.partialorder %v576_v61, 0.0  ;;  %v577_v61 = vld [vmem:[%s6770_s6 + $0x70] sm:$0xff] }
 0x24b   : > { %v1661_v18 = vsel %vm659_vm5, %v6804_v51, -inf  ;;  %vm602_vm11 = vcmp.gt.f32.partialorder %v570_v56, 0.0 }
 0x24e   : > { %1662 = vmax.xlane.f32.xlu0 %v1661_v18  ;;  %v995_v23 = vpop.f32.mrb[8].mxu1 }
 0x24f   : > { %v6818_v42 = vadd.f32 %v995_v23, %v6809_v11  ;;  %v5583_v1 = vpop.f32.mrb[9].mxu1  ;;  %v588_v11 = vld [vmem:[%s6770_s6 + $0xc8] sm:$0xff] }
 0x250   : > { %v998_v52 = vpop.f32.mrb[10].mxu1  ;;  %v6829_v1 = vsel %vm601_vm10, 0.0, %v8672_v40  ;;  %vm620_vm10 = vcmp.gt.f32.partialorder %v588_v11, 0.0 }
 0x251   : > { %v6822_v17 = vadd.f32 %v998_v52, %v6814_v53  ;;  %v5584_v3 = vpop.f32.mrb[11].mxu1  ;;  %v1664_v18 = vsel %vm659_vm5, %v6818_v42, -inf  ;;  %8677 = vst [vmem:[#allocation57_spill] sm:$0xff] %v6829_v1  ;;  %v6832_v52 = vsel %vm602_vm11, 0.0, %v8672_v40  ;;  %vm609_vm11 = vcmp.gt.f32.partialorder %v577_v61, 0.0 }
 0x252   : > { %1665 = vmax.xlane.f32.xlu1 %v1664_v18  ;;  %8678 = vst [vmem:[#allocation58_spill] sm:$0xff] %v6832_v52  ;;  %v579_v18 = vld [vmem:[%s6770_s6 + $0x80] sm:$0xff] }
 0x253   : > { %v1667_v35 = vsel %vm659_vm5, %v6822_v17, -inf  ;;  %vm611_vm13 = vcmp.gt.f32.partialorder %v579_v18, 0.0 }
 0x254   : > { %1668 = vmax.xlane.f32.xlu0 %v1667_v35 }
 0x256   : > { %v1045_v23 = vpop.f32.mrb[12].mxu1 }
 0x257   : > { %v6836_v3 = vadd.f32 %v1045_v23, %v6829_v1  ;;  %v5589_v32 = vpop.f32.mrb[13].mxu1 }
 0x258   : > { %v1048_v2 = vpop.f32.mrb[14].mxu1  ;;  %v6849_v32 = vsel %vm603_vm12, 0.0, %v8672_v40 }
 0x259   : > { %v6841_v28 = vadd.f32 %v1048_v2, %v6832_v52  ;;  %v5590_v35 = vpop.f32.mrb[15].mxu1  ;;  %v1670_v56 = vsel %vm659_vm5, %v6836_v3, -inf  ;;  %8679 = vst [vmem:[#allocation59_spill] sm:$0xff] %v6849_v32  ;;  %v6852_v2 = vsel %vm611_vm13, 0.0, %v8672_v40  ;;  %vm610_vm13 = vcmp.gt.f32.partialorder %v578_v29, 0.0 }
 0x25a   : > { %1671 = vmax.xlane.f32.xlu1 %v1670_v56  ;;  %8680 = vst [vmem:[#allocation60_spill] sm:$0xff] %v6852_v2  ;;  %v573_v56 = vld [vmem:[%s6770_s6 + $0x50] sm:$0xff] }
 0x25b   : > { %v1673_v24 = vsel %vm659_vm5, %v6841_v28, -inf  ;;  %vm605_vm0 = vcmp.gt.f32.partialorder %v573_v56, 0.0 }
 0x25c   : > { %1674 = vmax.xlane.f32.xlu0 %v1673_v24 }
 0x25e   : > { %v1095_v23 = vpop.f32.mrb[16].mxu1  ;;  %v1295_v35 = vpop.f32.mrb[32].mxu0 }
 0x25f   : > { %v6859_v18 = vadd.f32 %v1095_v23, %v6849_v32  ;;  %v5595_v57 = vpop.f32.mrb[17].mxu1  ;;  %v5619_v47 = vpop.f32.mrb[33].mxu0  ;;  %v6867_v25 = vadd.f32 %v1295_v35, %v6852_v2  ;;  %v6881_v35 = vsel %vm605_vm0, 0.0, %v8672_v40 }
 0x260   : > { %v1098_v24 = vpop.f32.mrb[18].mxu1  ;;  %v1298_v45 = vpop.f32.mrb[34].mxu0  ;;  %v584_v47 = vld [vmem:[%s6770_s6 + $0xa8] sm:$0xff]  ;;  %8683 = vst [vmem:[#allocation63_spill] sm:$0xff] %v6881_v35 }
 0x261   : > { %v6870_v52 = vadd.f32 %v1098_v24, %v6855_v55  ;;  %v5596_v1 = vpop.f32.mrb[19].mxu1  ;;  %v5620_v53 = vpop.f32.mrb[35].mxu0  ;;  %v1676_v23 = vsel %vm659_vm5, %v6859_v18, -inf  ;;  %v6876_v57 = vadd.f32 %v1298_v45, %v6862_v36  ;;  %vm616_vm6 = vcmp.gt.f32.partialorder %v584_v47, 0.0  ;;  %v587_v55 = vld [vmem:[%s6770_s6 + $0xc0] sm:$0xff] }
 0x262   : > { %1677 = vmax.xlane.f32.xlu1 %v1676_v23  ;;  %v1700_v53 = vsel %vm659_vm5, %v6867_v25, -inf  ;;  %v6886_v1 = vsel %vm615_vm3, 0.0, %v8672_v40  ;;  %v6889_v45 = vsel %vm606_vm4, 0.0, %v8672_v40  ;;  %v6898_v36 = vsel %vm616_vm6, 0.0, %v8672_v40 }
 0x263   : > { %v1679_v32 = vsel %vm659_vm5, %v6870_v52, -inf  ;;  %8684 = vst [vmem:[#allocation64_spill] sm:$0xff] %v6886_v1  ;;  %8685 = vst [vmem:[#allocation65_spill] sm:$0xff] %v6889_v45  ;;  %v1703_v47 = vsel %vm659_vm5, %v6876_v57, -inf  ;;  %vm619_vm8 = vcmp.gt.f32.partialorder %v587_v55, 0.0 }
 0x264   : > { %1680 = vmax.xlane.f32.xlu0 %v1679_v32  ;;  %8686 = vst [vmem:[#allocation66_spill] sm:$0xff] %v6898_v36  ;;  %v6922_v26 = vsel %vm619_vm8, 0.0, %v8672_v40 }
 0x265   : > { %8688 = vst [vmem:[#allocation68_spill] sm:$0xff] %v6922_v26 }
 0x266   : > { %v1395_v56 = vpop.f32.mrb[36].mxu0  ;;  %1701 = vmax.xlane.f32.xlu1 %v1700_v53  ;;  %v1145_v24 = vpop.f32.mrb[20].mxu1 }
 0x267   : > { %v6893_v37 = vadd.f32 %v1145_v24, %v6881_v35  ;;  %v5601_v32 = vpop.f32.mrb[21].mxu1  ;;  %v5631_v23 = vpop.f32.mrb[37].mxu0  ;;  %v6903_v7 = vadd.f32 %v1395_v56, %v6886_v1  ;;  %v6917_v56 = vsel %vm607_vm7, 0.0, %v8672_v40 }
 0x268   : > { %v1398_v2 = vpop.f32.mrb[38].mxu0  ;;  %1704 = vmax.xlane.f32.xlu0 %v1703_v47  ;;  %v1148_v53 = vpop.f32.mrb[22].mxu1  ;;  %8687 = vst [vmem:[#allocation67_spill] sm:$0xff] %v6917_v56 }
 0x269   : > { %v6906_v24 = vadd.f32 %v1148_v53, %v6889_v45  ;;  %v5602_v32 = vpop.f32.mrb[23].mxu1  ;;  %v5632_v35 = vpop.f32.mrb[39].mxu0  ;;  %v1682_v23 = vsel %vm659_vm5, %v6893_v37, -inf  ;;  %v6912_v47 = vadd.f32 %v1398_v2, %v6898_v36  ;;  %v6934_v36 = vsel %vm620_vm10, 0.0, %v8672_v40  ;;  %v591_v45 = vld [vmem:[%s6770_s6 + $0xe0] sm:$0xff] }
 0x26a   : > { %1683 = vmax.xlane.f32.xlu1 %v1682_v23  ;;  %v1712_v35 = vsel %vm659_vm5, %v6903_v7, -inf  ;;  %v6925_v32 = vsel %vm608_vm9, 0.0, %v8672_v40  ;;  %8690 = vst [vmem:[#allocation70_spill] sm:$0xff] %v6934_v36  ;;  %vm623_vm12 = vcmp.gt.f32.partialorder %v591_v45, 0.0  ;;  %v581_v45 = vld [vmem:[%s6770_s6 + $0x90] sm:$0xff] }
 0x26b   : > { %v1685_v6 = vsel %vm659_vm5, %v6906_v24, -inf  ;;  %8689 = vst [vmem:[#allocation69_spill] sm:$0xff] %v6925_v32  ;;  %v1715_v11 = vsel %vm659_vm5, %v6912_v47, -inf  ;;  %v6958_v61 = vsel %vm623_vm12, 0.0, %v8672_v40  ;;  %vm613_vm15 = vcmp.gt.f32.partialorder %v581_v45, 0.0 }
 0x26c   : > { %1686 = vmax.xlane.f32.xlu0 %v1685_v6  ;;  %8692 = vst [vmem:[#allocation72_spill] sm:$0xff] %v6958_v61 }
 0x26e   : > { %v1495_v2 = vpop.f32.mrb[40].mxu0  ;;  %1713 = vmax.xlane.f32.xlu1 %v1712_v35  ;;  %v1195_v53 = vpop.f32.mrb[24].mxu1 }
 0x26f   : > { %v6929_v6 = vadd.f32 %v1195_v53, %v6917_v56  ;;  %v5607_v55 = vpop.f32.mrb[25].mxu1  ;;  %v5643_v23 = vpop.f32.mrb[41].mxu0  ;;  %v6939_v21 = vadd.f32 %v1495_v2, %v6922_v26  ;;  %v6953_v2 = vsel %vm609_vm11, 0.0, %v8672_v40 }
 0x270   : > { %v1498_v1 = vpop.f32.mrb[42].mxu0  ;;  %1716 = vmax.xlane.f32.xlu0 %v1715_v11  ;;  %v1198_v35 = vpop.f32.mrb[26].mxu1  ;;  %8691 = vst [vmem:[#allocation71_spill] sm:$0xff] %v6953_v2 }
 0x271   : > { %v6942_v53 = vadd.f32 %v1198_v35, %v6925_v32  ;;  %v5608_v55 = vpop.f32.mrb[27].mxu1  ;;  %v5644_v56 = vpop.f32.mrb[43].mxu0  ;;  %v1688_v23 = vsel %vm659_vm5, %v6929_v6, -inf  ;;  %v6948_v11 = vadd.f32 %v1498_v1, %v6934_v36 }
 0x272   : > { %1689 = vmax.xlane.f32.xlu1 %v1688_v23  ;;  %v1724_v56 = vsel %vm659_vm5, %v6939_v21, -inf  ;;  %v6961_v55 = vsel %vm610_vm13, 0.0, %v8672_v40 }
 0x273   : > { %v1691_v9 = vsel %vm659_vm5, %v6942_v53, -inf  ;;  %8693 = vst [vmem:[#allocation73_spill] sm:$0xff] %v6961_v55  ;;  %v1727_v36 = vsel %vm659_vm5, %v6948_v11, -inf }
 0x274   : > { %1692 = vmax.xlane.f32.xlu0 %v1691_v9 }
 0x276   : > { %v1595_v35 = vpop.f32.mrb[44].mxu0  ;;  %1725 = vmax.xlane.f32.xlu1 %v1724_v56  ;;  %v1245_v1 = vpop.f32.mrb[28].mxu1  ;;  %v582_v56 = vld [vmem:[%s6770_s6 + $0x98] sm:$0xff] }
 0x277   : > { %v6965_v9 = vadd.f32 %v1245_v1, %v6953_v2  ;;  %v5613_v29 = vpop.f32.mrb[29].mxu1  ;;  %v5655_v23 = vpop.f32.mrb[45].mxu0  ;;  %v6974_v34 = vadd.f32 %v1595_v35, %v6958_v61  ;;  %vm614_vm0 = vcmp.gt.f32.partialorder %v582_v56, 0.0  ;;  %v6987_v35 = vsel %vm613_vm15, 0.0, %v8672_v40 }
 0x278   : > { %v1598_v26 = vpop.f32.mrb[46].mxu0  ;;  %1728 = vmax.xlane.f32.xlu0 %v1727_v36  ;;  %v1248_v32 = vpop.f32.mrb[30].mxu1  ;;  %8695 = vst [vmem:[#allocation75_spill] sm:$0xff] %v6987_v35  ;;  %v6992_v45 = vsel %vm614_vm0, 0.0, %v8672_v40 }
 0x279   : > { %v6977_v13 = vadd.f32 %v1248_v32, %v6961_v55  ;;  %v5614_v1 = vpop.f32.mrb[31].mxu1  ;;  %v5656_v29 = vpop.f32.mrb[47].mxu0  ;;  %v1694_v23 = vsel %vm659_vm5, %v6965_v9, -inf  ;;  %v6982_v2 = vadd.f32 %v1598_v26, %v6970_v41  ;;  %v1736_v32 = vsel %vm659_vm5, %v6974_v34, -inf  ;;  %8696 = vst [vmem:[#allocation76_spill] sm:$0xff] %v6992_v45  ;;  %v586_v41 = vld [vmem:[%s6770_s6 + $0xb8] sm:$0xff] }
 0x27a   : > { %1695 = vmax.xlane.f32.xlu1 %v1694_v23  ;;  %v585_v29 = vld [vmem:[%s6770_s6 + $0xb0] sm:$0xff]  ;;  %vm618_vm4 = vcmp.gt.f32.partialorder %v586_v41, 0.0 }
 0x27b   : > { %v1697_v36 = vsel %vm659_vm5, %v6977_v13, -inf  ;;  %v1739_v56 = vsel %vm659_vm5, %v6982_v2, -inf  ;;  %vm617_vm3 = vcmp.gt.f32.partialorder %v585_v29, 0.0 }
 0x27c   : > { %1698 = vmax.xlane.f32.xlu0 %v1697_v36 }
 0x27e   : > { %1737 = vmax.xlane.f32.xlu1 %v1736_v32  ;;  %v1345_v1 = vpop.f32.mrb[32].mxu1 }
 0x27f   : > { %v6996_v26 = vadd.f32 %v1345_v1, %v6987_v35  ;;  %v5625_v23 = vpop.f32.mrb[33].mxu1  ;;  %v7012_v35 = vsel %vm618_vm4, 0.0, %v8672_v40 }
 0x280   : > { %1740 = vmax.xlane.f32.xlu0 %v1739_v56  ;;  %v1348_v36 = vpop.f32.mrb[34].mxu1  ;;  %v7009_v23 = vsel %vm617_vm3, 0.0, %v8672_v40  ;;  %8698 = vst [vmem:[#allocation78_spill] sm:$0xff] %v7012_v35 }
 0x281   : > { %v7002_v61 = vadd.f32 %v1348_v36, %v6992_v45  ;;  %v5626_v32 = vpop.f32.mrb[35].mxu1  ;;  %v1706_v55 = vsel %vm659_vm5, %v6996_v26, -inf  ;;  %8697 = vst [vmem:[#allocation77_spill] sm:$0xff] %v7009_v23  ;;  %v589_v36 = vld [vmem:[%s6770_s6 + $0xd0] sm:$0xff] }
 0x282   : > { %1707 = vmax.xlane.f32.xlu1 %v1706_v55  ;;  %v590_v55 = vld [vmem:[%s6770_s6 + $0xd8] sm:$0xff]  ;;  %vm621_vm6 = vcmp.gt.f32.partialorder %v589_v36, 0.0 }
 0x283   : > { %v1709_v1 = vsel %vm659_vm5, %v7002_v61, -inf  ;;  %vm622_vm7 = vcmp.gt.f32.partialorder %v590_v55, 0.0  ;;  %v594_v36 = vld [vmem:[%s6770_s6 + $0xf8] sm:$0xff] }
 0x284   : > { %1710 = vmax.xlane.f32.xlu0 %v1709_v1  ;;  %vm626_vm9 = vcmp.gt.f32.partialorder %v594_v36, 0.0 }
 0x286   : > { %v1445_v56 = vpop.f32.mrb[36].mxu1 }
 0x287   : > { %v7016_v32 = vadd.f32 %v1445_v56, %v7009_v23  ;;  %v5637_v45 = vpop.f32.mrb[37].mxu1  ;;  %v7027_v56 = vsel %vm621_vm6, 0.0, %v8672_v40  ;;  %v7030_v23 = vsel %vm622_vm7, 0.0, %v8672_v40 }
 0x288   : > { %v1448_v29 = vpop.f32.mrb[38].mxu1  ;;  %8699 = vst [vmem:[#allocation79_spill] sm:$0xff] %v7027_v56  ;;  %8700 = vst [vmem:[#allocation80_spill] sm:$0xff] %v7030_v23 }
 0x289   : > { %v7020_v63 = vadd.f32 %v1448_v29, %v7012_v35  ;;  %v5638_v41 = vpop.f32.mrb[39].mxu1  ;;  %v1718_v1 = vsel %vm659_vm5, %v7016_v32, -inf  ;;  %v593_v29 = vld [vmem:[%s6770_s6 + $0xf0] sm:$0xff] }
 0x28a   : > { %1719 = vmax.xlane.f32.xlu1 %v1718_v1  ;;  %vm625_vm8 = vcmp.gt.f32.partialorder %v593_v29, 0.0 }
 0x28b   : > { %v1721_v33 = vsel %vm659_vm5, %v7020_v63, -inf }
 0x28c   : > { %1722 = vmax.xlane.f32.xlu0 %v1721_v33 }
 0x28e   : > { %v1545_v45 = vpop.f32.mrb[40].mxu1 }
 0x28f   : > { %v7034_v41 = vadd.f32 %v1545_v45, %v7027_v56  ;;  %v5649_v35 = vpop.f32.mrb[41].mxu1  ;;  %v7045_v45 = vsel %vm625_vm8, 0.0, %v8672_v40  ;;  %v7048_v56 = vsel %vm626_vm9, 0.0, %v8672_v40  ;;  %v7062_v40 = vpop.permute.xlu1 %2208 }
 0x290   : > { %v1548_v15 = vpop.f32.mrb[42].mxu1  ;;  %8701 = vst [vmem:[#allocation81_spill] sm:$0xff] %v7045_v45  ;;  %8702 = vst [vmem:[#allocation82_spill] sm:$0xff] %v7048_v56 }
 0x291   : > { %v7038_v1 = vadd.f32 %v1548_v15, %v7030_v23  ;;  %v5650_v44 = vpop.f32.mrb[43].mxu1  ;;  %v1730_v33 = vsel %vm659_vm5, %v7034_v41, -inf }
 0x292   : > { %1731 = vmax.xlane.f32.xlu1 %v1730_v33 }
 0x293   : > { %v1733_v55 = vsel %vm659_vm5, %v7038_v1, -inf }
 0x294   : > { %1734 = vmax.xlane.f32.xlu0 %v1733_v55 }
 0x296   : > { %v1645_v35 = vpop.f32.mrb[44].mxu1 }
 0x297   : > { %v7051_v15 = vadd.f32 %v1645_v35, %v7045_v45  ;;  %v5661_v44 = vpop.f32.mrb[45].mxu1  ;;  %v7064_v35 = vpop.permute.xlu0 %2161 }
 0x298   : > { %v1648_v23 = vpop.f32.mrb[46].mxu1  ;;  %v7066_v44 = vpop.permute.xlu1 %2302 }
 0x299   : > { %v7054_v29 = vadd.f32 %v1648_v23, %v7048_v56  ;;  %v5662_v33 = vpop.f32.mrb[47].mxu1  ;;  %v1742_v36 = vsel %vm659_vm5, %v7051_v15, -inf  ;;  %8703 = vst [vmem:[#allocation83_spill] sm:$0xff] %v7066_v44 }
 0x29a   : > { %1743 = vmax.xlane.f32.xlu1 %v1742_v36 }
 0x29b   : > { %v1745_v55 = vsel %vm659_vm5, %v7054_v29, -inf  ;;  %v7068_v45 = vpop.permute.xlu0 %2255 }
 0x29c   : > { %1746 = vmax.xlane.f32.xlu0 %v1745_v55  ;;  %8704 = vst [vmem:[#allocation84_spill] sm:$0xff] %v7068_v45  ;;  %v7070_v23 = vpop.permute.xlu1 %2396 }
 0x29d   : > { %8705 = vst [vmem:[#allocation85_spill] sm:$0xff] %v7070_v23 }
 0x29f   : > { %v7072_v33 = vpop.permute.xlu0 %2349 }
 0x2a0   : > { %8706 = vst [vmem:[#allocation86_spill] sm:$0xff] %v7072_v33  ;;  %v7074_v56 = vpop.permute.xlu1 %2490 }
 0x2a1   : > { %8707 = vst [vmem:[#allocation87_spill] sm:$0xff] %v7074_v56 }
 0x2a3   : > { %v7076_v36 = vpop.permute.xlu0 %2443 }
 0x2a4   : > { %8708 = vst [vmem:[#allocation88_spill] sm:$0xff] %v7076_v36  ;;  %v7078_v14 = vpop.permute.xlu1 %2537 }
 0x2a5   : > { %8709 = vst [vmem:[#allocation89_spill] sm:$0xff] %v7078_v14 }
 0x2a7   : > { %v7080_v55 = vpop.permute.xlu0 %2584 }
 0x2a8   : > { %8710 = vst [vmem:[#allocation90_spill] sm:$0xff] %v7080_v55  ;;  %v7082_v5 = vpop.permute.xlu1 %2631 }
 0x2a9   : > { %8711 = vst [vmem:[#allocation91_spill] sm:$0xff] %v7082_v5 }
 0x2cf   : > { %v1654_v30 = vpop.xlane.xlu0 %1653 }
 0x2d0   : > { %v1748_v20 = vsub.f32 %v6782_v43, %v1654_v30 }
 0x2d1   : > { %v1657_v44 = vpop.xlane.xlu1 %1656 }
 0x2d2   : > { %v1780_v4 = vmul.f32 1.442695, %v1748_v20  ;;  %v1749_v45 = vsub.f32 %v6786_v50, %v1657_v44 }
 0x2d4   : > { %5986 = vpow2.f32 %v1780_v4  ;;  %v1782_v23 = vmul.f32 1.442695, %v1749_v45 }
 0x2d6   : > { %5988 = vpow2.f32 %v1782_v23 }
 0x2d7   : > { %v1660_v33 = vpop.xlane.xlu0 %1659 }
 0x2d8   : > { %v1750_v56 = vsub.f32 %v6800_v46, %v1660_v33 }
 0x2da   : > { %v1784_v36 = vmul.f32 1.442695, %v1750_v56 }
 0x2db   : > { %v1663_v59 = vpop.xlane.xlu0 %1662 }
 0x2dc   : > { %5990 = vpow2.f32 %v1784_v36  ;;  %v1751_v55 = vsub.f32 %v6804_v51, %v1663_v59 }
 0x2de   : > { %v7088_v14 = vpop.eup %5986  ;;  %v1786_v5 = vmul.f32 1.442695, %v1751_v55 }
 0x2df   : > { %v1666_v19 = vpop.xlane.xlu1 %1665  ;;  %v1844_v20 = vsel %vm659_vm5, %v7088_v14, 0.0 }
 0x2e0   : > { %v7092_v30 = vpop.eup %5988  ;;  %5992 = vpow2.f32 %v1786_v5  ;;  %v1752_v4 = vsub.f32 %v6818_v42, %v1666_v19  ;;  %1845 = vadd.xlane.f32.xlu1 %v1844_v20 }
 0x2e1   : > { %v1669_v43 = vpop.xlane.xlu0 %1668  ;;  %v1847_v50 = vsel %vm659_vm5, %v7092_v30, 0.0 }
 0x2e2   : > { %v1788_v46 = vmul.f32 1.442695, %v1752_v4  ;;  %v1753_v51 = vsub.f32 %v6822_v17, %v1669_v43  ;;  %1848 = vadd.xlane.f32.xlu0 %v1847_v50 }
 0x2e4   : > { %5994 = vpow2.f32 %v1788_v46  ;;  %v1790_v59 = vmul.f32 1.442695, %v1753_v51 }
 0x2e6   : > { %v7098_v56 = vpop.eup %5990  ;;  %5996 = vpow2.f32 %v1790_v59 }
 0x2e7   : > { %v1672_v45 = vpop.xlane.xlu1 %1671  ;;  %v1850_v5 = vsel %vm659_vm5, %v7098_v56, 0.0 }
 0x2e8   : > { %v1754_v19 = vsub.f32 %v6836_v3, %v1672_v45  ;;  %1851 = vadd.xlane.f32.xlu1 %v1850_v5 }
 0x2e9   : > { %v1675_v42 = vpop.xlane.xlu0 %1674 }
 0x2ea   : > { %v7103_v44 = vpop.eup %5992  ;;  %v1792_v23 = vmul.f32 1.442695, %v1754_v19  ;;  %v1755_v33 = vsub.f32 %v6841_v28, %v1675_v42 }
 0x2eb   : > { %v1853_v17 = vsel %vm659_vm5, %v7103_v44, 0.0 }
 0x2ec   : > { %5998 = vpow2.f32 %v1792_v23  ;;  %v1794_v36 = vmul.f32 1.442695, %v1755_v33  ;;  %1854 = vadd.xlane.f32.xlu0 %v1853_v17 }
 0x2ee   : > { %v7108_v55 = vpop.eup %5994  ;;  %6000 = vpow2.f32 %v1794_v36 }
 0x2ef   : > { %v1678_v20 = vpop.xlane.xlu1 %1677  ;;  %v1856_v3 = vsel %vm659_vm5, %v7108_v55, 0.0 }
 0x2f0   : > { %v7112_v4 = vpop.eup %5996  ;;  %v1756_v43 = vsub.f32 %v6859_v18, %v1678_v20  ;;  %1857 = vadd.xlane.f32.xlu1 %v1856_v3 }
 0x2f1   : > { %v1681_v50 = vpop.xlane.xlu0 %1680  ;;  %v1859_v28 = vsel %vm659_vm5, %v7112_v4, 0.0 }
 0x2f2   : > { %v1796_v46 = vmul.f32 1.442695, %v1756_v43  ;;  %v1757_v51 = vsub.f32 %v6870_v52, %v1681_v50  ;;  %1860 = vadd.xlane.f32.xlu0 %v1859_v28 }
 0x2f3   : > { %v1702_v59 = vpop.xlane.xlu1 %1701 }
 0x2f4   : > { %6002 = vpow2.f32 %v1796_v46  ;;  %v1798_v45 = vmul.f32 1.442695, %v1757_v51  ;;  %v1764_v5 = vsub.f32 %v6867_v25, %v1702_v59 }
 0x2f5   : > { %v1705_v19 = vpop.xlane.xlu0 %1704 }
 0x2f6   : > { %v7119_v42 = vpop.eup %5998  ;;  %6004 = vpow2.f32 %v1798_v45  ;;  %v1812_v23 = vmul.f32 1.442695, %v1764_v5  ;;  %v1765_v18 = vsub.f32 %v6876_v57, %v1705_v19 }
 0x2f7   : > { %v1684_v33 = vpop.xlane.xlu1 %1683  ;;  %v1862_v17 = vsel %vm659_vm5, %v7119_v42, 0.0 }
 0x2f8   : > { %v7124_v36 = vpop.eup %6000  ;;  %6006 = vpow2.f32 %v1812_v23  ;;  %v1814_v52 = vmul.f32 1.442695, %v1765_v18  ;;  %v1758_v20 = vsub.f32 %v6893_v37, %v1684_v33  ;;  %1863 = vadd.xlane.f32.xlu1 %v1862_v17 }
 0x2f9   : > { %v1687_v3 = vpop.xlane.xlu0 %1686  ;;  %v1865_v25 = vsel %vm659_vm5, %v7124_v36, 0.0 }
 0x2fa   : > { %6008 = vpow2.f32 %v1814_v52  ;;  %v1800_v43 = vmul.f32 1.442695, %v1758_v20  ;;  %v1759_v50 = vsub.f32 %v6906_v24, %v1687_v3  ;;  %1866 = vadd.xlane.f32.xlu0 %v1865_v25 }
 0x2fb   : > { %v1714_v57 = vpop.xlane.xlu1 %1713 }
 0x2fc   : > { %6010 = vpow2.f32 %v1800_v43  ;;  %v1802_v28 = vmul.f32 1.442695, %v1759_v50  ;;  %v1768_v46 = vsub.f32 %v6903_v7, %v1714_v57 }
 0x2fd   : > { %v1717_v51 = vpop.xlane.xlu0 %1716 }
 0x2fe   : > { %v7131_v59 = vpop.eup %6002  ;;  %6012 = vpow2.f32 %v1802_v28  ;;  %v1820_v37 = vmul.f32 1.442695, %v1768_v46  ;;  %v1769_v45 = vsub.f32 %v6912_v47, %v1717_v51 }
 0x2ff   : > { %v1690_v5 = vpop.xlane.xlu1 %1689  ;;  %v1868_v19 = vsel %vm659_vm5, %v7131_v59, 0.0 }
 0x300   : > { %v7136_v23 = vpop.eup %6004  ;;  %6014 = vpow2.f32 %v1820_v37  ;;  %v1822_v24 = vmul.f32 1.442695, %v1769_v45  ;;  %v1760_v18 = vsub.f32 %v6929_v6, %v1690_v5  ;;  %1869 = vadd.xlane.f32.xlu1 %v1868_v19 }
 0x301   : > { %v1693_v33 = vpop.xlane.xlu0 %1692  ;;  %v1871_v7 = vsel %vm659_vm5, %v7136_v23, 0.0 }
 0x302   : > { %v7141_v17 = vpop.eup %6006  ;;  %6016 = vpow2.f32 %v1822_v24  ;;  %v1804_v52 = vmul.f32 1.442695, %v1760_v18  ;;  %v1761_v47 = vsub.f32 %v6942_v53, %v1693_v33  ;;  %1872 = vadd.xlane.f32.xlu0 %v1871_v7 }
 0x303   : > { %v1726_v20 = vpop.xlane.xlu1 %1725  ;;  %v1892_v3 = vsel %vm659_vm5, %v7141_v17, 0.0 }
 0x304   : > { %v7146_v25 = vpop.eup %6008  ;;  %6018 = vpow2.f32 %v1804_v52  ;;  %v1806_v6 = vmul.f32 1.442695, %v1761_v47  ;;  %v1772_v43 = vsub.f32 %v6939_v21, %v1726_v20  ;;  %1893 = vadd.xlane.f32.xlu1 %v1892_v3 }
 0x305   : > { %v1729_v50 = vpop.xlane.xlu0 %1728  ;;  %v1895_v57 = vsel %vm659_vm5, %v7146_v25, 0.0 }
 0x306   : > { %v7151_v28 = vpop.eup %6010  ;;  %6020 = vpow2.f32 %v1806_v6  ;;  %v1828_v53 = vmul.f32 1.442695, %v1772_v43  ;;  %v1773_v46 = vsub.f32 %v6948_v11, %v1729_v50  ;;  %1896 = vadd.xlane.f32.xlu0 %v1895_v57 }
 0x307   : > { %v1696_v51 = vpop.xlane.xlu1 %1695  ;;  %v1874_v37 = vsel %vm659_vm5, %v7151_v28, 0.0 }
 0x308   : > { %v7156_v45 = vpop.eup %6012  ;;  %6022 = vpow2.f32 %v1828_v53  ;;  %v1830_v21 = vmul.f32 1.442695, %v1773_v46  ;;  %v1762_v5 = vsub.f32 %v6965_v9, %v1696_v51  ;;  %1875 = vadd.xlane.f32.xlu1 %v1874_v37 }
 0x309   : > { %v1699_v19 = vpop.xlane.xlu0 %1698  ;;  %v1877_v24 = vsel %vm659_vm5, %v7156_v45, 0.0 }
 0x30a   : > { %v7161_v18 = vpop.eup %6014  ;;  %6024 = vpow2.f32 %v1830_v21  ;;  %v1808_v11 = vmul.f32 1.442695, %v1762_v5  ;;  %v1763_v33 = vsub.f32 %v6977_v13, %v1699_v19  ;;  %1878 = vadd.xlane.f32.xlu0 %v1877_v24 }
 0x30b   : > { %v1738_v7 = vpop.xlane.xlu1 %1737  ;;  %v1904_v52 = vsel %vm659_vm5, %v7161_v18, 0.0 }
 0x30c   : > { %v7166_v47 = vpop.eup %6016  ;;  %6026 = vpow2.f32 %v1808_v11  ;;  %v1810_v9 = vmul.f32 1.442695, %v1763_v33  ;;  %v1776_v20 = vsub.f32 %v6974_v34, %v1738_v7  ;;  %1905 = vadd.xlane.f32.xlu1 %v1904_v52 }
 0x30d   : > { %v1741_v3 = vpop.xlane.xlu0 %1740  ;;  %v1907_v6 = vsel %vm659_vm5, %v7166_v47, 0.0 }
 0x30e   : > { %v7171_v43 = vpop.eup %6018  ;;  %6028 = vpow2.f32 %v1810_v9  ;;  %v1836_v13 = vmul.f32 1.442695, %v1776_v20  ;;  %v1777_v50 = vsub.f32 %v6982_v2, %v1741_v3  ;;  %1908 = vadd.xlane.f32.xlu0 %v1907_v6 }
 0x30f   : > { %v1708_v57 = vpop.xlane.xlu1 %1707  ;;  %v1880_v53 = vsel %vm659_vm5, %v7171_v43, 0.0 }
 0x310   : > { %v7176_v46 = vpop.eup %6020  ;;  %6030 = vpow2.f32 %v1836_v13  ;;  %v1838_v34 = vmul.f32 1.442695, %v1777_v50  ;;  %v1766_v51 = vsub.f32 %v6996_v26, %v1708_v57  ;;  %1881 = vadd.xlane.f32.xlu1 %v1880_v53 }
 0x311   : > { %v1711_v37 = vpop.xlane.xlu0 %1710  ;;  %v1883_v21 = vsel %vm659_vm5, %v7176_v46, 0.0 }
 0x312   : > { %v7181_v5 = vpop.eup %6022  ;;  %6032 = vpow2.f32 %v1838_v34  ;;  %v1816_v2 = vmul.f32 1.442695, %v1766_v51  ;;  %v1767_v19 = vsub.f32 %v7002_v61, %v1711_v37  ;;  %1884 = vadd.xlane.f32.xlu0 %v1883_v21 }
 0x313   : > { %v1916_v24 = vsel %vm659_vm5, %v7181_v5, 0.0 }
 0x314   : > { %v7186_v11 = vpop.eup %6024  ;;  %6034 = vpow2.f32 %v1816_v2  ;;  %v1818_v33 = vmul.f32 1.442695, %v1767_v19  ;;  %1917 = vadd.xlane.f32.xlu1 %v1916_v24 }
 0x315   : > { %v1919_v26 = vsel %vm659_vm5, %v7186_v11, 0.0 }
 0x316   : > { %v7190_v7 = vpop.eup %6026  ;;  %6036 = vpow2.f32 %v1818_v33  ;;  %1920 = vadd.xlane.f32.xlu0 %v1919_v26 }
 0x317   : > { %v1720_v52 = vpop.xlane.xlu1 %1719  ;;  %v1886_v61 = vsel %vm659_vm5, %v7190_v7, 0.0 }
 0x318   : > { %v7194_v9 = vpop.eup %6028  ;;  %v1770_v20 = vsub.f32 %v7016_v32, %v1720_v52  ;;  %1887 = vadd.xlane.f32.xlu1 %v1886_v61 }
 0x319   : > { %v1723_v3 = vpop.xlane.xlu0 %1722  ;;  %v1889_v6 = vsel %vm659_vm5, %v7194_v9, 0.0 }
 0x31a   : > { %v7199_v13 = vpop.eup %6030  ;;  %v1824_v50 = vmul.f32 1.442695, %v1770_v20  ;;  %v1771_v57 = vsub.f32 %v7020_v63, %v1723_v3  ;;  %1890 = vadd.xlane.f32.xlu0 %v1889_v6 }
 0x31b   : > { %v1928_v53 = vsel %vm659_vm5, %v7199_v13, 0.0 }
 0x31c   : > { %v7204_v34 = vpop.eup %6032  ;;  %6038 = vpow2.f32 %v1824_v50  ;;  %v1826_v51 = vmul.f32 1.442695, %v1771_v57  ;;  %1929 = vadd.xlane.f32.xlu1 %v1928_v53 }
 0x31d   : > { %v1931_v32 = vsel %vm659_vm5, %v7204_v34, 0.0 }
 0x31e   : > { %v7208_v37 = vpop.eup %6034  ;;  %6040 = vpow2.f32 %v1826_v51  ;;  %1932 = vadd.xlane.f32.xlu0 %v1931_v32 }
 0x31f   : > { %v1732_v21 = vpop.xlane.xlu1 %1731  ;;  %v1898_v63 = vsel %vm659_vm5, %v7208_v37, 0.0 }
 0x320   : > { %v7212_v2 = vpop.eup %6036  ;;  %v1774_v19 = vsub.f32 %v7034_v41, %v1732_v21  ;;  %1899 = vadd.xlane.f32.xlu1 %v1898_v63 }
 0x321   : > { %v1735_v24 = vpop.xlane.xlu0 %1734  ;;  %v1901_v33 = vsel %vm659_vm5, %v7212_v2, 0.0 }
 0x322   : > { %v1832_v26 = vmul.f32 1.442695, %v1774_v19  ;;  %v1775_v52 = vsub.f32 %v7038_v1, %v1735_v24  ;;  %1902 = vadd.xlane.f32.xlu0 %v1901_v33 }
 0x324   : > { %6042 = vpow2.f32 %v1832_v26  ;;  %v1834_v61 = vmul.f32 1.442695, %v1775_v52 }
 0x326   : > { %v7218_v20 = vpop.eup %6038  ;;  %6044 = vpow2.f32 %v1834_v61 }
 0x327   : > { %v1910_v3 = vsel %vm659_vm5, %v7218_v20, 0.0  ;;  %v1744_v51 = vpop.xlane.xlu1 %1743 }
 0x328   : > { %v7222_v6 = vpop.eup %6040  ;;  %1911 = vadd.xlane.f32.xlu1 %v1910_v3  ;;  %v1778_v21 = vsub.f32 %v7051_v15, %v1744_v51 }
 0x329   : > { %v1913_v41 = vsel %vm659_vm5, %v7222_v6, 0.0  ;;  %v1747_v32 = vpop.xlane.xlu0 %1746 }
 0x32a   : > { %1914 = vadd.xlane.f32.xlu0 %v1913_v41  ;;  %v1779_v63 = vsub.f32 %v7054_v29, %v1747_v32  ;;  %v1840_v19 = vmul.f32 1.442695, %v1778_v21 }
 0x32c   : > { %v1842_v24 = vmul.f32 1.442695, %v1779_v63  ;;  %6046 = vpow2.f32 %v1840_v19 }
 0x32e   : > { %v7226_v50 = vpop.eup %6042  ;;  %6048 = vpow2.f32 %v1842_v24 }
 0x32f   : > { %v1922_v1 = vsel %vm659_vm5, %v7226_v50, 0.0 }
 0x330   : > { %v7230_v57 = vpop.eup %6044  ;;  %1923 = vadd.xlane.f32.xlu1 %v1922_v1 }
 0x331   : > { %v1925_v53 = vsel %vm659_vm5, %v7230_v57, 0.0 }
 0x332   : > { %1926 = vadd.xlane.f32.xlu0 %v1925_v53 }
 0x336   : > { %v7240_v33 = vpop.eup %6046 }
 0x337   : > { %v1934_v52 = vsel %vm659_vm5, %v7240_v33, 0.0 }
 0x338   : > { %v7242_v26 = vpop.eup %6048 }
 0x339   : > { %v1937_v61 = vsel %vm659_vm5, %v7242_v26, 0.0 }
 0x341   : > { %2725 = vrot.lane.b32.xlu1 %v6560_v60, %s6285_s27 }
 0x348   : > { %2678 = vrot.lane.b32.xlu0 %v6564_v62, %s6285_s27 }
 0x365   : > { %1935 = vadd.xlane.f32.xlu1 %v1934_v52 }
 0x367   : > { %1938 = vadd.xlane.f32.xlu0 %v1937_v61 }
 0x36d   : > { %v1846_v3 = vpop.xlane.xlu1 %1845 }
 0x36e   : > { %6050 = vrcp.f32 %v1846_v3 }
 0x36f   : > { %v1849_v15 = vpop.xlane.xlu0 %1848 }
 0x370   : > { %6052 = vrcp.f32 %v1849_v15 }
 0x375   : > { %v1852_v29 = vpop.xlane.xlu1 %1851 }
 0x376   : > { %2827 = vrot.lane.b32.xlu1 %v6398_v31, %s6287_s7  ;;  %6054 = vrcp.f32 %v1852_v29  ;;  %v8713_v29 = vld [vmem:[#allocation45_spill] sm:$0xff] }
 0x378   : > { %v6051_v41 = vpop.eup %6050 }
 0x379   : > { %v1855_v1 = vpop.xlane.xlu0 %1854  ;;  %v1972_v51 = vmul.f32 %v6051_v41, %v7088_v14 }
 0x37a   : > { %v6053_v53 = vpop.eup %6052  ;;  %6056 = vrcp.f32 %v1855_v1  ;;  %2825 = vrot.lane.b32.xlu1 %v6612_v22, %s6288_s8  ;;  %v8712_v22 = vmov 0.0  }
 0x37b   : > { %v1973_v32 = vmul.f32 %v6053_v53, %v7092_v30 }
 0x37d   : > { %v1858_v21 = vpop.xlane.xlu1 %1857  ;;  %2775 = vrot.lane.b32.xlu0 %v6389_v27, %s6287_s7  ;;  %v2004_v63 = vpack.c.bf16 %v1973_v32, %v1972_v51  ;;  %v8714_v51 = vld [vmem:[#allocation18_spill] sm:$0xff] }
 0x37e   : > { %6058 = vrcp.f32 %v1858_v21  ;;  %2931 = vrot.lane.b32.xlu1 %v6420_v39, %s6287_s7  ;;  %v8715_v21 = vld [vmem:[#allocation23_spill] sm:$0xff] }
 0x37f   : > { %5666 = vmatmul.mubr.msk.bf16.vlgmr.msra.gmra.mrb[48].mxu0 %vm659_vm5, %v2004_v63  ;;  %v1861_v19 = vpop.xlane.xlu0 %1860 }
 0x380   : > { %5676 = vmatpush3.bf16.msra.mxu0 %v7060_v12  ;;  %6060 = vrcp.f32 %v1861_v19  ;;  %5677 = vmatprep.mubr.msk.bf16.mxu0 %vm6283_vm2, %v8712_v22  ;;  %v6055_v14 = vpop.eup %6054  ;;  %v8716_v19 = vld [vmem:[#allocation84_spill] sm:$0xff] }
 0x381   : > { %2773 = vrot.lane.b32.xlu0 %v6602_v10, %s6288_s8  ;;  %5687 = vmatprep.subr.bf16.mxu0 %v8712_v22  ;;  %v1974_v24 = vmul.f32 %v6055_v14, %v7098_v56 }
 0x382   : > { %2929 = vrot.lane.b32.xlu1 %v6632_v16, %s6288_s8 }
 0x384   : > { %v6057_v30 = vpop.eup %6056 }
 0x385   : > { %v1975_v52 = vmul.f32 %v6057_v30, %v7103_v44  ;;  %v1864_v61 = vpop.xlane.xlu1 %1863  ;;  %2879 = vrot.lane.b32.xlu0 %v6416_v38, %s6287_s7  ;;  %v8718_v30 = vld [vmem:[#allocation47_spill] sm:$0xff] }
 0x386   : > { %6062 = vrcp.f32 %v1864_v61  ;;  %3035 = vrot.lane.b32.xlu1 %v6440_v48, %s6287_s7 }
 0x387   : > { %v1867_v10 = vpop.xlane.xlu0 %1866  ;;  %v2005_v12 = vpack.c.bf16 %v1975_v52, %v1974_v24 }
 0x388   : > { %v6059_v3 = vpop.eup %6058  ;;  %6064 = vrcp.f32 %v1867_v10 }
 0x389   : > { %2877 = vrot.lane.b32.xlu0 %v6622_v0, %s6288_s8  ;;  %5672 = vmatmul.mubr.msk.bf16.vlgmr.msra.gmra.mrb[48].mxu1 %vm659_vm5, %v2005_v12  ;;  %v1976_v56 = vmul.f32 %v6059_v3, %v7108_v55  ;;  %v8719_v12 = vld [vmem:[#allocation24_spill] sm:$0xff] }
 0x38a   : > { %v6061_v16 = vpop.eup %6060  ;;  %5682 = vmatpush3.bf16.msra.mxu1 %v7064_v35  ;;  %3033 = vrot.lane.b32.xlu1 %v6666_v8, %s6288_s8 }
 0x38b   : > { %v1977_v44 = vmul.f32 %v6061_v16, %v7112_v4  ;;  %5683 = vmatprep.mubr.msk.bf16.mxu1 %vm6283_vm2, %v8712_v22  ;;  %5693 = vmatprep.subr.bf16.mxu1 %v8712_v22  ;;  %v8720_v16 = vld [vmem:[#allocation29_spill] sm:$0xff] }
 0x38d   : > { %v1870_v15 = vpop.xlane.xlu1 %1869  ;;  %2983 = vrot.lane.b32.xlu0 %v6444_v49, %s6287_s7  ;;  %v2006_v0 = vpack.c.bf16 %v1977_v44, %v1976_v56 }
 0x38e   : > { %6066 = vrcp.f32 %v1870_v15  ;;  %3139 = vrot.lane.b32.xlu1 %v6464_v58, %s6287_s7  ;;  %v8721_v15 = vld [vmem:[#allocation83_spill] sm:$0xff] }
 0x38f   : > { %5678 = vmatmul.mubr.msk.bf16.vlgmr.msra.gmra.mrb[52].mxu0 %vm659_vm5, %v2006_v0  ;;  %v1873_v8 = vpop.xlane.xlu0 %1872 }
 0x390   : > { %v6063_v35 = vpop.eup %6062  ;;  %5688 = vmatpush3.bf16.msra.mxu0 %v7062_v40  ;;  %6068 = vrcp.f32 %v1873_v8  ;;  %5689 = vmatprep.mubr.msk.bf16.mxu0 %vm6283_vm2, %v8712_v22  ;;  %v8723_v8 = vld [vmem:[#allocation48_spill] sm:$0xff] }
 0x391   : > { %v1894_v55 = vpop.xlane.xlu1 %1893  ;;  %2981 = vrot.lane.b32.xlu0 %v6646_v54, %s6288_s8  ;;  %5699 = vmatprep.subr.bf16.mxu0 %v8712_v22  ;;  %v1978_v41 = vmul.f32 %v6063_v35, %v7119_v42 }
 0x392   : > { %v6065_v4 = vpop.eup %6064  ;;  %3137 = vrot.lane.b32.xlu1 %v8713_v29, %s6288_s8 }
 0x393   : > { %v1979_v1 = vmul.f32 %v6065_v4, %v7124_v36  ;;  %v1897_v53 = vpop.xlane.xlu0 %1896  ;;  %v8717_v36 = vld [vmem:[#allocation43_spill] sm:$0xff] }
 0x395   : > { %v1876_v40 = vpop.xlane.xlu1 %1875  ;;  %3087 = vrot.lane.b32.xlu0 %v8714_v51, %s6287_s7  ;;  %v2007_v32 = vpack.c.bf16 %v1979_v1, %v1978_v41  ;;  %v8724_v1 = vld [vmem:[#allocation30_spill] sm:$0xff] }
 0x396   : > { %6070 = vrcp.f32 %v1876_v40  ;;  %3243 = vrot.lane.b32.xlu1 %v8715_v21, %s6287_s7 }
 0x397   : > { %5684 = vmatmul.mubr.msk.bf16.vlgmr.msra.gmra.mrb[52].mxu1 %vm659_vm5, %v2007_v32  ;;  %v1879_v54 = vpop.xlane.xlu0 %1878  ;;  %v8725_v32 = vld [vmem:[#allocation35_spill] sm:$0xff] }
 0x398   : > { %v6067_v63 = vpop.eup %6066  ;;  %5694 = vmatpush3.bf16.msra.mxu1 %v8716_v19  ;;  %6072 = vrcp.f32 %v1879_v54  ;;  %5695 = vmatprep.mubr.msk.bf16.mxu1 %vm6283_vm2, %v8712_v22  ;;  %v8726_v19 = vld [vmem:[#allocation86_spill] sm:$0xff] }
 0x399   : > { %v1906_v42 = vpop.xlane.xlu1 %1905  ;;  %3085 = vrot.lane.b32.xlu0 %v8717_v36, %s6288_s8  ;;  %5705 = vmatprep.subr.bf16.mxu1 %v8712_v22  ;;  %v1980_v24 = vmul.f32 %v6067_v63, %v7131_v59 }
 0x39a   : > { %v6069_v14 = vpop.eup %6068  ;;  %3241 = vrot.lane.b32.xlu1 %v8718_v30, %s6288_s8 }
 0x39b   : > { %v1981_v52 = vmul.f32 %v6069_v14, %v7136_v23  ;;  %v1909_v61 = vpop.xlane.xlu0 %1908  ;;  %v8722_v23 = vld [vmem:[#allocation41_spill] sm:$0xff] }
 0x39d   : > { %v1882_v10 = vpop.xlane.xlu1 %1881  ;;  %3191 = vrot.lane.b32.xlu0 %v8719_v12, %s6287_s7  ;;  %v2008_v3 = vpack.c.bf16 %v1981_v52, %v1980_v24  ;;  %v8729_v52 = vld [vmem:[#allocation36_spill] sm:$0xff] }
 0x39e   : > { %6074 = vrcp.f32 %v1882_v10  ;;  %3347 = vrot.lane.b32.xlu1 %v8720_v16, %s6287_s7 }
 0x39f   : > { %5690 = vmatmul.mubr.msk.bf16.vlgmr.msra.gmra.mrb[56].mxu0 %vm659_vm5, %v2008_v3  ;;  %v1885_v56 = vpop.xlane.xlu0 %1884 }
 0x3a0   : > { %v6071_v44 = vpop.eup %6070  ;;  %5700 = vmatpush3.bf16.msra.mxu0 %v8721_v15  ;;  %6076 = vrcp.f32 %v1885_v56  ;;  %5701 = vmatprep.mubr.msk.bf16.mxu0 %vm6283_vm2, %v8712_v22  ;;  %v8730_v15 = vld [vmem:[#allocation85_spill] sm:$0xff] }
 0x3a1   : > { %v1918_v59 = vpop.xlane.xlu1 %1917  ;;  %3189 = vrot.lane.b32.xlu0 %v8722_v23, %s6288_s8  ;;  %5711 = vmatprep.subr.bf16.mxu0 %v8712_v22  ;;  %v1982_v35 = vmul.f32 %v6071_v44, %v7151_v28  ;;  %6078 = vrcp.f32 %v1897_v53  ;;  %v8728_v53 = vld [vmem:[#allocation49_spill] sm:$0xff]  ;;  %v8732_v23 = vld [vmem:[#allocation50_spill] sm:$0xff] }
 0x3a2   : > { %v6073_v0 = vpop.eup %6072  ;;  %3345 = vrot.lane.b32.xlu1 %v8723_v8, %s6288_s8  ;;  %6080 = vrcp.f32 %v1894_v55 }
 0x3a3   : > { %v1983_v4 = vmul.f32 %v6073_v0, %v7156_v45  ;;  %v1921_v29 = vpop.xlane.xlu0 %1920  ;;  %v8727_v45 = vld [vmem:[#allocation42_spill] sm:$0xff] }
 0x3a5   : > { %v1888_v41 = vpop.xlane.xlu1 %1887  ;;  %3295 = vrot.lane.b32.xlu0 %v8724_v1, %s6287_s7  ;;  %v2009_v40 = vpack.c.bf16 %v1983_v4, %v1982_v35 }
 0x3a6   : > { %6082 = vrcp.f32 %v1888_v41  ;;  %3451 = vrot.lane.b32.xlu1 %v8725_v32, %s6287_s7 }
 0x3a7   : > { %5696 = vmatmul.mubr.msk.bf16.vlgmr.msra.gmra.mrb[56].mxu1 %vm659_vm5, %v2009_v40  ;;  %v1891_v54 = vpop.xlane.xlu0 %1890 }
 0x3a8   : > { %v6075_v63 = vpop.eup %6074  ;;  %5706 = vmatpush3.bf16.msra.mxu1 %v8726_v19  ;;  %6084 = vrcp.f32 %v1891_v54  ;;  %5707 = vmatprep.mubr.msk.bf16.mxu1 %vm6283_vm2, %v8712_v22 }
 0x3a9   : > { %v1930_v28 = vpop.xlane.xlu1 %1929  ;;  %3293 = vrot.lane.b32.xlu0 %v8727_v45, %s6288_s8  ;;  %5717 = vmatprep.subr.bf16.mxu1 %v8712_v22  ;;  %v1984_v36 = vmul.f32 %v6075_v63, %v7171_v43  ;;  %6086 = vrcp.f32 %v1909_v61  ;;  %v8735_v63 = vld [vmem:[#allocation46_spill] sm:$0xff] }
 0x3aa   : > { %v6077_v55 = vpop.eup %6076  ;;  %3449 = vrot.lane.b32.xlu1 %v8728_v53, %s6288_s8  ;;  %6088 = vrcp.f32 %v1906_v42  ;;  %v8731_v42 = vld [vmem:[#allocation44_spill] sm:$0xff] }
 0x3ab   : > { %v1985_v14 = vmul.f32 %v6077_v55, %v7176_v46  ;;  %v1933_v30 = vpop.xlane.xlu0 %1932  ;;  %v6079_v3 = vpop.eup %6078 }
 0x3ac   : > { %v6081_v56 = vpop.eup %6080  ;;  %v1989_v46 = vmul.f32 %v6079_v3, %v7146_v25 }
 0x3ad   : > { %v1900_v24 = vpop.xlane.xlu1 %1899  ;;  %3399 = vrot.lane.b32.xlu0 %v8729_v52, %s6287_s7  ;;  %v2010_v10 = vpack.c.bf16 %v1985_v14, %v1984_v36  ;;  %v1988_v0 = vmul.f32 %v6081_v56, %v7141_v17  ;;  %v8736_v14 = vld [vmem:[#allocation89_spill] sm:$0xff] }
 0x3ae   : > { %6090 = vrcp.f32 %v1900_v24  ;;  %3555 = vrot.lane.b32.xlu1 %v6560_v60, %s6287_s7 }
 0x3af   : > { %5702 = vmatmul.mubr.msk.bf16.vlgmr.msra.gmra.mrb[60].mxu0 %vm659_vm5, %v2010_v10  ;;  %v1903_v44 = vpop.xlane.xlu0 %1902  ;;  %v2012_v41 = vpack.c.bf16 %v1989_v46, %v1988_v0 }
 0x3b0   : > { %v6083_v43 = vpop.eup %6082  ;;  %5712 = vmatpush3.bf16.msra.mxu0 %v8730_v15  ;;  %6092 = vrcp.f32 %v1903_v44  ;;  %5713 = vmatprep.mubr.msk.bf16.mxu0 %vm6283_vm2, %v8712_v22 }
 0x3b1   : > { %3397 = vrot.lane.b32.xlu0 %v8731_v42, %s6288_s8  ;;  %5723 = vmatprep.subr.bf16.mxu0 %v8712_v22  ;;  %v1986_v8 = vmul.f32 %v6083_v43, %v7190_v7  ;;  %6094 = vrcp.f32 %v1921_v29 }
 0x3b2   : > { %v6085_v61 = vpop.eup %6084  ;;  %3553 = vrot.lane.b32.xlu1 %v8732_v23, %s6288_s8  ;;  %6096 = vrcp.f32 %v1918_v59  ;;  %v8734_v59 = vld [vmem:[#allocation87_spill] sm:$0xff] }
 0x3b3   : > { %v1987_v35 = vmul.f32 %v6085_v61, %v7194_v9  ;;  %v6087_v40 = vpop.eup %6086  ;;  %v8733_v9 = vld [vmem:[#allocation88_spill] sm:$0xff] }
 0x3b4   : > { %v6089_v54 = vpop.eup %6088  ;;  %v1993_v29 = vmul.f32 %v6087_v40, %v7166_v47 }
 0x3b5   : > { %v1912_v4 = vpop.xlane.xlu1 %1911  ;;  %3503 = vrot.lane.b32.xlu0 %v6564_v62, %s6287_s7  ;;  %v2011_v25 = vpack.c.bf16 %v1987_v35, %v1986_v8  ;;  %v1992_v19 = vmul.f32 %v6089_v54, %v7161_v18 }
 0x3b6   : > { %6098 = vrcp.f32 %v1912_v4  ;;  %3972 = vrot.lane.b32.xlu1 %v6389_v27, %s6289_s9 }
 0x3b7   : > { %5708 = vmatmul.mubr.msk.bf16.vlgmr.msra.gmra.mrb[60].mxu1 %vm659_vm5, %v2011_v25  ;;  %5714 = vmatmul.mubr.msk.bf16.vlgmr.msra.gmra.mrb[64].mxu0 %vm659_vm5, %v2012_v41  ;;  %v1915_v17 = vpop.xlane.xlu0 %1914  ;;  %v2014_v53 = vpack.c.bf16 %v1993_v29, %v1992_v19 }
 0x3b8   : > { %v6091_v7 = vpop.eup %6090  ;;  %5718 = vmatpush3.bf16.msra.mxu1 %v8733_v9  ;;  %5724 = vmatpush3.bf16.msra.mxu0 %v8734_v59  ;;  %6100 = vrcp.f32 %v1915_v17 }
 0x3b9   : > { %3501 = vrot.lane.b32.xlu0 %v8735_v63, %s6288_s8  ;;  %5719 = vmatprep.mubr.msk.bf16.mxu1 %vm6283_vm2, %v8712_v22  ;;  %v1990_v45 = vmul.f32 %v6091_v7, %v7208_v37  ;;  %6102 = vrcp.f32 %v1933_v30 }
 0x3ba   : > { %v6093_v27 = vpop.eup %6092  ;;  %4066 = vrot.lane.b32.xlu1 %v6416_v38, %s6289_s9  ;;  %5725 = vmatprep.mubr.msk.bf16.mxu0 %vm6283_vm2, %v8712_v22  ;;  %6104 = vrcp.f32 %v1930_v28  ;;  %v8737_v28 = vld [vmem:[#allocation90_spill] sm:$0xff] }
 0x3bb   : > { %v1991_v55 = vmul.f32 %v6093_v27, %v7212_v2  ;;  %5729 = vmatprep.subr.bf16.mxu1 %v8712_v22  ;;  %5735 = vmatprep.subr.bf16.mxu0 %v8712_v22  ;;  %v6095_v36 = vpop.eup %6094 }
 0x3bc   : > { %v6097_v18 = vpop.eup %6096 }
 0x3bd   : > { %v1924_v47 = vpop.xlane.xlu1 %1923  ;;  %4019 = vrot.lane.b32.xlu0 %v6398_v31, %s6289_s9  ;;  %v2013_v38 = vpack.c.bf16 %v1991_v55, %v1990_v45  ;;  %v1997_v31 = vmul.f32 %v6095_v36, %v7186_v11  ;;  %v1996_v30 = vmul.f32 %v6097_v18, %v7181_v5 }
 0x3be   : > { %6106 = vrcp.f32 %v1924_v47  ;;  %4160 = vrot.lane.b32.xlu1 %v6444_v49, %s6289_s9 }
 0x3bf   : > { %5720 = vmatmul.mubr.msk.bf16.vlgmr.msra.gmra.mrb[64].mxu1 %vm659_vm5, %v2013_v38  ;;  %5726 = vmatmul.mubr.msk.bf16.vlgmr.msra.gmra.mrb[68].mxu0 %vm659_vm5, %v2014_v53  ;;  %v1927_v37 = vpop.xlane.xlu0 %1926  ;;  %v2016_v11 = vpack.c.bf16 %v1997_v31, %v1996_v30 }
 0x3c0   : > { %v6099_v2 = vpop.eup %6098  ;;  %5730 = vmatpush3.bf16.msra.mxu1 %v8736_v14  ;;  %5736 = vmatpush3.bf16.msra.mxu0 %v8737_v28  ;;  %6108 = vrcp.f32 %v1927_v37 }
 0x3c1   : > { %4113 = vrot.lane.b32.xlu0 %v6420_v39, %s6289_s9  ;;  %5731 = vmatprep.mubr.msk.bf16.mxu1 %vm6283_vm2, %v8712_v22  ;;  %v1994_v24 = vmul.f32 %v6099_v2, %v7218_v20  ;;  %v8738_v20 = vld [vmem:[#allocation91_spill] sm:$0xff] }
 0x3c2   : > { %v6101_v49 = vpop.eup %6100  ;;  %4254 = vrot.lane.b32.xlu1 %v8714_v51, %s6289_s9  ;;  %5737 = vmatprep.mubr.msk.bf16.mxu0 %vm6283_vm2, %v8712_v22 }
 0x3c3   : > { %v1995_v10 = vmul.f32 %v6101_v49, %v7222_v6  ;;  %5741 = vmatprep.subr.bf16.mxu1 %v8712_v22  ;;  %5747 = vmatprep.subr.bf16.mxu0 %v8712_v22  ;;  %v6103_v3 = vpop.eup %6102  ;;  %v2679_v56 = vpop.permute.xlu0 %2678 }
 0x3c4   : > { %v6105_v51 = vpop.eup %6104  ;;  %v2001_v6 = vmul.f32 %v6103_v3, %v7204_v34 }
 0x3c5   : > { %4207 = vrot.lane.b32.xlu0 %v6440_v48, %s6289_s9  ;;  %v2015_v39 = vpack.c.bf16 %v1995_v10, %v1994_v24 }
 0x3c6   : > { %4348 = vrot.lane.b32.xlu1 %v8719_v12, %s6289_s9  ;;  %v2000_v12 = vmul.f32 %v6105_v51, %v7199_v13 }
 0x3c7   : > { %5732 = vmatmul.mubr.msk.bf16.vlgmr.msra.gmra.mrb[68].mxu1 %vm659_vm5, %v2015_v39  ;;  %5738 = vmatmul.mubr.msk.bf16.vlgmr.msra.gmra.mrb[72].mxu0 %vm659_vm5, %v2016_v11 }
 0x3c8   : > { %v6107_v5 = vpop.eup %6106  ;;  %5742 = vmatpush3.bf16.msra.mxu1 %v8738_v20  ;;  %5748 = vmatpush3.bf16.msra.mxu0 %v2679_v56  ;;  %v2018_v34 = vpack.c.bf16 %v2001_v6, %v2000_v12 }
 0x3c9   : > { %4301 = vrot.lane.b32.xlu0 %v6464_v58, %s6289_s9  ;;  %5743 = vmatprep.mubr.msk.bf16.mxu1 %vm6283_vm2, %v8712_v22  ;;  %v1998_v44 = vmul.f32 %v6107_v5, %v7226_v50 }
 0x3ca   : > { %v6109_v48 = vpop.eup %6108  ;;  %4442 = vrot.lane.b32.xlu1 %v8724_v1, %s6289_s9  ;;  %5749 = vmatprep.mubr.msk.bf16.mxu0 %vm6283_vm2, %v8712_v22  ;;  %v2726_v1 = vpop.permute.xlu1 %2725 }
 0x3cb   : > { %v1999_v43 = vmul.f32 %v6109_v48, %v7230_v57  ;;  %5753 = vmatprep.subr.bf16.mxu1 %v8712_v22  ;;  %5759 = vmatprep.subr.bf16.mxu0 %v8712_v22 }
 0x3cd   : > { %4395 = vrot.lane.b32.xlu0 %v8715_v21, %s6289_s9  ;;  %v2017_v58 = vpack.c.bf16 %v1999_v43, %v1998_v44 }
 0x3ce   : > { %4489 = vrot.lane.b32.xlu1 %v8720_v16, %s6289_s9 }
 0x3cf   : > { %5744 = vmatmul.mubr.msk.bf16.vlgmr.msra.gmra.mrb[72].mxu1 %vm659_vm5, %v2017_v58  ;;  %5750 = vmatmul.mubr.msk.bf16.vlgmr.msra.gmra.mrb[76].mxu0 %vm659_vm5, %v2018_v34 }
 0x3d0   : > { %5754 = vmatpush3.bf16.msra.mxu1 %v2726_v1  ;;  %5761 = vmatprep.mubr.msk.bf16.mxu0 %vm6283_vm2, %v8712_v22 }
 0x3d1   : > { %5755 = vmatprep.mubr.msk.bf16.mxu1 %vm6283_vm2, %v8712_v22  ;;  %5765 = vmatprep.subr.bf16.mxu1 %v8712_v22 }
 0x3f2   : > { %v1936_v13 = vpop.xlane.xlu1 %1935 }
 0x3f3   : > { %6110 = vrcp.f32 %v1936_v13 }
 0x3f4   : > { %v1939_v50 = vpop.xlane.xlu0 %1938 }
 0x3f5   : > { %6112 = vrcp.f32 %v1939_v50 }
 0x3f6   : > { %v2828_v57 = vpop.permute.xlu1 %2827 }
 0x3f7   : > { %v2833_v40 = vsel %vm349_vm1, %v2828_v57, 0 }
 0x3f8   : > { %v2776_v21 = vpop.permute.xlu0 %2775 }
 0x3f9   : > { %v2781_v16 = vsel %vm349_vm1, %v2776_v21, 0 }
 0x3fa   : > { %v2826_v15 = vpop.permute.xlu1 %2825  ;;  %5760 = vmatpush3.bf16.xpose.msra.mxu0 %v2781_v16 }
 0x3fb   : > { %5771 = vmatprep.subr.bf16.mxu0 %v8712_v22 }
 0x3fc   : > { %v2774_v46 = vpop.permute.xlu0 %2773 }
 0x3fd   : > { %v6111_v42 = vpop.eup %6110 }
 0x3fe   : > { %v2932_v61 = vpop.permute.xlu1 %2931  ;;  %v2002_v0 = vmul.f32 %v6111_v42, %v7240_v33 }
 0x3ff   : > { %v6113_v23 = vpop.eup %6112  ;;  %v2937_v9 = vsel %vm349_vm1, %v2932_v61, 0 }
 0x400   : > { %v2003_v8 = vmul.f32 %v6113_v23, %v7242_v26  ;;  %v2880_v35 = vpop.permute.xlu0 %2879 }
 0x401   : > { %v2885_v4 = vsel %vm349_vm1, %v2880_v35, 0  ;;  %5762 = vmatmul.mubr.msk.bf16.vlgmr.msra.gmra.mrb[80].mxu0 %vm349_vm1, %v2774_v46 }
 0x402   : > { %v2930_v25 = vpop.permute.xlu1 %2929  ;;  %5772 = vmatpush3.bf16.xpose.msra.mxu0 %v2885_v4  ;;  %v2019_v41 = vpack.c.bf16 %v2003_v8, %v2002_v0  ;;  %5773 = vmatprep.mubr.msk.bf16.mxu0 %vm6283_vm2, %v8712_v22 }
 0x403   : > { %5783 = vmatprep.subr.bf16.mxu0 %v8712_v22 }
 0x404   : > { %5756 = vmatmul.mubr.msk.bf16.vlgmr.msra.gmra.mrb[76].mxu1 %vm659_vm5, %v2019_v41  ;;  %v2878_v33 = vpop.permute.xlu0 %2877 }
 0x405   : > { %5766 = vmatpush3.bf16.xpose.msra.mxu1 %v2833_v40  ;;  %5767 = vmatprep.mubr.msk.bf16.mxu1 %vm6283_vm2, %v8712_v22 }
 0x406   : > { %v3036_v26 = vpop.permute.xlu1 %3035  ;;  %5777 = vmatprep.subr.bf16.mxu1 %v8712_v22 }
 0x407   : > { %v3041_v45 = vsel %vm349_vm1, %v3036_v26, 0 }
 0x408   : > { %v2984_v54 = vpop.permute.xlu0 %2983 }
 0x409   : > { %v2989_v17 = vsel %vm349_vm1, %v2984_v54, 0  ;;  %5774 = vmatmul.mubr.msk.bf16.vlgmr.msra.gmra.mrb[84].mxu0 %vm349_vm1, %v2878_v33 }
 0x40a   : > { %v3034_v7 = vpop.permute.xlu1 %3033  ;;  %5784 = vmatpush3.bf16.xpose.msra.mxu0 %v2989_v17  ;;  %5785 = vmatprep.mubr.msk.bf16.mxu0 %vm6283_vm2, %v8712_v22 }
 0x40b   : > { %5795 = vmatprep.subr.bf16.mxu0 %v8712_v22 }
 0x40c   : > { %5768 = vmatmul.mubr.msk.bf16.vlgmr.msra.gmra.mrb[80].mxu1 %vm349_vm1, %v2826_v15  ;;  %v2982_v59 = vpop.permute.xlu0 %2981 }
 0x40d   : > { %5778 = vmatpush3.bf16.xpose.msra.mxu1 %v2937_v9  ;;  %5779 = vmatprep.mubr.msk.bf16.mxu1 %vm6283_vm2, %v8712_v22 }
 0x40e   : > { %v3140_v29 = vpop.permute.xlu1 %3139  ;;  %5789 = vmatprep.subr.bf16.mxu1 %v8712_v22 }
 0x40f   : > { %v3145_v18 = vsel %vm349_vm1, %v3140_v29, 0 }
 0x410   : > { %v3088_v63 = vpop.permute.xlu0 %3087 }
 0x411   : > { %v3093_v27 = vsel %vm349_vm1, %v3088_v63, 0  ;;  %5786 = vmatmul.mubr.msk.bf16.vlgmr.msra.gmra.mrb[88].mxu0 %vm349_vm1, %v2982_v59 }
 0x412   : > { %v3138_v19 = vpop.permute.xlu1 %3137  ;;  %5796 = vmatpush3.bf16.xpose.msra.mxu0 %v3093_v27  ;;  %5797 = vmatprep.mubr.msk.bf16.mxu0 %vm6283_vm2, %v8712_v22 }
 0x413   : > { %5807 = vmatprep.subr.bf16.mxu0 %v8712_v22 }
 0x414   : > { %5780 = vmatmul.mubr.msk.bf16.vlgmr.msra.gmra.mrb[84].mxu1 %vm349_vm1, %v2930_v25  ;;  %v3086_v55 = vpop.permute.xlu0 %3085 }
 0x415   : > { %5790 = vmatpush3.bf16.xpose.msra.mxu1 %v3041_v45  ;;  %5791 = vmatprep.mubr.msk.bf16.mxu1 %vm6283_vm2, %v8712_v22 }
 0x416   : > { %v3244_v47 = vpop.permute.xlu1 %3243  ;;  %5801 = vmatprep.subr.bf16.mxu1 %v8712_v22 }
 0x417   : > { %v3249_v49 = vsel %vm349_vm1, %v3244_v47, 0 }
 0x418   : > { %v3192_v38 = vpop.permute.xlu0 %3191 }
 0x419   : > { %v3197_v53 = vsel %vm349_vm1, %v3192_v38, 0  ;;  %5798 = vmatmul.mubr.msk.bf16.vlgmr.msra.gmra.mrb[92].mxu0 %vm349_vm1, %v3086_v55 }
 0x41a   : > { %v3242_v36 = vpop.permute.xlu1 %3241  ;;  %5808 = vmatpush3.bf16.xpose.msra.mxu0 %v3197_v53  ;;  %5809 = vmatprep.mubr.msk.bf16.mxu0 %vm6283_vm2, %v8712_v22 }
 0x41b   : > { %5819 = vmatprep.subr.bf16.mxu0 %v8712_v22 }
 0x41c   : > { %5792 = vmatmul.mubr.msk.bf16.vlgmr.msra.gmra.mrb[88].mxu1 %vm349_vm1, %v3034_v7  ;;  %v3190_v37 = vpop.permute.xlu0 %3189 }
 0x41d   : > { %5802 = vmatpush3.bf16.xpose.msra.mxu1 %v3145_v18  ;;  %5803 = vmatprep.mubr.msk.bf16.mxu1 %vm6283_vm2, %v8712_v22 }
 0x41e   : > { %v3348_v2 = vpop.permute.xlu1 %3347  ;;  %5813 = vmatprep.subr.bf16.mxu1 %v8712_v22 }
 0x41f   : > { %v3353_v3 = vsel %vm349_vm1, %v3348_v2, 0 }
 0x420   : > { %v3296_v14 = vpop.permute.xlu0 %3295 }
 0x421   : > { %v3301_v28 = vsel %vm349_vm1, %v3296_v14, 0  ;;  %5810 = vmatmul.mubr.msk.bf16.vlgmr.msra.gmra.mrb[96].mxu0 %vm349_vm1, %v3190_v37 }
 0x422   : > { %v3346_v31 = vpop.permute.xlu1 %3345  ;;  %5820 = vmatpush3.bf16.xpose.msra.mxu0 %v3301_v28  ;;  %5821 = vmatprep.mubr.msk.bf16.mxu0 %vm6283_vm2, %v8712_v22 }
 0x423   : > { %5831 = vmatprep.subr.bf16.mxu0 %v8712_v22 }
 0x424   : > { %5804 = vmatmul.mubr.msk.bf16.vlgmr.msra.gmra.mrb[92].mxu1 %vm349_vm1, %v3138_v19  ;;  %v3294_v30 = vpop.permute.xlu0 %3293 }
 0x425   : > { %5814 = vmatpush3.bf16.xpose.msra.mxu1 %v3249_v49  ;;  %5815 = vmatprep.mubr.msk.bf16.mxu1 %vm6283_vm2, %v8712_v22 }
 0x426   : > { %v3452_v24 = vpop.permute.xlu1 %3451  ;;  %5825 = vmatprep.subr.bf16.mxu1 %v8712_v22 }
 0x427   : > { %v3457_v48 = vsel %vm349_vm1, %v3452_v24, 0 }
 0x428   : > { %v3400_v10 = vpop.permute.xlu0 %3399 }
 0x429   : > { %v3405_v39 = vsel %vm349_vm1, %v3400_v10, 0  ;;  %5822 = vmatmul.mubr.msk.bf16.vlgmr.msra.gmra.mrb[100].mxu0 %vm349_vm1, %v3294_v30 }
 0x42a   : > { %v3450_v11 = vpop.permute.xlu1 %3449  ;;  %5832 = vmatpush3.bf16.xpose.msra.mxu0 %v3405_v39  ;;  %5833 = vmatprep.mubr.msk.bf16.mxu0 %vm6283_vm2, %v8712_v22 }
 0x42b   : > { %5843 = vmatprep.subr.bf16.mxu0 %v8712_v22 }
 0x42c   : > { %5816 = vmatmul.mubr.msk.bf16.vlgmr.msra.gmra.mrb[96].mxu1 %vm349_vm1, %v3242_v36  ;;  %v3398_v51 = vpop.permute.xlu0 %3397 }
 0x42d   : > { %5826 = vmatpush3.bf16.xpose.msra.mxu1 %v3353_v3  ;;  %5827 = vmatprep.mubr.msk.bf16.mxu1 %vm6283_vm2, %v8712_v22 }
 0x42e   : > { %v3556_v56 = vpop.permute.xlu1 %3555  ;;  %5837 = vmatprep.subr.bf16.mxu1 %v8712_v22 }
 0x42f   : > { %v3561_v43 = vsel %vm349_vm1, %v3556_v56, 0 }
 0x430   : > { %v3504_v5 = vpop.permute.xlu0 %3503 }
 0x431   : > { %v3509_v20 = vsel %vm349_vm1, %v3504_v5, 0  ;;  %5834 = vmatmul.mubr.msk.bf16.vlgmr.msra.gmra.mrb[104].mxu0 %vm349_vm1, %v3398_v51 }
 0x432   : > { %5844 = vmatpush3.bf16.xpose.msra.mxu0 %v3509_v20  ;;  %5845 = vmatprep.mubr.msk.bf16.mxu0 %vm6283_vm2, %v8712_v22  ;;  %v3554_v6 = vpop.permute.xlu1 %3553 }
 0x433   : > { %5855 = vmatprep.subr.bf16.mxu0 %v8712_v22 }
 0x434   : > { %5828 = vmatmul.mubr.msk.bf16.vlgmr.msra.gmra.mrb[100].mxu1 %vm349_vm1, %v3346_v31  ;;  %v3502_v12 = vpop.permute.xlu0 %3501 }
 0x435   : > { %5838 = vmatpush3.bf16.xpose.msra.mxu1 %v3457_v48  ;;  %5839 = vmatprep.mubr.msk.bf16.mxu1 %vm6283_vm2, %v8712_v22 }
 0x436   : > { %5849 = vmatprep.subr.bf16.mxu1 %v8712_v22  ;;  %v3973_v44 = vpop.permute.xlu1 %3972 }
 0x438   : > { %v4020_v58 = vpop.permute.xlu0 %4019 }
 0x439   : > { %5846 = vmatmul.mubr.msk.bf16.vlgmr.msra.gmra.mrb[108].mxu0 %vm349_vm1, %v3502_v12 }
 0x43a   : > { %5856 = vmatpush3.bf16.msra.mxu0 %v3973_v44  ;;  %5857 = vmatprep.mubr.msk.bf16.mxu0 %vm6283_vm2, %v8712_v22 }
 0x43b   : > { %5867 = vmatprep.subr.bf16.mxu0 %v8712_v22 }
 0x43c   : > { %5840 = vmatmul.mubr.msk.bf16.vlgmr.msra.gmra.mrb[104].mxu1 %vm349_vm1, %v3450_v11 }
 0x43d   : > { %5850 = vmatpush3.bf16.xpose.msra.mxu1 %v3561_v43  ;;  %5851 = vmatprep.mubr.msk.bf16.mxu1 %vm6283_vm2, %v8712_v22 }
 0x43e   : > { %5861 = vmatprep.subr.bf16.mxu1 %v8712_v22 }
 0x444   : > { %5852 = vmatmul.mubr.msk.bf16.vlgmr.msra.gmra.mrb[108].mxu1 %vm349_vm1, %v3554_v6 }
 0x445   : > { %5862 = vmatpush3.bf16.msra.mxu1 %v4020_v58  ;;  %5863 = vmatprep.mubr.msk.bf16.mxu1 %vm6283_vm2, %v8712_v22 }
 0x446   : > { %5873 = vmatprep.subr.bf16.mxu1 %v8712_v22 }
 0x452   : > { %v7524_v34 = vpop.f32.mrb[48].mxu0 }
 0x453   : > { %v5667_v1 = vpop.f32.mrb[49].mxu0 }
 0x454   : > { %v7526_v13 = vpop.f32.mrb[50].mxu0 }
 0x455   : > { %v5668_v50 = vpop.f32.mrb[51].mxu0 }
 0x45c   : > { %v7528_v57 = vpop.f32.mrb[48].mxu1 }
 0x45d   : > { %v5673_v21 = vpop.f32.mrb[49].mxu1 }
 0x45e   : > { %v7530_v16 = vpop.f32.mrb[50].mxu1  ;;  %v8765_v21 = vld [vmem:[#allocation51_spill] sm:$0xff] }
 0x45f   : > { %8739 = vst [vmem:[#allocation45_spill] sm:$0xff] %v7530_v16  ;;  %v5674_v15 = vpop.f32.mrb[51].mxu1 }
 0x462   : > { %v7532_v46 = vpop.f32.mrb[52].mxu0 }
 0x463   : > { %v5679_v42 = vpop.f32.mrb[53].mxu0 }
 0x464   : > { %v7534_v61 = vpop.f32.mrb[54].mxu0 }
 0x465   : > { %8740 = vst [vmem:[#allocation18_spill] sm:$0xff] %v7534_v61  ;;  %v5680_v23 = vpop.f32.mrb[55].mxu0 }
 0x46a   : > { %v7536_v0 = vpop.f32.mrb[52].mxu1 }
 0x46b   : > { %8741 = vst [vmem:[#allocation23_spill] sm:$0xff] %v7536_v0  ;;  %v5685_v8 = vpop.f32.mrb[53].mxu1 }
 0x46c   : > { %v7538_v35 = vpop.f32.mrb[54].mxu1  ;;  %v8766_v8 = vld [vmem:[#allocation52_spill] sm:$0xff] }
 0x46d   : > { %8742 = vst [vmem:[#allocation84_spill] sm:$0xff] %v7538_v35  ;;  %v5686_v4 = vpop.f32.mrb[55].mxu1 }
 0x472   : > { %v7540_v25 = vpop.f32.mrb[56].mxu0 }
 0x473   : > { %8743 = vst [vmem:[#allocation43_spill] sm:$0xff] %v7540_v25  ;;  %v5691_v41 = vpop.f32.mrb[57].mxu0 }
 0x474   : > { %v7542_v40 = vpop.f32.mrb[58].mxu0 }
 0x475   : > { %8744 = vst [vmem:[#allocation47_spill] sm:$0xff] %v7542_v40  ;;  %v5692_v33 = vpop.f32.mrb[59].mxu0 }
 0x47a   : > { %v7544_v26 = vpop.f32.mrb[56].mxu1 }
 0x47b   : > { %8745 = vst [vmem:[#allocation24_spill] sm:$0xff] %v7544_v26  ;;  %v5697_v54 = vpop.f32.mrb[57].mxu1 }
 0x47c   : > { %v7546_v17 = vpop.f32.mrb[58].mxu1 }
 0x47d   : > { %8746 = vst [vmem:[#allocation29_spill] sm:$0xff] %v7546_v17  ;;  %v5698_v7 = vpop.f32.mrb[59].mxu1 }
 0x482   : > { %v7548_v9 = vpop.f32.mrb[60].mxu0 }
 0x483   : > { %8747 = vst [vmem:[#allocation83_spill] sm:$0xff] %v7548_v9  ;;  %v5703_v59 = vpop.f32.mrb[61].mxu0 }
 0x484   : > { %v7550_v29 = vpop.f32.mrb[62].mxu0 }
 0x485   : > { %8748 = vst [vmem:[#allocation41_spill] sm:$0xff] %v7550_v29  ;;  %v5704_v63 = vpop.f32.mrb[63].mxu0 }
 0x48a   : > { %v7552_v27 = vpop.f32.mrb[60].mxu1  ;;  %v7554_v19 = vpop.f32.mrb[64].mxu0 }
 0x48b   : > { %8749 = vst [vmem:[#allocation48_spill] sm:$0xff] %v7552_v27  ;;  %8750 = vst [vmem:[#allocation30_spill] sm:$0xff] %v7554_v19  ;;  %v5709_v45 = vpop.f32.mrb[61].mxu1  ;;  %v5715_v55 = vpop.f32.mrb[65].mxu0 }
 0x48c   : > { %v7556_v47 = vpop.f32.mrb[62].mxu1  ;;  %v7558_v38 = vpop.f32.mrb[66].mxu0 }
 0x48d   : > { %8751 = vst [vmem:[#allocation35_spill] sm:$0xff] %v7556_v47  ;;  %8752 = vst [vmem:[#allocation86_spill] sm:$0xff] %v7558_v38  ;;  %v5710_v53 = vpop.f32.mrb[63].mxu1  ;;  %v5716_v36 = vpop.f32.mrb[67].mxu0 }
 0x48e   : > { %v8769_v53 = vld [vmem:[#allocation55_spill] sm:$0xff] }
 0x492   : > { %v7560_v18 = vpop.f32.mrb[64].mxu1  ;;  %v7562_v37 = vpop.f32.mrb[68].mxu0 }
 0x493   : > { %8753 = vst [vmem:[#allocation42_spill] sm:$0xff] %v7560_v18  ;;  %8754 = vst [vmem:[#allocation49_spill] sm:$0xff] %v7562_v37  ;;  %v5721_v2 = vpop.f32.mrb[65].mxu1  ;;  %v5727_v14 = vpop.f32.mrb[69].mxu0 }
 0x494   : > { %v7564_v28 = vpop.f32.mrb[66].mxu1  ;;  %v7566_v31 = vpop.f32.mrb[70].mxu0 }
 0x495   : > { %8755 = vst [vmem:[#allocation36_spill] sm:$0xff] %v7564_v28  ;;  %8756 = vst [vmem:[#allocation85_spill] sm:$0xff] %v7566_v31  ;;  %v5722_v49 = vpop.f32.mrb[67].mxu1  ;;  %v5728_v30 = vpop.f32.mrb[71].mxu0 }
 0x49a   : > { %v7568_v24 = vpop.f32.mrb[68].mxu1  ;;  %v7570_v10 = vpop.f32.mrb[72].mxu0 }
 0x49b   : > { %8757 = vst [vmem:[#allocation44_spill] sm:$0xff] %v7568_v24  ;;  %8758 = vst [vmem:[#allocation50_spill] sm:$0xff] %v7570_v10  ;;  %v5733_v39 = vpop.f32.mrb[69].mxu1  ;;  %v5739_v11 = vpop.f32.mrb[73].mxu0 }
 0x49c   : > { %v7572_v3 = vpop.f32.mrb[70].mxu1  ;;  %v7574_v51 = vpop.f32.mrb[74].mxu0  ;;  %v8770_v11 = vld [vmem:[#allocation53_spill] sm:$0xff] }
 0x49d   : > { %8759 = vst [vmem:[#allocation88_spill] sm:$0xff] %v7572_v3  ;;  %8760 = vst [vmem:[#allocation87_spill] sm:$0xff] %v7574_v51  ;;  %v5734_v56 = vpop.f32.mrb[71].mxu1  ;;  %v5740_v5 = vpop.f32.mrb[75].mxu0 }
 0x4a2   : > { %v7576_v20 = vpop.f32.mrb[72].mxu1  ;;  %v7578_v6 = vpop.f32.mrb[76].mxu0 }
 0x4a3   : > { %8761 = vst [vmem:[#allocation46_spill] sm:$0xff] %v7576_v20  ;;  %8762 = vst [vmem:[#allocation89_spill] sm:$0xff] %v7578_v6  ;;  %v5745_v48 = vpop.f32.mrb[73].mxu1  ;;  %v5751_v12 = vpop.f32.mrb[77].mxu0 }
 0x4a4   : > { %v7580_v44 = vpop.f32.mrb[74].mxu1  ;;  %v7582_v43 = vpop.f32.mrb[78].mxu0  ;;  %v8771_v12 = vld [vmem:[#allocation54_spill] sm:$0xff] }
 0x4a5   : > { %8763 = vst [vmem:[#allocation90_spill] sm:$0xff] %v7580_v44  ;;  %8764 = vst [vmem:[#allocation91_spill] sm:$0xff] %v7582_v43  ;;  %v5746_v58 = vpop.f32.mrb[75].mxu1  ;;  %v5752_v1 = vpop.f32.mrb[79].mxu0 }
 0x4d4   : > { %v2817_v50 = vpop.f32.mrb[80].mxu0 }
 0x4d5   : > { %v7585_v15 = vadd.f32 %v2817_v50, %v8765_v21  ;;  %v5763_v42 = vpop.f32.mrb[81].mxu0 }
 0x4d6   : > { %v2820_v23 = vpop.f32.mrb[82].mxu0 }
 0x4d7   : > { %v7588_v4 = vadd.f32 %v2820_v23, %v8766_v8  ;;  %v7590_v41 = vpop.f32.mrb[76].mxu1  ;;  %v5764_v33 = vpop.f32.mrb[83].mxu0  ;;  %v3604_v54 = vsel %vm659_vm5, %v7585_v15, -inf  ;;  %v8772_v23 = vld [vmem:[#allocation56_spill] sm:$0xff] }
 0x4d8   : > { %8767 = vst [vmem:[#allocation51_spill] sm:$0xff] %v7590_v41  ;;  %3605 = vmax.xlane.f32.xlu0 %v3604_v54  ;;  %v5757_v7 = vpop.f32.mrb[77].mxu1 }
 0x4d9   : > { %v7594_v59 = vpop.f32.mrb[78].mxu1  ;;  %v3607_v63 = vsel %vm659_vm5, %v7588_v4, -inf }
 0x4da   : > { %8768 = vst [vmem:[#allocation52_spill] sm:$0xff] %v7594_v59  ;;  %3608 = vmax.xlane.f32.xlu1 %v3607_v63  ;;  %v5758_v45 = vpop.f32.mrb[79].mxu1 }
 0x4db   : > { %v8773_v45 = vld [vmem:[#allocation57_spill] sm:$0xff] }
 0x4dc   : > { %v2921_v55 = vpop.f32.mrb[84].mxu0 }
 0x4dd   : > { %v7599_v36 = vadd.f32 %v2921_v55, %v8769_v53  ;;  %v5775_v2 = vpop.f32.mrb[85].mxu0 }
 0x4de   : > { %v2924_v14 = vpop.f32.mrb[86].mxu0 }
 0x4df   : > { %v2869_v49 = vpop.f32.mrb[80].mxu1  ;;  %v5776_v30 = vpop.f32.mrb[87].mxu0  ;;  %v3616_v39 = vsel %vm659_vm5, %v7599_v36, -inf  ;;  %v7612_v8 = vadd.f32 %v2924_v14, %v8772_v23 }
 0x4e0   : > { %v7604_v56 = vadd.f32 %v2869_v49, %v8770_v11  ;;  %3617 = vmax.xlane.f32.xlu1 %v3616_v39  ;;  %v5769_v5 = vpop.f32.mrb[81].mxu1  ;;  %v8774_v49 = vld [vmem:[#allocation59_spill] sm:$0xff]  ;;  %v8775_v39 = vld [vmem:[#allocation58_spill] sm:$0xff] }
 0x4e1   : > { %v2872_v48 = vpop.f32.mrb[82].mxu1  ;;  %v3619_v5 = vsel %vm659_vm5, %v7612_v8, -inf }
 0x4e2   : > { %v7607_v58 = vadd.f32 %v2872_v48, %v8771_v12  ;;  %v5770_v1 = vpop.f32.mrb[83].mxu1  ;;  %v3610_v50 = vsel %vm659_vm5, %v7604_v56, -inf }
 0x4e3   : > { %3611 = vmax.xlane.f32.xlu0 %v3610_v50  ;;  %v8776_v50 = vld [vmem:[#allocation61_spill] sm:$0xff] }
 0x4e4   : > { %v3025_v21 = vpop.f32.mrb[88].mxu0  ;;  %v3613_v54 = vsel %vm659_vm5, %v7607_v58, -inf }
 0x4e5   : > { %v5787_v42 = vpop.f32.mrb[89].mxu0  ;;  %v7620_v30 = vadd.f32 %v3025_v21, %v8774_v49 }
 0x4e6   : > { %v3028_v33 = vpop.f32.mrb[90].mxu0 }
 0x4e7   : > { %v5788_v7 = vpop.f32.mrb[91].mxu0  ;;  %3614 = vmax.xlane.f32.xlu0 %v3613_v54  ;;  %v2973_v63 = vpop.f32.mrb[84].mxu1  ;;  %v7630_v42 = vadd.f32 %v3028_v33, %v8776_v50  ;;  %v3628_v21 = vsel %vm659_vm5, %v7620_v30, -inf  ;;  %v8779_v33 = vld [vmem:[#allocation65_spill] sm:$0xff] }
 0x4e8   : > { %v7617_v55 = vadd.f32 %v2973_v63, %v8773_v45  ;;  %v5781_v53 = vpop.f32.mrb[85].mxu1  ;;  %v8777_v45 = vld [vmem:[#allocation63_spill] sm:$0xff] }
 0x4e9   : > { %v2976_v2 = vpop.f32.mrb[86].mxu1 }
 0x4ea   : > { %v7623_v11 = vadd.f32 %v2976_v2, %v8775_v39  ;;  %v5782_v14 = vpop.f32.mrb[87].mxu1  ;;  %v3622_v48 = vsel %vm659_vm5, %v7617_v55, -inf  ;;  %v8778_v39 = vld [vmem:[#allocation67_spill] sm:$0xff] }
 0x4eb   : > { %3620 = vmax.xlane.f32.xlu0 %v3619_v5  ;;  %3623 = vmax.xlane.f32.xlu1 %v3622_v48 }
 0x4ec   : > { %v3129_v12 = vpop.f32.mrb[92].mxu0  ;;  %v3625_v54 = vsel %vm659_vm5, %v7623_v11, -inf }
 0x4ed   : > { %v5799_v1 = vpop.f32.mrb[93].mxu0  ;;  %v7640_v14 = vadd.f32 %v3129_v12, %v8778_v39 }
 0x4ee   : > { %v3132_v23 = vpop.f32.mrb[94].mxu0  ;;  %v3631_v1 = vsel %vm659_vm5, %v7630_v42, -inf }
 0x4ef   : > { %v5800_v7 = vpop.f32.mrb[95].mxu0  ;;  %3629 = vmax.xlane.f32.xlu1 %v3628_v21  ;;  %3626 = vmax.xlane.f32.xlu0 %v3625_v54  ;;  %v3077_v63 = vpop.f32.mrb[88].mxu1  ;;  %v3640_v12 = vsel %vm659_vm5, %v7640_v14, -inf }
 0x4f0   : > { %v7637_v53 = vadd.f32 %v3077_v63, %v8777_v45  ;;  %v5793_v2 = vpop.f32.mrb[89].mxu1  ;;  %v8780_v7 = vld [vmem:[#allocation69_spill] sm:$0xff] }
 0x4f1   : > { %v3080_v49 = vpop.f32.mrb[90].mxu1  ;;  %v7650_v63 = vadd.f32 %v3132_v23, %v8780_v7  ;;  %v8783_v23 = vld [vmem:[#allocation73_spill] sm:$0xff] }
 0x4f2   : > { %v7643_v5 = vadd.f32 %v3080_v49, %v8779_v33  ;;  %v5794_v48 = vpop.f32.mrb[91].mxu1  ;;  %v3634_v50 = vsel %vm659_vm5, %v7637_v53, -inf  ;;  %v8781_v33 = vld [vmem:[#allocation71_spill] sm:$0xff] }
 0x4f3   : > { %3632 = vmax.xlane.f32.xlu0 %v3631_v1  ;;  %3635 = vmax.xlane.f32.xlu1 %v3634_v50  ;;  %v3643_v43 = vsel %vm659_vm5, %v7650_v63, -inf }
 0x4f4   : > { %v3233_v21 = vpop.f32.mrb[96].mxu0  ;;  %v3637_v2 = vsel %vm659_vm5, %v7643_v5, -inf }
 0x4f5   : > { %v5811_v54 = vpop.f32.mrb[97].mxu0 }
 0x4f6   : > { %v3236_v45 = vpop.f32.mrb[98].mxu0  ;;  %v8782_v54 = vld [vmem:[#allocation60_spill] sm:$0xff] }
 0x4f7   : > { %v5812_v49 = vpop.f32.mrb[99].mxu0  ;;  %3641 = vmax.xlane.f32.xlu1 %v3640_v12  ;;  %3638 = vmax.xlane.f32.xlu0 %v3637_v2  ;;  %v3181_v39 = vpop.f32.mrb[92].mxu1  ;;  %v7660_v59 = vadd.f32 %v3233_v21, %v8782_v54 }
 0x4f8   : > { %v7657_v48 = vadd.f32 %v3181_v39, %v8781_v33  ;;  %v5805_v1 = vpop.f32.mrb[93].mxu1  ;;  %v8784_v39 = vld [vmem:[#allocation62_spill] sm:$0xff] }
 0x4f9   : > { %v3184_v50 = vpop.f32.mrb[94].mxu1  ;;  %v7670_v33 = vadd.f32 %v3236_v45, %v8784_v39  ;;  %v3652_v21 = vsel %vm659_vm5, %v7660_v59, -inf  ;;  %v8787_v45 = vld [vmem:[#allocation76_spill] sm:$0xff] }
 0x4fa   : > { %v7663_v7 = vadd.f32 %v3184_v50, %v8783_v23  ;;  %v5806_v41 = vpop.f32.mrb[95].mxu1  ;;  %v3646_v12 = vsel %vm659_vm5, %v7657_v48, -inf  ;;  %v8785_v23 = vld [vmem:[#allocation75_spill] sm:$0xff] }
 0x4fb   : > { %3644 = vmax.xlane.f32.xlu0 %v3643_v43  ;;  %3647 = vmax.xlane.f32.xlu1 %v3646_v12  ;;  %v3655_v51 = vsel %vm659_vm5, %v7670_v33, -inf }
 0x4fc   : > { %v3337_v2 = vpop.f32.mrb[100].mxu0  ;;  %v3649_v41 = vsel %vm659_vm5, %v7663_v7, -inf }
 0x4fd   : > { %v5823_v49 = vpop.f32.mrb[101].mxu0 }
 0x4fe   : > { %v3340_v1 = vpop.f32.mrb[102].mxu0  ;;  %v8786_v49 = vld [vmem:[#allocation64_spill] sm:$0xff] }
 0x4ff   : > { %v5824_v50 = vpop.f32.mrb[103].mxu0  ;;  %3653 = vmax.xlane.f32.xlu1 %v3652_v21  ;;  %3650 = vmax.xlane.f32.xlu0 %v3649_v41  ;;  %v3285_v54 = vpop.f32.mrb[96].mxu1  ;;  %v7680_v6 = vadd.f32 %v3337_v2, %v8786_v49 }
 0x500   : > { %v7677_v44 = vadd.f32 %v3285_v54, %v8785_v23  ;;  %v5817_v43 = vpop.f32.mrb[97].mxu1  ;;  %v8788_v54 = vld [vmem:[#allocation66_spill] sm:$0xff] }
 0x501   : > { %v3288_v12 = vpop.f32.mrb[98].mxu1  ;;  %v7690_v23 = vadd.f32 %v3340_v1, %v8788_v54  ;;  %v3664_v2 = vsel %vm659_vm5, %v7680_v6, -inf  ;;  %v8791_v1 = vld [vmem:[#allocation78_spill] sm:$0xff] }
 0x502   : > { %v7683_v39 = vadd.f32 %v3288_v12, %v8787_v45  ;;  %v5818_v20 = vpop.f32.mrb[99].mxu1  ;;  %v3658_v21 = vsel %vm659_vm5, %v7677_v44, -inf  ;;  %v8789_v45 = vld [vmem:[#allocation77_spill] sm:$0xff] }
 0x503   : > { %3656 = vmax.xlane.f32.xlu0 %v3655_v51  ;;  %3659 = vmax.xlane.f32.xlu1 %v3658_v21  ;;  %v3667_v31 = vsel %vm659_vm5, %v7690_v23, -inf }
 0x504   : > { %v3441_v41 = vpop.f32.mrb[104].mxu0  ;;  %v3661_v20 = vsel %vm659_vm5, %v7683_v39, -inf }
 0x505   : > { %v5835_v50 = vpop.f32.mrb[105].mxu0 }
 0x506   : > { %v3444_v43 = vpop.f32.mrb[106].mxu0  ;;  %v8790_v50 = vld [vmem:[#allocation68_spill] sm:$0xff] }
 0x507   : > { %v5836_v12 = vpop.f32.mrb[107].mxu0  ;;  %3665 = vmax.xlane.f32.xlu1 %v3664_v2  ;;  %3662 = vmax.xlane.f32.xlu0 %v3661_v20  ;;  %v3389_v49 = vpop.f32.mrb[100].mxu1  ;;  %v7700_v10 = vadd.f32 %v3441_v41, %v8790_v50 }
 0x508   : > { %v7697_v3 = vadd.f32 %v3389_v49, %v8789_v45  ;;  %v5829_v51 = vpop.f32.mrb[101].mxu1  ;;  %v8792_v49 = vld [vmem:[#allocation70_spill] sm:$0xff] }
 0x509   : > { %v3392_v21 = vpop.f32.mrb[102].mxu1  ;;  %v7710_v45 = vadd.f32 %v3444_v43, %v8792_v49  ;;  %v3676_v41 = vsel %vm659_vm5, %v7700_v10, -inf  ;;  %v8795_v43 = vld [vmem:[#allocation80_spill] sm:$0xff] }
 0x50a   : > { %v7703_v54 = vadd.f32 %v3392_v21, %v8791_v1  ;;  %v5830_v24 = vpop.f32.mrb[103].mxu1  ;;  %v3670_v2 = vsel %vm659_vm5, %v7697_v3, -inf  ;;  %v8793_v1 = vld [vmem:[#allocation79_spill] sm:$0xff] }
 0x50b   : > { %3668 = vmax.xlane.f32.xlu0 %v3667_v31  ;;  %3671 = vmax.xlane.f32.xlu1 %v3670_v2  ;;  %v3679_v38 = vsel %vm659_vm5, %v7710_v45, -inf }
 0x50c   : > { %v3545_v20 = vpop.f32.mrb[108].mxu0  ;;  %v3673_v24 = vsel %vm659_vm5, %v7703_v54, -inf }
 0x50d   : > { %v5847_v12 = vpop.f32.mrb[109].mxu0 }
 0x50e   : > { %v3548_v51 = vpop.f32.mrb[110].mxu0  ;;  %v8794_v12 = vld [vmem:[#allocation72_spill] sm:$0xff] }
 0x50f   : > { %v5848_v21 = vpop.f32.mrb[111].mxu0  ;;  %3677 = vmax.xlane.f32.xlu1 %v3676_v41  ;;  %3674 = vmax.xlane.f32.xlu0 %v3673_v24  ;;  %v3493_v50 = vpop.f32.mrb[104].mxu1  ;;  %v7720_v37 = vadd.f32 %v3545_v20, %v8794_v12  ;;  %v8796_v24 = vld [vmem:[#allocation74_spill] sm:$0xff] }
 0x510   : > { %v7717_v28 = vadd.f32 %v3493_v50, %v8793_v1  ;;  %v5841_v31 = vpop.f32.mrb[105].mxu1  ;;  %v7730_v21 = vadd.f32 %v3548_v51, %v8796_v24  ;;  %v8797_v1 = vld [vmem:[#allocation81_spill] sm:$0xff] }
 0x511   : > { %v3496_v2 = vpop.f32.mrb[106].mxu1  ;;  %v3688_v50 = vsel %vm659_vm5, %v7720_v37, -inf }
 0x512   : > { %v7723_v49 = vadd.f32 %v3496_v2, %v8795_v43  ;;  %v5842_v18 = vpop.f32.mrb[107].mxu1  ;;  %v3682_v41 = vsel %vm659_vm5, %v7717_v28, -inf  ;;  %v8798_v43 = vld [vmem:[#allocation82_spill] sm:$0xff]  ;;  %v3691_v51 = vsel %vm659_vm5, %v7730_v21, -inf }
 0x513   : > { %3680 = vmax.xlane.f32.xlu0 %v3679_v38  ;;  %3683 = vmax.xlane.f32.xlu1 %v3682_v41 }
 0x514   : > { %v3685_v20 = vsel %vm659_vm5, %v7723_v49, -inf }
 0x517   : > { %3689 = vmax.xlane.f32.xlu1 %v3688_v50  ;;  %3686 = vmax.xlane.f32.xlu0 %v3685_v20  ;;  %v3597_v18 = vpop.f32.mrb[108].mxu1  ;;  %v7752_v20 = vpop.permute.xlu1 %4066 }
 0x518   : > { %v7737_v31 = vadd.f32 %v3597_v18, %v8797_v1  ;;  %v5853_v2 = vpop.f32.mrb[109].mxu1  ;;  %v7756_v1 = vpop.permute.xlu0 %4113 }
 0x519   : > { %v3600_v12 = vpop.f32.mrb[110].mxu1 }
 0x51a   : > { %v7740_v38 = vadd.f32 %v3600_v12, %v8798_v43  ;;  %v5854_v41 = vpop.f32.mrb[111].mxu1  ;;  %v3694_v24 = vsel %vm659_vm5, %v7737_v31, -inf }
 0x51b   : > { %3692 = vmax.xlane.f32.xlu0 %v3691_v51  ;;  %3695 = vmax.xlane.f32.xlu1 %v3694_v24  ;;  %v7754_v18 = vpop.permute.xlu1 %4160 }
 0x51c   : > { %v3697_v50 = vsel %vm659_vm5, %v7740_v38, -inf  ;;  %v7760_v12 = vpop.permute.xlu0 %4207 }
 0x51f   : > { %3698 = vmax.xlane.f32.xlu0 %v3697_v50  ;;  %v7758_v2 = vpop.permute.xlu1 %4254 }
 0x520   : > { %v7764_v41 = vpop.permute.xlu0 %4301 }
 0x523   : > { %v7762_v43 = vpop.permute.xlu1 %4348 }
 0x527   : > { %v7766_v51 = vpop.permute.xlu1 %4442 }
 0x52b   : > { %v7770_v24 = vpop.permute.xlu1 %4489 }
 0x52c   : > { %4583 = vrot.lane.b32.xlu1 %v8725_v32, %s6289_s9  ;;  %v7768_v32 = vpop.permute.xlu0 %4395 }
 0x535   : > { %4536 = vrot.lane.b32.xlu0 %v8729_v52, %s6289_s9 }
 0x565   : > { %v3606_v52 = vpop.xlane.xlu0 %3605 }
 0x566   : > { %v3700_v50 = vsub.f32 %v7585_v15, %v3606_v52 }
 0x567   : > { %v3609_v47 = vpop.xlane.xlu1 %3608 }
 0x568   : > { %v3732_v19 = vmul.f32 1.442695, %v3700_v50  ;;  %v3701_v27 = vsub.f32 %v7588_v4, %v3609_v47 }
 0x56a   : > { %6114 = vpow2.f32 %v3732_v19  ;;  %v3734_v29 = vmul.f32 1.442695, %v3701_v27 }
 0x56c   : > { %6116 = vpow2.f32 %v3734_v29 }
 0x56d   : > { %v3618_v17 = vpop.xlane.xlu1 %3617 }
 0x56e   : > { %v3704_v9 = vsub.f32 %v7599_v36, %v3618_v17 }
 0x570   : > { %v3612_v26 = vpop.xlane.xlu0 %3611  ;;  %v3740_v35 = vmul.f32 1.442695, %v3704_v9 }
 0x571   : > { %v3702_v40 = vsub.f32 %v7604_v56, %v3612_v26 }
 0x573   : > { %v3736_v25 = vmul.f32 1.442695, %v3702_v40 }
 0x574   : > { %v7776_v0 = vpop.eup %6114  ;;  %v3615_v61 = vpop.xlane.xlu0 %3614 }
 0x575   : > { %6118 = vpow2.f32 %v3736_v25  ;;  %v3703_v15 = vsub.f32 %v7607_v58, %v3615_v61  ;;  %v3796_v47 = vsel %vm659_vm5, %v7776_v0, 0.0 }
 0x576   : > { %v7781_v19 = vpop.eup %6116  ;;  %3797 = vadd.xlane.f32.xlu1 %v3796_v47  ;;  %6120 = vpow2.f32 %v3740_v35 }
 0x577   : > { %v3738_v29 = vmul.f32 1.442695, %v3703_v15  ;;  %v3799_v17 = vsel %vm659_vm5, %v7781_v19, 0.0 }
 0x578   : > { %v3621_v26 = vpop.xlane.xlu0 %3620  ;;  %v3624_v9 = vpop.xlane.xlu1 %3623  ;;  %3800 = vadd.xlane.f32.xlu0 %v3799_v17 }
 0x579   : > { %6122 = vpow2.f32 %v3738_v29  ;;  %v3705_v40 = vsub.f32 %v7612_v8, %v3621_v26  ;;  %v3706_v25 = vsub.f32 %v7617_v55, %v3624_v9 }
 0x57b   : > { %v3742_v61 = vmul.f32 1.442695, %v3705_v40  ;;  %v3744_v27 = vmul.f32 1.442695, %v3706_v25 }
 0x57c   : > { %v3630_v4 = vpop.xlane.xlu1 %3629  ;;  %v3627_v36 = vpop.xlane.xlu0 %3626 }
 0x57d   : > { %6124 = vpow2.f32 %v3742_v61  ;;  %v3708_v56 = vsub.f32 %v7620_v30, %v3630_v4  ;;  %v3707_v35 = vsub.f32 %v7623_v11, %v3627_v36 }
 0x57e   : > { %6126 = vpow2.f32 %v3744_v27 }
 0x57f   : > { %v7789_v58 = vpop.eup %6118  ;;  %v3748_v52 = vmul.f32 1.442695, %v3708_v56  ;;  %v3746_v50 = vmul.f32 1.442695, %v3707_v35 }
 0x580   : > { %v3633_v15 = vpop.xlane.xlu0 %3632  ;;  %v3636_v47 = vpop.xlane.xlu1 %3635  ;;  %v3802_v8 = vsel %vm659_vm5, %v7789_v58, 0.0 }
 0x581   : > { %v7793_v55 = vpop.eup %6120  ;;  %6128 = vpow2.f32 %v3748_v52  ;;  %v3709_v29 = vsub.f32 %v7630_v42, %v3633_v15  ;;  %v3710_v17 = vsub.f32 %v7637_v53, %v3636_v47  ;;  %3803 = vadd.xlane.f32.xlu1 %v3802_v8 }
 0x582   : > { %6130 = vpow2.f32 %v3746_v50  ;;  %v3808_v25 = vsel %vm659_vm5, %v7793_v55, 0.0 }
 0x583   : > { %v7797_v30 = vpop.eup %6122  ;;  %v3750_v11 = vmul.f32 1.442695, %v3709_v29  ;;  %v3752_v26 = vmul.f32 1.442695, %v3710_v17 }
 0x584   : > { %v3642_v9 = vpop.xlane.xlu1 %3641  ;;  %v3639_v40 = vpop.xlane.xlu0 %3638  ;;  %v3805_v61 = vsel %vm659_vm5, %v7797_v30, 0.0 }
 0x585   : > { %6132 = vpow2.f32 %v3750_v11  ;;  %v3712_v27 = vsub.f32 %v7640_v14, %v3642_v9  ;;  %v3711_v42 = vsub.f32 %v7643_v5, %v3639_v40  ;;  %3809 = vadd.xlane.f32.xlu1 %v3808_v25  ;;  %3806 = vadd.xlane.f32.xlu0 %v3805_v61 }
 0x586   : > { %6134 = vpow2.f32 %v3752_v26 }
 0x587   : > { %v7805_v53 = vpop.eup %6124  ;;  %v3756_v4 = vmul.f32 1.442695, %v3712_v27  ;;  %v3754_v36 = vmul.f32 1.442695, %v3711_v42 }
 0x588   : > { %v7807_v56 = vpop.eup %6126  ;;  %v3645_v35 = vpop.xlane.xlu0 %3644  ;;  %v3811_v50 = vsel %vm659_vm5, %v7805_v53, 0.0 }
 0x589   : > { %v3648_v52 = vpop.xlane.xlu1 %3647  ;;  %6136 = vpow2.f32 %v3756_v4  ;;  %v3713_v15 = vsub.f32 %v7650_v63, %v3645_v35  ;;  %v3814_v5 = vsel %vm659_vm5, %v7807_v56, 0.0  ;;  %3812 = vadd.xlane.f32.xlu0 %v3811_v50 }
 0x58a   : > { %v3714_v14 = vsub.f32 %v7657_v48, %v3648_v52  ;;  %6138 = vpow2.f32 %v3754_v36  ;;  %3815 = vadd.xlane.f32.xlu1 %v3814_v5 }
 0x58b   : > { %v7815_v47 = vpop.eup %6128  ;;  %v3758_v8 = vmul.f32 1.442695, %v3713_v15 }
 0x58c   : > { %v3760_v29 = vmul.f32 1.442695, %v3714_v14  ;;  %v7817_v17 = vpop.eup %6130  ;;  %v3651_v26 = vpop.xlane.xlu0 %3650  ;;  %v3820_v9 = vsel %vm659_vm5, %v7815_v47, 0.0 }
 0x58d   : > { %v3654_v11 = vpop.xlane.xlu1 %3653  ;;  %6140 = vpow2.f32 %v3758_v8  ;;  %v3715_v48 = vsub.f32 %v7663_v7, %v3651_v26  ;;  %v3817_v40 = vsel %vm659_vm5, %v7817_v17, 0.0 }
 0x58e   : > { %v3716_v63 = vsub.f32 %v7660_v59, %v3654_v11  ;;  %6142 = vpow2.f32 %v3760_v29  ;;  %3821 = vadd.xlane.f32.xlu1 %v3820_v9  ;;  %3818 = vadd.xlane.f32.xlu0 %v3817_v40 }
 0x58f   : > { %v7825_v25 = vpop.eup %6132  ;;  %v3762_v27 = vmul.f32 1.442695, %v3715_v48 }
 0x590   : > { %v3764_v61 = vmul.f32 1.442695, %v3716_v63  ;;  %v7827_v42 = vpop.eup %6134  ;;  %v3657_v4 = vpop.xlane.xlu0 %3656  ;;  %v3823_v35 = vsel %vm659_vm5, %v7825_v25, 0.0 }
 0x591   : > { %v3660_v36 = vpop.xlane.xlu1 %3659  ;;  %v3717_v59 = vsub.f32 %v7670_v33, %v3657_v4  ;;  %v3826_v52 = vsel %vm659_vm5, %v7827_v42, 0.0 }
 0x592   : > { %6144 = vpow2.f32 %v3764_v61  ;;  %v3718_v7 = vsub.f32 %v7677_v44, %v3660_v36  ;;  %3827 = vadd.xlane.f32.xlu1 %v3826_v52  ;;  %3824 = vadd.xlane.f32.xlu0 %v3823_v35 }
 0x593   : > { %6146 = vpow2.f32 %v3762_v27  ;;  %v7835_v50 = vpop.eup %6136  ;;  %v3766_v15 = vmul.f32 1.442695, %v3717_v59 }
 0x594   : > { %v3768_v14 = vmul.f32 1.442695, %v3718_v7  ;;  %v7837_v5 = vpop.eup %6138  ;;  %v3663_v29 = vpop.xlane.xlu0 %3662  ;;  %v3832_v11 = vsel %vm659_vm5, %v7835_v50, 0.0 }
 0x595   : > { %v3666_v8 = vpop.xlane.xlu1 %3665  ;;  %6148 = vpow2.f32 %v3766_v15  ;;  %v3719_v33 = vsub.f32 %v7683_v39, %v3663_v29  ;;  %v3829_v26 = vsel %vm659_vm5, %v7837_v5, 0.0 }
 0x596   : > { %v3720_v44 = vsub.f32 %v7680_v6, %v3666_v8  ;;  %6150 = vpow2.f32 %v3768_v14  ;;  %3833 = vadd.xlane.f32.xlu1 %v3832_v11  ;;  %3830 = vadd.xlane.f32.xlu0 %v3829_v26 }
 0x597   : > { %v7845_v9 = vpop.eup %6140  ;;  %v3770_v48 = vmul.f32 1.442695, %v3719_v33 }
 0x598   : > { %v3772_v63 = vmul.f32 1.442695, %v3720_v44  ;;  %v7847_v40 = vpop.eup %6142  ;;  %v3669_v61 = vpop.xlane.xlu0 %3668  ;;  %v3835_v4 = vsel %vm659_vm5, %v7845_v9, 0.0 }
 0x599   : > { %v3672_v27 = vpop.xlane.xlu1 %3671  ;;  %v3721_v6 = vsub.f32 %v7690_v23, %v3669_v61  ;;  %v3838_v36 = vsel %vm659_vm5, %v7847_v40, 0.0 }
 0x59a   : > { %6152 = vpow2.f32 %v3772_v63  ;;  %v3722_v39 = vsub.f32 %v7697_v3, %v3672_v27  ;;  %3839 = vadd.xlane.f32.xlu1 %v3838_v36  ;;  %3836 = vadd.xlane.f32.xlu0 %v3835_v4 }
 0x59b   : > { %6154 = vpow2.f32 %v3770_v48  ;;  %v3774_v59 = vmul.f32 1.442695, %v3721_v6 }
 0x59c   : > { %v7855_v35 = vpop.eup %6144  ;;  %v3776_v7 = vmul.f32 1.442695, %v3722_v39  ;;  %v3675_v14 = vpop.xlane.xlu0 %3674 }
 0x59d   : > { %v7857_v52 = vpop.eup %6146  ;;  %v3678_v15 = vpop.xlane.xlu1 %3677  ;;  %v3844_v8 = vsel %vm659_vm5, %v7855_v35, 0.0  ;;  %6156 = vpow2.f32 %v3774_v59  ;;  %v3723_v23 = vsub.f32 %v7703_v54, %v3675_v14 }
 0x59e   : > { %v3724_v3 = vsub.f32 %v7700_v10, %v3678_v15  ;;  %v3841_v29 = vsel %vm659_vm5, %v7857_v52, 0.0  ;;  %6158 = vpow2.f32 %v3776_v7  ;;  %3845 = vadd.xlane.f32.xlu1 %v3844_v8 }
 0x59f   : > { %3842 = vadd.xlane.f32.xlu0 %v3841_v29  ;;  %v7865_v11 = vpop.eup %6148  ;;  %v3778_v33 = vmul.f32 1.442695, %v3723_v23 }
 0x5a0   : > { %v3780_v44 = vmul.f32 1.442695, %v3724_v3  ;;  %v7867_v26 = vpop.eup %6150  ;;  %v3681_v63 = vpop.xlane.xlu0 %3680  ;;  %v3847_v61 = vsel %vm659_vm5, %v7865_v11, 0.0 }
 0x5a1   : > { %v3684_v48 = vpop.xlane.xlu1 %3683  ;;  %v3725_v10 = vsub.f32 %v7710_v45, %v3681_v63  ;;  %v3850_v27 = vsel %vm659_vm5, %v7867_v26, 0.0 }
 0x5a2   : > { %6160 = vpow2.f32 %v3780_v44  ;;  %v3726_v54 = vsub.f32 %v7717_v28, %v3684_v48  ;;  %3851 = vadd.xlane.f32.xlu1 %v3850_v27 }
 0x5a3   : > { %6162 = vpow2.f32 %v3778_v33  ;;  %3848 = vadd.xlane.f32.xlu0 %v3847_v61  ;;  %v3782_v6 = vmul.f32 1.442695, %v3725_v10 }
 0x5a4   : > { %v7875_v4 = vpop.eup %6152  ;;  %v3784_v39 = vmul.f32 1.442695, %v3726_v54  ;;  %v3687_v7 = vpop.xlane.xlu0 %3686 }
 0x5a5   : > { %v7877_v36 = vpop.eup %6154  ;;  %v3690_v59 = vpop.xlane.xlu1 %3689  ;;  %v3856_v15 = vsel %vm659_vm5, %v7875_v4, 0.0  ;;  %6164 = vpow2.f32 %v3782_v6  ;;  %v3727_v45 = vsub.f32 %v7723_v49, %v3687_v7 }
 0x5a6   : > { %v3728_v28 = vsub.f32 %v7720_v37, %v3690_v59  ;;  %v3853_v14 = vsel %vm659_vm5, %v7877_v36, 0.0  ;;  %6166 = vpow2.f32 %v3784_v39  ;;  %3857 = vadd.xlane.f32.xlu1 %v3856_v15 }
 0x5a7   : > { %3854 = vadd.xlane.f32.xlu0 %v3853_v14  ;;  %v7885_v8 = vpop.eup %6156  ;;  %v3786_v23 = vmul.f32 1.442695, %v3727_v45 }
 0x5a8   : > { %v3788_v3 = vmul.f32 1.442695, %v3728_v28  ;;  %v7887_v29 = vpop.eup %6158  ;;  %v3693_v44 = vpop.xlane.xlu0 %3692  ;;  %v3859_v63 = vsel %vm659_vm5, %v7885_v8, 0.0 }
 0x5a9   : > { %v3696_v33 = vpop.xlane.xlu1 %3695  ;;  %v3729_v37 = vsub.f32 %v7730_v21, %v3693_v44  ;;  %v3862_v48 = vsel %vm659_vm5, %v7887_v29, 0.0 }
 0x5aa   : > { %6168 = vpow2.f32 %v3788_v3  ;;  %v3730_v49 = vsub.f32 %v7737_v31, %v3696_v33  ;;  %3863 = vadd.xlane.f32.xlu1 %v3862_v48 }
 0x5ab   : > { %6170 = vpow2.f32 %v3786_v23  ;;  %3860 = vadd.xlane.f32.xlu0 %v3859_v63  ;;  %v3790_v10 = vmul.f32 1.442695, %v3729_v37 }
 0x5ac   : > { %v7895_v61 = vpop.eup %6160  ;;  %v3792_v54 = vmul.f32 1.442695, %v3730_v49  ;;  %v3699_v6 = vpop.xlane.xlu0 %3698 }
 0x5ad   : > { %v7897_v27 = vpop.eup %6162  ;;  %v3868_v39 = vsel %vm659_vm5, %v7895_v61, 0.0  ;;  %6172 = vpow2.f32 %v3790_v10  ;;  %v3731_v21 = vsub.f32 %v7740_v38, %v3699_v6  ;;  %v6242_v10 = vld [vmem:[%s6770_s6 + $0x8] sm:$0xff]  ;;  %v6243_v6 = vld [vmem:[%s6770_s6 + $0x20] sm:$0xff] }
 0x5ae   : > { %v3865_v31 = vsel %vm659_vm5, %v7897_v27, 0.0  ;;  %6174 = vpow2.f32 %v3792_v54  ;;  %3869 = vadd.xlane.f32.xlu1 %v3868_v39  ;;  %v663_v54 = vsel %vm659_vm5, %v6242_v10, -inf  ;;  %v672_v39 = vsel %vm659_vm5, %v6243_v6, -inf  ;;  %v6250_v10 = vld [vmem:[%s6770_s6 + $0x28] sm:$0xff]  ;;  %v7954_v6 = vpop.permute.xlu1 %4583 }
 0x5af   : > { %3866 = vadd.xlane.f32.xlu0 %v3865_v31  ;;  %v7904_v59 = vpop.eup %6164  ;;  %v3794_v7 = vmul.f32 1.442695, %v3731_v21  ;;  %v6244_v21 = vld [vmem:[%s6770_s6] sm:$0xff] }
 0x5b0   : > { %v7906_v15 = vpop.eup %6166  ;;  %v3871_v28 = vsel %vm659_vm5, %v7904_v59, 0.0  ;;  %v660_v31 = vsel %vm659_vm5, %v6244_v21, -inf }
 0x5b1   : > { %6176 = vpow2.f32 %v3794_v7  ;;  %v3874_v45 = vsel %vm659_vm5, %v7906_v15, 0.0 }
 0x5b2   : > { %3875 = vadd.xlane.f32.xlu1 %v3874_v45  ;;  %v6247_v45 = vld [vmem:[%s6770_s6 + $0x40] sm:$0xff] }
 0x5b3   : > { %3872 = vadd.xlane.f32.xlu0 %v3871_v28 }
 0x5b4   : > { %v7912_v38 = vpop.eup %6168 }
 0x5b5   : > { %v7914_v14 = vpop.eup %6170  ;;  %v3880_v3 = vsel %vm659_vm5, %v7912_v38, 0.0 }
 0x5b6   : > { %v3877_v23 = vsel %vm659_vm5, %v7914_v14, 0.0  ;;  %3881 = vadd.xlane.f32.xlu1 %v3880_v3  ;;  %v684_v3 = vsel %vm659_vm5, %v6247_v45, -inf }
 0x5b7   : > { %3878 = vadd.xlane.f32.xlu0 %v3877_v23  ;;  %v7920_v44 = vpop.eup %6172  ;;  %v6248_v23 = vld [vmem:[%s6770_s6 + $0x18] sm:$0xff] }
 0x5b8   : > { %v7922_v33 = vpop.eup %6174  ;;  %v3883_v63 = vsel %vm659_vm5, %v7920_v44, 0.0 }
 0x5b9   : > { %v3886_v37 = vsel %vm659_vm5, %v7922_v33, 0.0 }
 0x5ba   : > { %3887 = vadd.xlane.f32.xlu1 %v3886_v37  ;;  %v6249_v37 = vld [vmem:[%s6770_s6 + $0x50] sm:$0xff] }
 0x5bb   : > { %3884 = vadd.xlane.f32.xlu0 %v3883_v63  ;;  %v7928_v49 = vpop.eup %6176  ;;  %v669_v63 = vsel %vm659_vm5, %v6248_v23, -inf }
 0x5bc   : > { %v3889_v48 = vsel %vm659_vm5, %v7928_v49, 0.0 }
 0x5bf   : > { %3890 = vadd.xlane.f32.xlu0 %v3889_v48  ;;  %v690_v48 = vsel %vm659_vm5, %v6249_v37, -inf  ;;  %v6255_v37 = vld [vmem:[%s6770_s6 + $0x80] sm:$0xff] }
 0x5cb   : > { %4677 = vrot.lane.b32.xlu1 %v6560_v60, %s6289_s9  ;;  %v6245_v60 = vld [vmem:[%s6770_s6 + $0x30] sm:$0xff] }
 0x5cc   : > { %v678_v7 = vsel %vm659_vm5, %v6245_v60, -inf }
 0x5d5   : > { %4630 = vrot.lane.b32.xlu0 %v6564_v62, %s6289_s9  ;;  %v6246_v62 = vld [vmem:[%s6770_s6 + $0x10] sm:$0xff] }
 0x5d6   : > { %v666_v28 = vsel %vm659_vm5, %v6246_v62, -inf }
 0x5ef   : > { %664 = vmax.xlane.f32.xlu1 %v663_v54  ;;  %v675_v54 = vsel %vm659_vm5, %v6250_v10, -inf  ;;  %v6256_v10 = vld [vmem:[%s6770_s6 + $0x58] sm:$0xff] }
 0x5f3   : > { %673 = vmax.xlane.f32.xlu1 %v672_v39  ;;  %v6251_v39 = vld [vmem:[%s6770_s6 + $0x60] sm:$0xff] }
 0x5f4   : > { %661 = vmax.xlane.f32.xlu0 %v660_v31  ;;  %v696_v21 = vsel %vm659_vm5, %v6251_v39, -inf  ;;  %v6252_v31 = vld [vmem:[%s6770_s6 + $0x38] sm:$0xff]  ;;  %v6257_v39 = vld [vmem:[%s6770_s6 + $0x90] sm:$0xff] }
 0x5f5   : > { %v681_v60 = vsel %vm659_vm5, %v6252_v31, -inf  ;;  %v6258_v31 = vld [vmem:[%s6770_s6 + $0x68] sm:$0xff] }
 0x5f7   : > { %679 = vmax.xlane.f32.xlu1 %v678_v7  ;;  %v7960_v7 = vpop.permute.xlu0 %4536 }
 0x5f8   : > { %667 = vmax.xlane.f32.xlu0 %v666_v28  ;;  %v6253_v28 = vld [vmem:[%s6770_s6 + $0x70] sm:$0xff] }
 0x5f9   : > { %v702_v45 = vsel %vm659_vm5, %v6253_v28, -inf }
 0x5fb   : > { %685 = vmax.xlane.f32.xlu1 %v684_v3  ;;  %v6254_v3 = vld [vmem:[%s6770_s6 + $0x48] sm:$0xff] }
 0x5fc   : > { %670 = vmax.xlane.f32.xlu0 %v669_v63  ;;  %v687_v23 = vsel %vm659_vm5, %v6254_v3, -inf  ;;  %v6259_v3 = vld [vmem:[%s6770_s6 + $0xa0] sm:$0xff] }
 0x5ff   : > { %691 = vmax.xlane.f32.xlu1 %v690_v48  ;;  %v708_v48 = vsel %vm659_vm5, %v6255_v37, -inf }
 0x600   : > { %676 = vmax.xlane.f32.xlu0 %v675_v54  ;;  %v693_v54 = vsel %vm659_vm5, %v6256_v10, -inf }
 0x603   : > { %697 = vmax.xlane.f32.xlu1 %v696_v21  ;;  %v3798_v62 = vpop.xlane.xlu1 %3797  ;;  %v714_v21 = vsel %vm659_vm5, %v6257_v39, -inf }
 0x604   : > { %682 = vmax.xlane.f32.xlu0 %v681_v60  ;;  %6178 = vrcp.f32 %v3798_v62  ;;  %v699_v60 = vsel %vm659_vm5, %v6258_v31, -inf  ;;  %v6261_v31 = vld [vmem:[%s6770_s6 + $0xb0] sm:$0xff] }
 0x605   : > { %v3801_v63 = vpop.xlane.xlu0 %3800 }
 0x606   : > { %6180 = vrcp.f32 %v3801_v63  ;;  %v6260_v63 = vld [vmem:[%s6770_s6 + $0x78] sm:$0xff] }
 0x607   : > { %703 = vmax.xlane.f32.xlu1 %v702_v45  ;;  %v705_v37 = vsel %vm659_vm5, %v6260_v63, -inf }
 0x608   : > { %688 = vmax.xlane.f32.xlu0 %v687_v23  ;;  %v720_v23 = vsel %vm659_vm5, %v6259_v3, -inf  ;;  %v6262_v3 = vld [vmem:[%s6770_s6 + $0x88] sm:$0xff] }
 0x609   : > { %v711_v16 = vsel %vm659_vm5, %v6262_v3, -inf }
 0x60b   : > { %709 = vmax.xlane.f32.xlu1 %v708_v48 }
 0x60c   : > { %694 = vmax.xlane.f32.xlu0 %v693_v54 }
 0x60e   : > { %v6179_v62 = vpop.eup %6178  ;;  %v3804_v28 = vpop.xlane.xlu1 %3803 }
 0x60f   : > { %715 = vmax.xlane.f32.xlu1 %v714_v21  ;;  %v3924_v48 = vmul.f32 %v6179_v62, %v7776_v0  ;;  %6182 = vrcp.f32 %v3804_v28  ;;  %v6263_v62 = vld [vmem:[%s6770_s6 + $0xc0] sm:$0xff] }
 0x610   : > { %700 = vmax.xlane.f32.xlu0 %v699_v60  ;;  %v6181_v45 = vpop.eup %6180  ;;  %v726_v60 = vsel %vm659_vm5, %v6261_v31, -inf  ;;  %v732_v28 = vsel %vm659_vm5, %v6263_v62, -inf }
 0x611   : > { %v3925_v10 = vmul.f32 %v6181_v45, %v7781_v19  ;;  %v6264_v45 = vld [vmem:[%s6770_s6 + $0x98] sm:$0xff] }
 0x612   : > { %v3810_v54 = vpop.xlane.xlu1 %3809  ;;  %v3807_v39 = vpop.xlane.xlu0 %3806 }
 0x613   : > { %721 = vmax.xlane.f32.xlu1 %v720_v23  ;;  %v3956_v21 = vpack.c.bf16 %v3925_v10, %v3924_v48  ;;  %6184 = vrcp.f32 %v3807_v39  ;;  %v717_v23 = vsel %vm659_vm5, %v6264_v45, -inf  ;;  %v6265_v48 = vld [vmem:[%s6770_s6 + $0xd0] sm:$0xff]  ;;  %v6266_v10 = vld [vmem:[%s6770_s6 + $0xa8] sm:$0xff] }
 0x614   : > { %706 = vmax.xlane.f32.xlu0 %v705_v37  ;;  %6186 = vrcp.f32 %v3810_v54  ;;  %v723_v54 = vsel %vm659_vm5, %v6266_v10, -inf  ;;  %v6270_v10 = vld [vmem:[%s6770_s6 + $0xc8] sm:$0xff] }
 0x615   : > { %5858 = vmatmul.mubr.msk.bf16.vlgmr.msra.gmra.mrb[112].mxu0 %vm659_vm5, %v3956_v21 }
 0x616   : > { %5868 = vmatpush3.bf16.msra.mxu0 %v7752_v20  ;;  %v3813_v0 = vpop.xlane.xlu0 %3812  ;;  %5869 = vmatprep.mubr.msk.bf16.mxu0 %vm6283_vm2, %v8712_v22 }
 0x617   : > { %727 = vmax.xlane.f32.xlu1 %v726_v60  ;;  %v3816_v19 = vpop.xlane.xlu1 %3815  ;;  %6188 = vrcp.f32 %v3813_v0  ;;  %5879 = vmatprep.subr.bf16.mxu0 %v8712_v22 }
 0x618   : > { %712 = vmax.xlane.f32.xlu0 %v711_v16  ;;  %6190 = vrcp.f32 %v3816_v19  ;;  %v738_v16 = vsel %vm659_vm5, %v6265_v48, -inf  ;;  %v6267_v19 = vld [vmem:[%s6770_s6 + $0xe0] sm:$0xff]  ;;  %v6269_v48 = vld [vmem:[%s6770_s6 + $0xf0] sm:$0xff] }
 0x619   : > { %v6183_v37 = vpop.eup %6182  ;;  %v744_v62 = vsel %vm659_vm5, %v6267_v19, -inf }
 0x61a   : > { %v3926_v31 = vmul.f32 %v6183_v37, %v7789_v58 }
 0x61b   : > { %733 = vmax.xlane.f32.xlu1 %v732_v28  ;;  %v3822_v20 = vpop.xlane.xlu1 %3821  ;;  %v3819_v63 = vpop.xlane.xlu0 %3818  ;;  %v6268_v28 = vld [vmem:[%s6770_s6 + $0xb8] sm:$0xff] }
 0x61c   : > { %718 = vmax.xlane.f32.xlu0 %v717_v23  ;;  %6192 = vrcp.f32 %v3819_v63  ;;  %v729_v45 = vsel %vm659_vm5, %v6268_v28, -inf }
 0x61d   : > { %v6185_v39 = vpop.eup %6184  ;;  %6194 = vrcp.f32 %v3822_v20 }
 0x61e   : > { %v6187_v21 = vpop.eup %6186  ;;  %v3927_v60 = vmul.f32 %v6185_v39, %v7797_v30 }
 0x61f   : > { %739 = vmax.xlane.f32.xlu1 %v738_v16  ;;  %v3828_v3 = vpop.xlane.xlu1 %3827  ;;  %v3825_v0 = vpop.xlane.xlu0 %3824  ;;  %v3928_v58 = vmul.f32 %v6187_v21, %v7793_v55  ;;  %v750_v16 = vsel %vm659_vm5, %v6269_v48, -inf }
 0x620   : > { %724 = vmax.xlane.f32.xlu0 %v723_v54  ;;  %6196 = vrcp.f32 %v3825_v0  ;;  %v3957_v63 = vpack.c.bf16 %v3927_v60, %v3926_v31  ;;  %v735_v54 = vsel %vm659_vm5, %v6270_v10, -inf }
 0x621   : > { %v6189_v23 = vpop.eup %6188  ;;  %6198 = vrcp.f32 %v3828_v3 }
 0x622   : > { %v3929_v30 = vmul.f32 %v6189_v23, %v7805_v53  ;;  %5864 = vmatmul.mubr.msk.bf16.vlgmr.msra.gmra.mrb[112].mxu1 %vm659_vm5, %v3957_v63  ;;  %v6191_v31 = vpop.eup %6190  ;;  %v6272_v23 = vld [vmem:[%s6770_s6 + $0xe8] sm:$0xff] }
 0x623   : > { %745 = vmax.xlane.f32.xlu1 %v744_v62  ;;  %v3834_v20 = vpop.xlane.xlu1 %3833  ;;  %v3831_v37 = vpop.xlane.xlu0 %3830  ;;  %5874 = vmatpush3.bf16.msra.mxu1 %v7756_v1  ;;  %v3930_v60 = vmul.f32 %v6191_v31, %v7807_v56  ;;  %v6271_v1 = vld [vmem:[%s6770_s6 + $0xd8] sm:$0xff]  ;;  %v747_v63 = vsel %vm659_vm5, %v6272_v23, -inf }
 0x624   : > { %730 = vmax.xlane.f32.xlu0 %v729_v45  ;;  %v3958_v39 = vpack.c.bf16 %v3929_v30, %v3928_v58  ;;  %6200 = vrcp.f32 %v3831_v37  ;;  %5875 = vmatprep.mubr.msk.bf16.mxu1 %vm6283_vm2, %v8712_v22  ;;  %v741_v0 = vsel %vm659_vm5, %v6271_v1, -inf }
 0x625   : > { %5885 = vmatprep.subr.bf16.mxu1 %v8712_v22  ;;  %6202 = vrcp.f32 %v3834_v20 }
 0x626   : > { %5870 = vmatmul.mubr.msk.bf16.vlgmr.msra.gmra.mrb[116].mxu0 %vm659_vm5, %v3958_v39  ;;  %v6193_v55 = vpop.eup %6192 }
 0x627   : > { %751 = vmax.xlane.f32.xlu1 %v750_v16  ;;  %v3840_v53 = vpop.xlane.xlu1 %3839  ;;  %v3837_v21 = vpop.xlane.xlu0 %3836  ;;  %v3931_v3 = vmul.f32 %v6193_v55, %v7817_v17  ;;  %5880 = vmatpush3.bf16.msra.mxu0 %v7754_v18  ;;  %v6273_v16 = vld [vmem:[%s6770_s6 + $0xf8] sm:$0xff] }
 0x628   : > { %736 = vmax.xlane.f32.xlu0 %v735_v54  ;;  %5881 = vmatprep.mubr.msk.bf16.mxu0 %vm6283_vm2, %v8712_v22  ;;  %v6195_v19 = vpop.eup %6194  ;;  %6204 = vrcp.f32 %v3837_v21 }
 0x629   : > { %5891 = vmatprep.subr.bf16.mxu0 %v8712_v22  ;;  %v3959_v62 = vpack.c.bf16 %v3931_v3, %v3930_v60  ;;  %6206 = vrcp.f32 %v3840_v53  ;;  %v3932_v17 = vmul.f32 %v6195_v19, %v7815_v47 }
 0x62a   : > { %v6197_v28 = vpop.eup %6196 }
 0x62b   : > { %v3846_v45 = vpop.xlane.xlu1 %3845  ;;  %v3933_v18 = vmul.f32 %v6197_v28, %v7825_v25  ;;  %5876 = vmatmul.mubr.msk.bf16.vlgmr.msra.gmra.mrb[116].mxu1 %vm659_vm5, %v3959_v62  ;;  %v6199_v58 = vpop.eup %6198 }
 0x62c   : > { %742 = vmax.xlane.f32.xlu0 %v741_v0  ;;  %v3843_v56 = vpop.xlane.xlu0 %3842  ;;  %5886 = vmatpush3.bf16.msra.mxu1 %v7760_v12  ;;  %v3934_v37 = vmul.f32 %v6199_v58, %v7827_v42  ;;  %v753_v12 = vsel %vm659_vm5, %v6273_v16, -inf }
 0x62d   : > { %6208 = vrcp.f32 %v3843_v56  ;;  %5887 = vmatprep.mubr.msk.bf16.mxu1 %vm6283_vm2, %v8712_v22  ;;  %v3960_v30 = vpack.c.bf16 %v3933_v18, %v3932_v17  ;;  %5897 = vmatprep.subr.bf16.mxu1 %v8712_v22 }
 0x62e   : > { %v6201_v20 = vpop.eup %6200  ;;  %6210 = vrcp.f32 %v3846_v45  ;;  %v8800_v45 = vld [vmem:[#allocation4_spill] sm:$0xff] }
 0x62f   : > { %v3852_v47 = vpop.xlane.xlu1 %3851  ;;  %v3935_v48 = vmul.f32 %v6201_v20, %v7837_v5  ;;  %5882 = vmatmul.mubr.msk.bf16.vlgmr.msra.gmra.mrb[120].mxu0 %vm659_vm5, %v3960_v30  ;;  %v6203_v10 = vpop.eup %6202 }
 0x630   : > { %748 = vmax.xlane.f32.xlu0 %v747_v63  ;;  %v3849_v25 = vpop.xlane.xlu0 %3848  ;;  %5892 = vmatpush3.bf16.msra.mxu0 %v7758_v2  ;;  %v3936_v31 = vmul.f32 %v6203_v10, %v7835_v50  ;;  %v8801_v63 = vld [vmem:[#allocation9_spill] sm:$0xff] }
 0x631   : > { %6212 = vrcp.f32 %v3849_v25  ;;  %5893 = vmatprep.mubr.msk.bf16.mxu0 %vm6283_vm2, %v8712_v22  ;;  %v3961_v54 = vpack.c.bf16 %v3935_v48, %v3934_v37  ;;  %5903 = vmatprep.subr.bf16.mxu0 %v8712_v22  ;;  %v8802_v25 = vld [vmem:[#allocation8_spill] sm:$0xff]  ;;  %v8803_v10 = vld [vmem:[#allocation13_spill] sm:$0xff] }
 0x632   : > { %v6205_v39 = vpop.eup %6204  ;;  %6214 = vrcp.f32 %v3852_v47 }
 0x633   : > { %v3858_v42 = vpop.xlane.xlu1 %3857  ;;  %v3937_v55 = vmul.f32 %v6205_v39, %v7845_v9  ;;  %5888 = vmatmul.mubr.msk.bf16.vlgmr.msra.gmra.mrb[120].mxu1 %vm659_vm5, %v3961_v54  ;;  %v6207_v53 = vpop.eup %6206  ;;  %v8804_v54 = vld [vmem:[#allocation2_spill] sm:$0xff] }
 0x634   : > { %754 = vmax.xlane.f32.xlu0 %v753_v12  ;;  %v3855_v5 = vpop.xlane.xlu0 %3854  ;;  %5898 = vmatpush3.bf16.msra.mxu1 %v7764_v41  ;;  %v3938_v50 = vmul.f32 %v6207_v53, %v7847_v40  ;;  %v8799_v41 = vld [vmem:[#allocation3_spill] sm:$0xff] }
 0x635   : > { %6216 = vrcp.f32 %v3855_v5  ;;  %5899 = vmatprep.mubr.msk.bf16.mxu1 %vm6283_vm2, %v8712_v22  ;;  %v3962_v2 = vpack.c.bf16 %v3937_v55, %v3936_v31  ;;  %5909 = vmatprep.subr.bf16.mxu1 %v8712_v22  ;;  %v8806_v55 = vld [vmem:[#allocation5_spill] sm:$0xff] }
 0x636   : > { %6218 = vrcp.f32 %v3858_v42 }
 0x637   : > { %v6209_v21 = vpop.eup %6208  ;;  %v3864_v60 = vpop.xlane.xlu1 %3863  ;;  %5894 = vmatmul.mubr.msk.bf16.vlgmr.msra.gmra.mrb[124].mxu0 %vm659_vm5, %v3962_v2 }
 0x638   : > { %v3861_v3 = vpop.xlane.xlu0 %3860  ;;  %v3939_v9 = vmul.f32 %v6209_v21, %v7857_v52  ;;  %5014 = vrot.lane.b32.xlu1 %v8799_v41, %s6290_s10  ;;  %v6211_v1 = vpop.eup %6210  ;;  %5904 = vmatpush3.bf16.msra.mxu0 %v7762_v43 }
 0x639   : > { %6220 = vrcp.f32 %v3861_v3  ;;  %5905 = vmatprep.mubr.msk.bf16.mxu0 %vm6283_vm2, %v8712_v22  ;;  %5915 = vmatprep.subr.bf16.mxu0 %v8712_v22  ;;  %v3940_v62 = vmul.f32 %v6211_v1, %v7855_v35  ;;  %v8808_v3 = vld [vmem:[#allocation6_spill] sm:$0xff] }
 0x63a   : > { %v3963_v0 = vpack.c.bf16 %v3939_v9, %v3938_v50  ;;  %6222 = vrcp.f32 %v3864_v60  ;;  %v8807_v60 = vld [vmem:[#allocation17_spill] sm:$0xff] }
 0x63b   : > { %v6213_v19 = vpop.eup %6212  ;;  %v3870_v40 = vpop.xlane.xlu1 %3869 }
 0x63c   : > { %v3867_v52 = vpop.xlane.xlu0 %3866  ;;  %v3941_v28 = vmul.f32 %v6213_v19, %v7865_v11  ;;  %5900 = vmatmul.mubr.msk.bf16.vlgmr.msra.gmra.mrb[124].mxu1 %vm659_vm5, %v3963_v0  ;;  %5018 = vrot.lane.b32.xlu1 %v8800_v45, %s6290_s10  ;;  %v6215_v43 = vpop.eup %6214  ;;  %v8809_v0 = vld [vmem:[#allocation16_spill] sm:$0xff]  ;;  %v8810_v19 = vld [vmem:[#allocation7_spill] sm:$0xff] }
 0x63d   : > { %5910 = vmatpush3.bf16.msra.mxu1 %v7768_v32  ;;  %6224 = vrcp.f32 %v3867_v52  ;;  %5911 = vmatprep.mubr.msk.bf16.mxu1 %vm6283_vm2, %v8712_v22  ;;  %v3942_v11 = vmul.f32 %v6215_v43, %v7867_v26  ;;  %v8813_v43 = vld [vmem:[#allocation21_spill] sm:$0xff] }
 0x63e   : > { %v3964_v56 = vpack.c.bf16 %v3941_v28, %v3940_v62  ;;  %5921 = vmatprep.subr.bf16.mxu1 %v8712_v22  ;;  %6226 = vrcp.f32 %v3870_v40  ;;  %v8812_v28 = vld [vmem:[#allocation11_spill] sm:$0xff] }
 0x63f   : > { %v6217_v17 = vpop.eup %6216  ;;  %v3876_v35 = vpop.xlane.xlu1 %3875 }
 0x640   : > { %v3873_v18 = vpop.xlane.xlu0 %3872  ;;  %v3943_v23 = vmul.f32 %v6217_v17, %v7877_v36  ;;  %5906 = vmatmul.mubr.msk.bf16.vlgmr.msra.gmra.mrb[128].mxu0 %vm659_vm5, %v3964_v56  ;;  %5022 = vrot.lane.b32.xlu1 %v8801_v63, %s6290_s10  ;;  %v6219_v32 = vpop.eup %6218  ;;  %v8817_v56 = vld [vmem:[#allocation27_spill] sm:$0xff]  ;;  %v8818_v17 = vld [vmem:[#allocation14_spill] sm:$0xff]  ;;  %v8823_v63 = vld [vmem:[#allocation40_spill] sm:$0xff] }
 0x641   : > { %5916 = vmatpush3.bf16.msra.mxu0 %v7766_v51  ;;  %6228 = vrcp.f32 %v3873_v18  ;;  %5917 = vmatprep.mubr.msk.bf16.mxu0 %vm6283_vm2, %v8712_v22  ;;  %v3944_v36 = vmul.f32 %v6219_v32, %v7875_v4  ;;  %v8820_v18 = vld [vmem:[#allocation20_spill] sm:$0xff]  ;;  %v8824_v32 = vld [vmem:[#allocation26_spill] sm:$0xff] }
 0x642   : > { %v3965_v58 = vpack.c.bf16 %v3943_v23, %v3942_v11  ;;  %5927 = vmatprep.subr.bf16.mxu0 %v8712_v22  ;;  %6230 = vrcp.f32 %v3876_v35  ;;  %v8819_v35 = vld [vmem:[#allocation34_spill] sm:$0xff]  ;;  %v8821_v11 = vld [vmem:[#allocation33_spill] sm:$0xff]  ;;  %v8822_v23 = vld [vmem:[#allocation19_spill] sm:$0xff] }
 0x643   : > { %v6221_v30 = vpop.eup %6220  ;;  %v3882_v26 = vpop.xlane.xlu1 %3881 }
 0x644   : > { %v3879_v20 = vpop.xlane.xlu0 %3878  ;;  %v3945_v47 = vmul.f32 %v6221_v30, %v7885_v8  ;;  %5912 = vmatmul.mubr.msk.bf16.vlgmr.msra.gmra.mrb[128].mxu1 %vm659_vm5, %v3965_v58  ;;  %5026 = vrot.lane.b32.xlu1 %v8802_v25, %s6290_s10  ;;  %v6223_v51 = vpop.eup %6222  ;;  %v8825_v58 = vld [vmem:[#allocation25_spill] sm:$0xff]  ;;  %v8826_v30 = vld [vmem:[#allocation32_spill] sm:$0xff] }
 0x645   : > { %5922 = vmatpush3.bf16.msra.mxu1 %v7770_v24  ;;  %6232 = vrcp.f32 %v3879_v20  ;;  %5923 = vmatprep.mubr.msk.bf16.mxu1 %vm6283_vm2, %v8712_v22  ;;  %v3946_v8 = vmul.f32 %v6223_v51, %v7887_v29  ;;  %v8828_v20 = vld [vmem:[#allocation38_spill] sm:$0xff] }
 0x646   : > { %v3966_v37 = vpack.c.bf16 %v3945_v47, %v3944_v36  ;;  %5933 = vmatprep.subr.bf16.mxu1 %v8712_v22  ;;  %6234 = vrcp.f32 %v3882_v26  ;;  %v8827_v26 = vld [vmem:[#allocation31_spill] sm:$0xff] }
 0x647   : > { %v6225_v48 = vpop.eup %6224  ;;  %v3888_v4 = vpop.xlane.xlu1 %3887 }
 0x648   : > { %v3885_v16 = vpop.xlane.xlu0 %3884  ;;  %v3947_v12 = vmul.f32 %v6225_v48, %v7897_v27  ;;  %5918 = vmatmul.mubr.msk.bf16.vlgmr.msra.gmra.mrb[132].mxu0 %vm659_vm5, %v3966_v37  ;;  %5030 = vrot.lane.b32.xlu1 %v8803_v10, %s6290_s10  ;;  %v6227_v24 = vpop.eup %6226 }
 0x649   : > { %5928 = vmatpush3.bf16.msra.mxu0 %v7960_v7  ;;  %6236 = vrcp.f32 %v3885_v16  ;;  %5929 = vmatprep.mubr.msk.bf16.mxu0 %vm6283_vm2, %v8712_v22  ;;  %v3948_v42 = vmul.f32 %v6227_v24, %v7895_v61  ;;  %v8805_v7 = vld [vmem:[#allocation12_spill] sm:$0xff] }
 0x64a   : > { %5012 = vrot.lane.b32.xlu0 %v8804_v54, %s6290_s10  ;;  %6238 = vrcp.f32 %v3888_v4  ;;  %v3967_v39 = vpack.c.bf16 %v3947_v12, %v3946_v8  ;;  %5939 = vmatprep.subr.bf16.mxu0 %v8712_v22 }
 0x64b   : > { %v6229_v29 = vpop.eup %6228  ;;  %v4678_v1 = vpop.permute.xlu1 %4677 }
 0x64c   : > { %v3891_v27 = vpop.xlane.xlu0 %3890  ;;  %v3949_v5 = vmul.f32 %v6229_v29, %v7904_v59  ;;  %5924 = vmatmul.mubr.msk.bf16.vlgmr.msra.gmra.mrb[132].mxu1 %vm659_vm5, %v3967_v39  ;;  %5034 = vrot.lane.b32.xlu1 %v8805_v7, %s6290_s10  ;;  %v6231_v31 = vpop.eup %6230 }
 0x64d   : > { %6240 = vrcp.f32 %v3891_v27  ;;  %5934 = vmatpush3.bf16.msra.mxu1 %v7954_v6  ;;  %5935 = vmatprep.mubr.msk.bf16.mxu1 %vm6283_vm2, %v8712_v22  ;;  %v3950_v2 = vmul.f32 %v6231_v31, %v7906_v15 }
 0x64e   : > { %5016 = vrot.lane.b32.xlu0 %v8806_v55, %s6290_s10  ;;  %v3968_v53 = vpack.c.bf16 %v3949_v5, %v3948_v42  ;;  %5945 = vmatprep.subr.bf16.mxu1 %v8712_v22 }
 0x64f   : > { %v6233_v61 = vpop.eup %6232 }
 0x650   : > { %v4631_v59 = vpop.permute.xlu0 %4630  ;;  %v3951_v21 = vmul.f32 %v6233_v61, %v7914_v14  ;;  %5930 = vmatmul.mubr.msk.bf16.vlgmr.msra.gmra.mrb[136].mxu0 %vm659_vm5, %v3968_v53  ;;  %5038 = vrot.lane.b32.xlu1 %v8807_v60, %s6290_s10  ;;  %v6235_v6 = vpop.eup %6234 }
 0x651   : > { %5940 = vmatpush3.bf16.msra.mxu0 %v4631_v59  ;;  %5941 = vmatprep.mubr.msk.bf16.mxu0 %vm6283_vm2, %v8712_v22  ;;  %v3952_v15 = vmul.f32 %v6235_v6, %v7912_v38 }
 0x652   : > { %5020 = vrot.lane.b32.xlu0 %v8808_v3, %s6290_s10  ;;  %v3969_v50 = vpack.c.bf16 %v3951_v21, %v3950_v2 }
 0x653   : > { %v6237_v9 = vpop.eup %6236 }
 0x654   : > { %v6239_v41 = vpop.eup %6238  ;;  %v3953_v14 = vmul.f32 %v6237_v9, %v7920_v44  ;;  %5936 = vmatmul.mubr.msk.bf16.vlgmr.msra.gmra.mrb[136].mxu1 %vm659_vm5, %v3969_v50  ;;  %5042 = vrot.lane.b32.xlu1 %v8809_v0, %s6290_s10  ;;  %v8811_v44 = vld [vmem:[#allocation22_spill] sm:$0xff] }
 0x655   : > { %5946 = vmatpush3.bf16.msra.mxu1 %v4678_v1  ;;  %5947 = vmatprep.mubr.msk.bf16.mxu1 %vm6283_vm2, %v8712_v22  ;;  %v3954_v62 = vmul.f32 %v6239_v41, %v7922_v33  ;;  %v8814_v22 = vld [vmem:[#allocation10_spill] sm:$0xff]  ;;  %v8815_v33 = vld [vmem:[#allocation28_spill] sm:$0xff] }
 0x656   : > { %5024 = vrot.lane.b32.xlu0 %v8810_v19, %s6290_s10  ;;  %v3970_v52 = vpack.c.bf16 %v3953_v14, %v3952_v15 }
 0x657   : > { %v6241_v40 = vpop.eup %6240 }
 0x658   : > { %v3955_v38 = vmul.f32 %v6241_v40, %v7928_v49  ;;  %5942 = vmatmul.mubr.msk.bf16.vlgmr.msra.gmra.mrb[140].mxu0 %vm659_vm5, %v3970_v52  ;;  %5046 = vrot.lane.b32.xlu1 %v8811_v44, %s6290_s10  ;;  %v8816_v49 = vld [vmem:[#allocation15_spill] sm:$0xff] }
 0x65a   : > { %5028 = vrot.lane.b32.xlu0 %v8812_v28, %s6290_s10  ;;  %v3971_v45 = vpack.c.bf16 %v3955_v38, %v3954_v62 }
 0x65c   : > { %5948 = vmatmul.mubr.msk.bf16.vlgmr.msra.gmra.mrb[140].mxu1 %vm659_vm5, %v3971_v45  ;;  %5050 = vrot.lane.b32.xlu1 %v8813_v43, %s6290_s10 }
 0x65e   : > { %5032 = vrot.lane.b32.xlu0 %v8814_v22, %s6290_s10 }
 0x660   : > { %5054 = vrot.lane.b32.xlu1 %v8815_v33, %s6290_s10 }
 0x662   : > { %5036 = vrot.lane.b32.xlu0 %v8816_v49, %s6290_s10 }
 0x664   : > { %5058 = vrot.lane.b32.xlu1 %v8817_v56, %s6290_s10 }
 0x666   : > { %5040 = vrot.lane.b32.xlu0 %v8818_v17, %s6290_s10 }
 0x668   : > { %5062 = vrot.lane.b32.xlu1 %v8819_v35, %s6290_s10 }
 0x66a   : > { %5044 = vrot.lane.b32.xlu0 %v8820_v18, %s6290_s10 }
 0x66c   : > { %5066 = vrot.lane.b32.xlu1 %v8821_v11, %s6290_s10 }
 0x66e   : > { %5048 = vrot.lane.b32.xlu0 %v8822_v23, %s6290_s10 }
 0x670   : > { %5070 = vrot.lane.b32.xlu1 %v8823_v63, %s6290_s10 }
 0x672   : > { %5052 = vrot.lane.b32.xlu0 %v8824_v32, %s6290_s10 }
 0x676   : > { %5056 = vrot.lane.b32.xlu0 %v8825_v58, %s6290_s10 }
 0x67a   : > { %5060 = vrot.lane.b32.xlu0 %v8826_v30, %s6290_s10 }
 0x67c   : > { %v8168_v25 = vpop.xlane.xlu1 %664 }
 0x67d   : > { %vm757_vm10 = vcmp.gt.f32.partialorder %v8168_v25, 0.0 }
 0x67e   : > { %5064 = vrot.lane.b32.xlu0 %v8827_v26, %s6290_s10 }
 0x680   : > { %v8172_v37 = vpop.xlane.xlu1 %673 }
 0x681   : > { %v8164_v36 = vpop.xlane.xlu0 %661  ;;  %vm760_vm12 = vcmp.gt.f32.partialorder %v8172_v37, 0.0 }
 0x682   : > { %5068 = vrot.lane.b32.xlu0 %v8828_v20, %s6290_s10  ;;  %vm756_vm2 = vcmp.gt.f32.partialorder %v8164_v36, 0.0 }
 0x684   : > { %v8176_v4 = vpop.xlane.xlu1 %679 }
 0x685   : > { %v8166_v47 = vpop.xlane.xlu0 %667  ;;  %vm762_vm14 = vcmp.gt.f32.partialorder %v8176_v4, 0.0 }
 0x686   : > { %vm758_vm11 = vcmp.gt.f32.partialorder %v8166_v47, 0.0 }
 0x688   : > { %v8180_v8 = vpop.xlane.xlu1 %685 }
 0x689   : > { %v8170_v51 = vpop.xlane.xlu0 %670  ;;  %vm764_vm0 = vcmp.gt.f32.partialorder %v8180_v8, 0.0 }
 0x68a   : > { %vm759_vm13 = vcmp.gt.f32.partialorder %v8170_v51, 0.0 }
 0x68c   : > { %v8184_v10 = vpop.xlane.xlu1 %691 }
 0x68d   : > { %v8174_v48 = vpop.xlane.xlu0 %676  ;;  %vm766_vm4 = vcmp.gt.f32.partialorder %v8184_v10, 0.0 }
 0x68e   : > { %vm761_vm15 = vcmp.gt.f32.partialorder %v8174_v48, 0.0 }
 0x690   : > { %v8188_v54 = vpop.xlane.xlu1 %697 }
 0x691   : > { %v8178_v16 = vpop.xlane.xlu0 %682  ;;  %vm768_vm7 = vcmp.gt.f32.partialorder %v8188_v54, 0.0 }
 0x692   : > { %vm763_vm3 = vcmp.gt.f32.partialorder %v8178_v16, 0.0 }
 0x694   : > { %v8192_v29 = vpop.xlane.xlu1 %703 }
 0x695   : > { %v8182_v12 = vpop.xlane.xlu0 %688  ;;  %vm770_vm9 = vcmp.gt.f32.partialorder %v8192_v29, 0.0 }
 0x696   : > { %vm765_vm6 = vcmp.gt.f32.partialorder %v8182_v12, 0.0 }
 0x698   : > { %v8196_v42 = vpop.xlane.xlu1 %709 }
 0x699   : > { %v8186_v24 = vpop.xlane.xlu0 %694 }
 0x69a   : > { %vm767_vm8 = vcmp.gt.f32.partialorder %v8186_v24, 0.0 }
 0x69c   : > { %v8200_v7 = vpop.xlane.xlu1 %715 }
 0x69d   : > { %v8190_v39 = vpop.xlane.xlu0 %700 }
 0x6a0   : > { %v8204_v55 = vpop.xlane.xlu1 %721 }
 0x6a1   : > { %v8194_v27 = vpop.xlane.xlu0 %706 }
 0x6a4   : > { %v8208_v61 = vpop.xlane.xlu1 %727 }
 0x6a5   : > { %v8198_v5 = vpop.xlane.xlu0 %712 }
 0x6a8   : > { %v8213_v6 = vpop.xlane.xlu1 %733 }
 0x6a9   : > { %v8202_v31 = vpop.xlane.xlu0 %718 }
 0x6ac   : > { %v8218_v9 = vpop.xlane.xlu1 %739 }
 0x6ad   : > { %v8206_v53 = vpop.xlane.xlu0 %724 }
 0x6b0   : > { %v8222_v14 = vpop.xlane.xlu1 %745 }
 0x6b1   : > { %v8210_v59 = vpop.xlane.xlu0 %730  ;;  %8831 = vst [vmem:[#allocation54_spill] sm:$0xff] %v8222_v14 }
 0x6b4   : > { %v8229_v28 = vpop.xlane.xlu1 %751 }
 0x6b5   : > { %v8216_v50 = vpop.xlane.xlu0 %736  ;;  %8833 = vst [vmem:[#allocation57_spill] sm:$0xff] %v8229_v28 }
 0x6b6   : > { %8829 = vst [vmem:[#allocation55_spill] sm:$0xff] %v8216_v50 }
 0x6b8   : > { %v8235_v17 = vpop.permute.xlu1 %5014 }
 0x6b9   : > { %v8220_v41 = vpop.xlane.xlu0 %742 }
 0x6ba   : > { %8830 = vst [vmem:[#allocation53_spill] sm:$0xff] %v8220_v41 }
 0x6bc   : > { %v8243_v30 = vpop.permute.xlu1 %5018 }
 0x6bd   : > { %v8225_v0 = vpop.xlane.xlu0 %748 }
 0x6be   : > { %8832 = vst [vmem:[#allocation56_spill] sm:$0xff] %v8225_v0 }
 0x6c1   : > { %v8231_v43 = vpop.xlane.xlu0 %754 }
 0x6c2   : > { %8834 = vst [vmem:[#allocation59_spill] sm:$0xff] %v8231_v43 }
 0x6c5   : > { %v8239_v11 = vpop.permute.xlu0 %5012 }
 0x6e8   : > { %v4012_v2 = vpop.f32.mrb[112].mxu0 }
 0x6e9   : > { %4756 = vrot.lane.b32.xlu1 %v4012_v2, %s6291_s11  ;;  %v5859_v21 = vpop.f32.mrb[113].mxu0  ;;  %v8245_v2 = vpop.permute.xlu0 %5016 }
 0x6ea   : > { %v4015_v60 = vpop.f32.mrb[114].mxu0 }
 0x6eb   : > { %4758 = vrot.lane.b32.xlu0 %v4015_v60, %s6291_s11  ;;  %v5860_v3 = vpop.f32.mrb[115].mxu0 }
 0x6f5   : > { %v4059_v15 = vpop.f32.mrb[112].mxu1 }
 0x6f6   : > { %4760 = vrot.lane.b32.xlu1 %v4059_v15, %s6291_s11  ;;  %v5865_v1 = vpop.f32.mrb[113].mxu1 }
 0x6f7   : > { %v4062_v19 = vpop.f32.mrb[114].mxu1  ;;  %v8249_v1 = vpop.permute.xlu1 %5022 }
 0x6f8   : > { %v5866_v40 = vpop.f32.mrb[115].mxu1 }
 0x6f9   : > { %v4106_v52 = vpop.f32.mrb[116].mxu0 }
 0x6fa   : > { %4764 = vrot.lane.b32.xlu0 %v4106_v52, %s6291_s11  ;;  %v5871_v62 = vpop.f32.mrb[117].mxu0  ;;  %4762 = vrot.lane.b32.xlu1 %v4062_v19, %s6291_s11  ;;  %v8253_v52 = vpop.permute.xlu0 %5020 }
 0x6fb   : > { %v4109_v38 = vpop.f32.mrb[118].mxu0 }
 0x6fc   : > { %v5872_v44 = vpop.f32.mrb[119].mxu0 }
 0x6fe   : > { %v4153_v45 = vpop.f32.mrb[116].mxu1  ;;  %4766 = vrot.lane.b32.xlu1 %v4109_v38, %s6291_s11 }
 0x6ff   : > { %4768 = vrot.lane.b32.xlu0 %v4153_v45, %s6291_s11  ;;  %v5877_v22 = vpop.f32.mrb[117].mxu1 }
 0x700   : > { %v4156_v33 = vpop.f32.mrb[118].mxu1  ;;  %v8257_v22 = vpop.permute.xlu1 %5026 }
 0x701   : > { %v5878_v49 = vpop.f32.mrb[119].mxu1 }
 0x702   : > { %v4200_v56 = vpop.f32.mrb[120].mxu0  ;;  %4770 = vrot.lane.b32.xlu1 %v4156_v33, %s6291_s11 }
 0x703   : > { %v5883_v35 = vpop.f32.mrb[121].mxu0  ;;  %4772 = vrot.lane.b32.xlu0 %v4200_v56, %s6291_s11  ;;  %v8259_v56 = vpop.permute.xlu0 %5024 }
 0x704   : > { %v4203_v18 = vpop.f32.mrb[122].mxu0 }
 0x705   : > { %v5884_v23 = vpop.f32.mrb[123].mxu0 }
 0x706   : > { %v4247_v63 = vpop.f32.mrb[120].mxu1  ;;  %4774 = vrot.lane.b32.xlu1 %v4203_v18, %s6291_s11 }
 0x707   : > { %4776 = vrot.lane.b32.xlu0 %v4247_v63, %s6291_s11  ;;  %v5889_v32 = vpop.f32.mrb[121].mxu1 }
 0x708   : > { %v4250_v58 = vpop.f32.mrb[122].mxu1  ;;  %v8263_v32 = vpop.permute.xlu1 %5030 }
 0x709   : > { %v5890_v26 = vpop.f32.mrb[123].mxu1 }
 0x70a   : > { %v4294_v20 = vpop.f32.mrb[124].mxu0  ;;  %4778 = vrot.lane.b32.xlu1 %v4250_v58, %s6291_s11 }
 0x70b   : > { %v5895_v21 = vpop.f32.mrb[125].mxu0  ;;  %4780 = vrot.lane.b32.xlu0 %v4294_v20, %s6291_s11  ;;  %v8267_v20 = vpop.permute.xlu0 %5028 }
 0x70c   : > { %v4297_v60 = vpop.f32.mrb[126].mxu0 }
 0x70d   : > { %v5896_v3 = vpop.f32.mrb[127].mxu0 }
 0x70e   : > { %4782 = vrot.lane.b32.xlu1 %v4297_v60, %s6291_s11 }
 0x70f   : > { %v4341_v15 = vpop.f32.mrb[124].mxu1 }
 0x710   : > { %4784 = vrot.lane.b32.xlu0 %v4341_v15, %s6291_s11  ;;  %v5901_v19 = vpop.f32.mrb[125].mxu1 }
 0x711   : > { %v4344_v40 = vpop.f32.mrb[126].mxu1  ;;  %v8271_v19 = vpop.permute.xlu1 %5034 }
 0x712   : > { %v5902_v62 = vpop.f32.mrb[127].mxu1  ;;  %4786 = vrot.lane.b32.xlu1 %v4344_v40, %s6291_s11 }
 0x713   : > { %v4388_v38 = vpop.f32.mrb[128].mxu0 }
 0x714   : > { %v5907_v44 = vpop.f32.mrb[129].mxu0  ;;  %4788 = vrot.lane.b32.xlu0 %v4388_v38, %s6291_s11  ;;  %v8273_v38 = vpop.permute.xlu0 %5032 }
 0x715   : > { %v4391_v45 = vpop.f32.mrb[130].mxu0 }
 0x716   : > { %v5908_v33 = vpop.f32.mrb[131].mxu0  ;;  %4790 = vrot.lane.b32.xlu1 %v4391_v45, %s6291_s11 }
 0x717   : > { %v4435_v49 = vpop.f32.mrb[128].mxu1 }
 0x718   : > { %4792 = vrot.lane.b32.xlu0 %v4435_v49, %s6291_s11  ;;  %v5913_v35 = vpop.f32.mrb[129].mxu1 }
 0x719   : > { %v4438_v18 = vpop.f32.mrb[130].mxu1  ;;  %v8277_v35 = vpop.permute.xlu1 %5038 }
 0x71a   : > { %v5914_v23 = vpop.f32.mrb[131].mxu1  ;;  %4794 = vrot.lane.b32.xlu1 %v4438_v18, %s6291_s11 }
 0x71b   : > { %v4482_v63 = vpop.f32.mrb[132].mxu0 }
 0x71c   : > { %v5919_v58 = vpop.f32.mrb[133].mxu0  ;;  %4796 = vrot.lane.b32.xlu0 %v4482_v63, %s6291_s11  ;;  %v8281_v63 = vpop.permute.xlu0 %5036 }
 0x71d   : > { %v4485_v26 = vpop.f32.mrb[134].mxu0 }
 0x71e   : > { %v5920_v21 = vpop.f32.mrb[135].mxu0  ;;  %4798 = vrot.lane.b32.xlu1 %v4485_v26, %s6291_s11 }
 0x71f   : > { %v4529_v60 = vpop.f32.mrb[132].mxu1 }
 0x720   : > { %4800 = vrot.lane.b32.xlu0 %v4529_v60, %s6291_s11  ;;  %v5925_v3 = vpop.f32.mrb[133].mxu1 }
 0x721   : > { %v4532_v15 = vpop.f32.mrb[134].mxu1  ;;  %v8285_v3 = vpop.permute.xlu1 %5042 }
 0x722   : > { %v5926_v40 = vpop.f32.mrb[135].mxu1  ;;  %4802 = vrot.lane.b32.xlu1 %v4532_v15, %s6291_s11 }
 0x723   : > { %v4576_v62 = vpop.f32.mrb[136].mxu0 }
 0x724   : > { %v5931_v44 = vpop.f32.mrb[137].mxu0  ;;  %4804 = vrot.lane.b32.xlu0 %v4576_v62, %s6291_s11  ;;  %v8287_v62 = vpop.permute.xlu0 %5040 }
 0x725   : > { %v4579_v45 = vpop.f32.mrb[138].mxu0 }
 0x726   : > { %v5932_v33 = vpop.f32.mrb[139].mxu0  ;;  %4806 = vrot.lane.b32.xlu1 %v4579_v45, %s6291_s11 }
 0x727   : > { %v4623_v49 = vpop.f32.mrb[136].mxu1 }
 0x728   : > { %4808 = vrot.lane.b32.xlu0 %v4623_v49, %s6291_s11  ;;  %v5937_v18 = vpop.f32.mrb[137].mxu1  ;;  %v8291_v49 = vpop.permute.xlu1 %5046 }
 0x729   : > { %v4626_v23 = vpop.f32.mrb[138].mxu1  ;;  %v8835_v18 = vld [vmem:[#allocation37_spill] sm:$0xff] }
 0x72a   : > { %v5938_v58 = vpop.f32.mrb[139].mxu1  ;;  %4810 = vrot.lane.b32.xlu1 %v4626_v23, %s6291_s11  ;;  %v8296_v23 = vpop.permute.xlu0 %5044 }
 0x72b   : > { %v4670_v26 = vpop.f32.mrb[140].mxu0  ;;  %v8836_v58 = vld [vmem:[#allocation39_spill] sm:$0xff] }
 0x72c   : > { %v5943_v21 = vpop.f32.mrb[141].mxu0  ;;  %4812 = vrot.lane.b32.xlu0 %v4670_v26, %s6291_s11  ;;  %v8300_v26 = vpop.permute.xlu1 %5050 }
 0x72d   : > { %v4673_v60 = vpop.f32.mrb[142].mxu0 }
 0x72e   : > { %v5944_v15 = vpop.f32.mrb[143].mxu0  ;;  %4814 = vrot.lane.b32.xlu1 %v4673_v60, %s6291_s11  ;;  %v8302_v21 = vpop.permute.xlu0 %5048 }
 0x72f   : > { %v4717_v40 = vpop.f32.mrb[140].mxu1 }
 0x730   : > { %4816 = vrot.lane.b32.xlu0 %v4717_v40, %s6291_s11  ;;  %v5949_v44 = vpop.f32.mrb[141].mxu1  ;;  %v8304_v60 = vpop.permute.xlu1 %5054 }
 0x731   : > { %v4720_v45 = vpop.f32.mrb[142].mxu1 }
 0x732   : > { %v5950_v33 = vpop.f32.mrb[143].mxu1  ;;  %4818 = vrot.lane.b32.xlu1 %v4720_v45, %s6291_s11  ;;  %v8306_v15 = vpop.permute.xlu0 %5052 }
 0x734   : > { %5072 = vrot.lane.b32.xlu0 %v8835_v18, %s6290_s10  ;;  %v8308_v40 = vpop.permute.xlu1 %5058 }
 0x736   : > { %5074 = vrot.lane.b32.xlu1 %v8836_v58, %s6290_s10  ;;  %v8310_v44 = vpop.permute.xlu0 %5056 }
 0x738   : > { %v8312_v33 = vpop.permute.xlu1 %5062 }
 0x739   : > { %8837 = vst [vmem:[#allocation58_spill] sm:$0xff] %v8312_v33 }
 0x73a   : > { %v8314_v45 = vpop.permute.xlu0 %5060 }
 0x73c   : > { %v8316_v18 = vpop.permute.xlu1 %5066 }
 0x73d   : > { %8838 = vst [vmem:[#allocation61_spill] sm:$0xff] %v8316_v18 }
 0x73e   : > { %v8318_v58 = vpop.permute.xlu0 %5064 }
 0x740   : > { %v8320_v43 = vpop.permute.xlu1 %5070 }
 0x741   : > { %8839 = vst [vmem:[#allocation63_spill] sm:$0xff] %v8320_v43 }
 0x742   : > { %v8322_v0 = vpop.permute.xlu0 %5068 }
 0x75b   : > { %v4757_v28 = vpop.permute.xlu1 %4756 }
 0x75c   : > { %v4852_v41 = vsel %vm349_vm1, %v7524_v34, %v4757_v28 }
 0x75d   : > { %v4948_v14 = vsel %vm756_vm2, %v4852_v41, 0.0  ;;  %v4759_v50 = vpop.permute.xlu0 %4758  ;;  %vm769_vm2 = vcmp.gt.f32.partialorder %v8190_v39, 0.0 }
 0x75e   : > { %v5108_v33 = vadd.f32 %v8239_v11, %v4948_v14  ;;  %v4853_v18 = vsel %vm349_vm1, %v7526_v13, %v4759_v50 }
 0x75f   : > { %v4949_v36 = vsel %vm757_vm10, %v4853_v18, 0.0  ;;  %v8840_v18 = vld [vmem:[#allocation45_spill] sm:$0xff]  ;;  %vm772_vm10 = vcmp.gt.f32.partialorder %v8196_v42, 0.0 }
 0x760   : > { %v5140_v43 = vmax.f32 %v5108_v33, 0.0  ;;  %v5109_v34 = vadd.f32 %v8235_v17, %v4949_v36 }
 0x762   : > { %5172 = vst.msk [vmem:[%s8336_s14] sm:$0xff] %vm659_vm5, %v5140_v43  ;;  %v5141_v25 = vmax.f32 %v5109_v34, 0.0 }
 0x764   : > { %5173 = vst.msk [vmem:[%s8336_s14 + $0x8] sm:$0xff] %vm659_vm5, %v5141_v25  ;;  %v8841_v25 = vld [vmem:[#allocation18_spill] sm:$0xff] }
 0x768   : > { %v4761_v41 = vpop.permute.xlu1 %4760 }
 0x769   : > { %v4854_v13 = vsel %vm349_vm1, %v7528_v57, %v4761_v41 }
 0x76a   : > { %v4950_v50 = vsel %vm758_vm11, %v4854_v13, 0.0  ;;  %v8842_v13 = vld [vmem:[#allocation23_spill] sm:$0xff]  ;;  %vm771_vm11 = vcmp.gt.f32.partialorder %v8194_v27, 0.0 }
 0x76b   : > { %v5110_v14 = vadd.f32 %v8245_v2, %v4950_v50 }
 0x76c   : > { %v4765_v28 = vpop.permute.xlu0 %4764  ;;  %v4763_v43 = vpop.permute.xlu1 %4762 }
 0x76d   : > { %v4856_v17 = vsel %vm349_vm1, %v7532_v46, %v4765_v28  ;;  %v5142_v11 = vmax.f32 %v5110_v14, 0.0  ;;  %v4855_v47 = vsel %vm349_vm1, %v8840_v18, %v4763_v43  ;;  %v8844_v18 = vld [vmem:[#allocation84_spill] sm:$0xff] }
 0x76e   : > { %v4952_v33 = vsel %vm760_vm12, %v4856_v17, 0.0  ;;  %v4951_v36 = vsel %vm759_vm13, %v4855_v47, 0.0  ;;  %vm774_vm12 = vcmp.gt.f32.partialorder %v8200_v7, 0.0  ;;  %vm773_vm13 = vcmp.gt.f32.partialorder %v8198_v5, 0.0 }
 0x76f   : > { %v5112_v57 = vadd.f32 %v8253_v52, %v4952_v33  ;;  %5174 = vst.msk [vmem:[%s8336_s14 + $0x10] sm:$0xff] %vm659_vm5, %v5142_v11  ;;  %v5111_v37 = vadd.f32 %v8243_v30, %v4951_v36  ;;  %v8843_v11 = vld [vmem:[#allocation43_spill] sm:$0xff] }
 0x770   : > { %v4767_v2 = vpop.permute.xlu1 %4766 }
 0x771   : > { %v5144_v46 = vmax.f32 %v5112_v57, 0.0  ;;  %v4769_v34 = vpop.permute.xlu0 %4768  ;;  %v5143_v51 = vmax.f32 %v5111_v37, 0.0  ;;  %v4857_v41 = vsel %vm349_vm1, %v8841_v25, %v4767_v2  ;;  %v8845_v2 = vld [vmem:[#allocation47_spill] sm:$0xff] }
 0x772   : > { %v4858_v50 = vsel %vm349_vm1, %v8842_v13, %v4769_v34  ;;  %v4953_v52 = vsel %vm761_vm15, %v4857_v41, 0.0  ;;  %vm775_vm15 = vcmp.gt.f32.partialorder %v8202_v31, 0.0 }
 0x773   : > { %5176 = vst.msk [vmem:[%s8336_s14 + $0x20] sm:$0xff] %vm659_vm5, %v5144_v46  ;;  %v4954_v30 = vsel %vm762_vm14, %v4858_v50, 0.0  ;;  %5175 = vst.msk [vmem:[%s8336_s14 + $0x18] sm:$0xff] %vm659_vm5, %v5143_v51  ;;  %v5113_v4 = vadd.f32 %v8249_v1, %v4953_v52  ;;  %v8846_v51 = vld [vmem:[#allocation24_spill] sm:$0xff]  ;;  %vm776_vm14 = vcmp.gt.f32.partialorder %v8204_v55, 0.0 }
 0x774   : > { %v5114_v14 = vadd.f32 %v8259_v56, %v4954_v30  ;;  %v4771_v28 = vpop.permute.xlu1 %4770  ;;  %v8847_v30 = vld [vmem:[#allocation83_spill] sm:$0xff] }
 0x775   : > { %v4773_v48 = vpop.permute.xlu0 %4772  ;;  %v5145_v17 = vmax.f32 %v5113_v4, 0.0  ;;  %v4859_v47 = vsel %vm349_vm1, %v8844_v18, %v4771_v28 }
 0x776   : > { %v5146_v43 = vmax.f32 %v5114_v14, 0.0  ;;  %v4860_v33 = vsel %vm349_vm1, %v8843_v11, %v4773_v48  ;;  %v4955_v36 = vsel %vm763_vm3, %v4859_v47, 0.0  ;;  %v8848_v14 = vld [vmem:[#allocation29_spill] sm:$0xff]  ;;  %v8850_v47 = vld [vmem:[#allocation48_spill] sm:$0xff]  ;;  %vm777_vm3 = vcmp.gt.f32.partialorder %v8206_v53, 0.0 }
 0x777   : > { %v4956_v57 = vsel %vm764_vm0, %v4860_v33, 0.0  ;;  %5177 = vst.msk [vmem:[%s8336_s14 + $0x28] sm:$0xff] %vm659_vm5, %v5145_v17  ;;  %v5115_v8 = vadd.f32 %v8257_v22, %v4955_v36  ;;  %v8849_v33 = vld [vmem:[#allocation41_spill] sm:$0xff]  ;;  %vm778_vm0 = vcmp.gt.f32.partialorder %v8208_v61, 0.0 }
 0x778   : > { %5178 = vst.msk [vmem:[%s8336_s14 + $0x30] sm:$0xff] %vm659_vm5, %v5146_v43  ;;  %v5116_v16 = vadd.f32 %v8267_v20, %v4956_v57  ;;  %v4775_v1 = vpop.permute.xlu1 %4774 }
 0x779   : > { %v4777_v56 = vpop.permute.xlu0 %4776  ;;  %v5147_v46 = vmax.f32 %v5115_v8, 0.0  ;;  %v4861_v34 = vsel %vm349_vm1, %v8845_v2, %v4775_v1 }
 0x77a   : > { %v5148_v37 = vmax.f32 %v5116_v16, 0.0  ;;  %v4862_v25 = vsel %vm349_vm1, %v8846_v51, %v4777_v56  ;;  %v4957_v41 = vsel %vm765_vm6, %v4861_v34, 0.0  ;;  %v8851_v56 = vld [vmem:[#allocation30_spill] sm:$0xff]  ;;  %vm779_vm6 = vcmp.gt.f32.partialorder %v8210_v59, 0.0 }
 0x77b   : > { %v4958_v13 = vsel %vm766_vm4, %v4862_v25, 0.0  ;;  %5179 = vst.msk [vmem:[%s8336_s14 + $0x38] sm:$0xff] %vm659_vm5, %v5147_v46  ;;  %v5117_v12 = vadd.f32 %v8263_v32, %v4957_v41  ;;  %v8852_v46 = vld [vmem:[#allocation35_spill] sm:$0xff]  ;;  %vm780_vm4 = vcmp.gt.f32.partialorder %v8213_v6, 0.0 }
 0x77c   : > { %5180 = vst.msk [vmem:[%s8336_s14 + $0x40] sm:$0xff] %vm659_vm5, %v5148_v37  ;;  %v5118_v10 = vadd.f32 %v8273_v38, %v4958_v13  ;;  %v4779_v20 = vpop.permute.xlu1 %4778  ;;  %v8853_v13 = vld [vmem:[#allocation86_spill] sm:$0xff] }
 0x77d   : > { %v4781_v22 = vpop.permute.xlu0 %4780  ;;  %v5149_v50 = vmax.f32 %v5117_v12, 0.0  ;;  %v4863_v48 = vsel %vm349_vm1, %v8848_v14, %v4779_v20 }
 0x77e   : > { %v5150_v52 = vmax.f32 %v5118_v10, 0.0  ;;  %v4864_v4 = vsel %vm349_vm1, %v8847_v30, %v4781_v22  ;;  %v4959_v17 = vsel %vm767_vm8, %v4863_v48, 0.0  ;;  %v8854_v10 = vld [vmem:[#allocation42_spill] sm:$0xff]  ;;  %v8856_v48 = vld [vmem:[#allocation36_spill] sm:$0xff] }
 0x77f   : > { %v4960_v28 = vsel %vm768_vm7, %v4864_v4, 0.0  ;;  %5181 = vst.msk [vmem:[%s8336_s14 + $0x48] sm:$0xff] %vm659_vm5, %v5149_v50  ;;  %v5119_v54 = vadd.f32 %v8271_v19, %v4959_v17  ;;  %v8855_v4 = vld [vmem:[#allocation49_spill] sm:$0xff]  ;;  %vm782_vm7 = vcmp.gt.f32.partialorder %v8218_v9, 0.0  ;;  %v8864_v9 = vld [vmem:[#allocation58_spill] sm:$0xff] }
 0x780   : > { %5182 = vst.msk [vmem:[%s8336_s14 + $0x50] sm:$0xff] %vm659_vm5, %v5150_v52  ;;  %v5120_v24 = vadd.f32 %v8281_v63, %v4960_v28  ;;  %v4783_v32 = vpop.permute.xlu1 %4782 }
 0x781   : > { %v5151_v11 = vmax.f32 %v5119_v54, 0.0  ;;  %v4865_v18 = vsel %vm349_vm1, %v8849_v33, %v4783_v32 }
 0x782   : > { %v4785_v38 = vpop.permute.xlu0 %4784  ;;  %v5152_v43 = vmax.f32 %v5120_v24, 0.0  ;;  %v4961_v36 = vsel %vm769_vm2, %v4865_v18, 0.0 }
 0x783   : > { %v4866_v57 = vsel %vm349_vm1, %v8850_v47, %v4785_v38  ;;  %5183 = vst.msk [vmem:[%s8336_s14 + $0x58] sm:$0xff] %vm659_vm5, %v5151_v11  ;;  %v5121_v39 = vadd.f32 %v8277_v35, %v4961_v36  ;;  %v8857_v38 = vld [vmem:[#allocation85_spill] sm:$0xff]  ;;  %v8858_v11 = vld [vmem:[#allocation44_spill] sm:$0xff] }
 0x784   : > { %v4962_v16 = vsel %vm770_vm9, %v4866_v57, 0.0  ;;  %5184 = vst.msk [vmem:[%s8336_s14 + $0x60] sm:$0xff] %vm659_vm5, %v5152_v43  ;;  %v4787_v63 = vpop.permute.xlu1 %4786 }
 0x785   : > { %v5122_v29 = vadd.f32 %v8287_v62, %v4962_v16  ;;  %v5153_v8 = vmax.f32 %v5121_v39, 0.0  ;;  %v4867_v2 = vsel %vm349_vm1, %v8852_v46, %v4787_v63  ;;  %v8859_v16 = vld [vmem:[#allocation50_spill] sm:$0xff]  ;;  %v8862_v46 = vld [vmem:[#allocation87_spill] sm:$0xff] }
 0x786   : > { %v4789_v19 = vpop.permute.xlu0 %4788  ;;  %v4963_v51 = vsel %vm771_vm11, %v4867_v2, 0.0 }
 0x787   : > { %v5154_v1 = vmax.f32 %v5122_v29, 0.0  ;;  %v4868_v37 = vsel %vm349_vm1, %v8851_v56, %v4789_v19  ;;  %5185 = vst.msk [vmem:[%s8336_s14 + $0x68] sm:$0xff] %vm659_vm5, %v5153_v8  ;;  %v5123_v42 = vadd.f32 %v8285_v3, %v4963_v51  ;;  %v8860_v29 = vld [vmem:[#allocation88_spill] sm:$0xff] }
 0x788   : > { %v4964_v34 = vsel %vm772_vm10, %v4868_v37, 0.0  ;;  %v4791_v35 = vpop.permute.xlu1 %4790 }
 0x789   : > { %5186 = vst.msk [vmem:[%s8336_s14 + $0x70] sm:$0xff] %vm659_vm5, %v5154_v1  ;;  %v5124_v27 = vadd.f32 %v8296_v23, %v4964_v34  ;;  %v5155_v41 = vmax.f32 %v5123_v42, 0.0  ;;  %v4869_v12 = vsel %vm349_vm1, %v8853_v13, %v4791_v35  ;;  %v8863_v34 = vld [vmem:[#allocation46_spill] sm:$0xff] }
 0x78a   : > { %v4793_v62 = vpop.permute.xlu0 %4792  ;;  %v4965_v20 = vsel %vm773_vm13, %v4869_v12, 0.0  ;;  %v8865_v35 = vld [vmem:[#allocation54_spill] sm:$0xff] }
 0x78b   : > { %v5156_v25 = vmax.f32 %v5124_v27, 0.0  ;;  %v4870_v22 = vsel %vm349_vm1, %v8854_v10, %v4793_v62  ;;  %5187 = vst.msk [vmem:[%s8336_s14 + $0x78] sm:$0xff] %vm659_vm5, %v5155_v41  ;;  %v5125_v5 = vadd.f32 %v8291_v49, %v4965_v20  ;;  %vm784_vm9 = vcmp.gt.f32.partialorder %v8865_v35, 0.0  ;;  %v8866_v62 = vld [vmem:[#allocation53_spill] sm:$0xff]  ;;  %v8868_v20 = vld [vmem:[#allocation90_spill] sm:$0xff] }
 0x78c   : > { %v4966_v50 = vsel %vm774_vm12, %v4870_v22, 0.0  ;;  %v4795_v23 = vpop.permute.xlu1 %4794  ;;  %vm783_vm2 = vcmp.gt.f32.partialorder %v8866_v62, 0.0  ;;  %v8867_v10 = vld [vmem:[#allocation89_spill] sm:$0xff] }
 0x78d   : > { %5188 = vst.msk [vmem:[%s8336_s14 + $0x80] sm:$0xff] %vm659_vm5, %v5156_v25  ;;  %v5126_v7 = vadd.f32 %v8302_v21, %v4966_v50  ;;  %v5157_v52 = vmax.f32 %v5125_v5, 0.0  ;;  %v4871_v28 = vsel %vm349_vm1, %v8856_v48, %v4795_v23 }
 0x78e   : > { %v4797_v3 = vpop.permute.xlu0 %4796  ;;  %v4967_v24 = vsel %vm775_vm15, %v4871_v28, 0.0 }
 0x78f   : > { %v5158_v30 = vmax.f32 %v5126_v7, 0.0  ;;  %v4872_v14 = vsel %vm349_vm1, %v8855_v4, %v4797_v3  ;;  %5189 = vst.msk [vmem:[%s8336_s14 + $0x88] sm:$0xff] %vm659_vm5, %v5157_v52  ;;  %v5127_v55 = vadd.f32 %v8300_v26, %v4967_v24  ;;  %v8869_v3 = vld [vmem:[#allocation61_spill] sm:$0xff] }
 0x790   : > { %v4968_v17 = vsel %vm776_vm14, %v4872_v14, 0.0  ;;  %v4799_v49 = vpop.permute.xlu1 %4798  ;;  %v8870_v52 = vld [vmem:[#allocation57_spill] sm:$0xff] }
 0x791   : > { %5190 = vst.msk [vmem:[%s8336_s14 + $0x90] sm:$0xff] %vm659_vm5, %v5158_v30  ;;  %v5128_v31 = vadd.f32 %v8306_v15, %v4968_v17  ;;  %v5159_v32 = vmax.f32 %v5127_v55, 0.0  ;;  %v4873_v43 = vsel %vm349_vm1, %v8857_v38, %v4799_v49  ;;  %vm786_vm10 = vcmp.gt.f32.partialorder %v8870_v52, 0.0  ;;  %v8871_v30 = vld [vmem:[#allocation56_spill] sm:$0xff]  ;;  %v8872_v17 = vld [vmem:[#allocation91_spill] sm:$0xff] }
 0x792   : > { %v4801_v21 = vpop.permute.xlu0 %4800  ;;  %v4969_v18 = vsel %vm777_vm3, %v4873_v43, 0.0  ;;  %vm785_vm11 = vcmp.gt.f32.partialorder %v8871_v30, 0.0  ;;  %v8875_v43 = vld [vmem:[#allocation59_spill] sm:$0xff] }
 0x793   : > { %v5160_v54 = vmax.f32 %v5128_v31, 0.0  ;;  %v4874_v33 = vsel %vm349_vm1, %v8858_v11, %v4801_v21  ;;  %5191 = vst.msk [vmem:[%s8336_s14 + $0x98] sm:$0xff] %vm659_vm5, %v5159_v32  ;;  %v5129_v53 = vadd.f32 %v8304_v60, %v4969_v18  ;;  %v8861_v60 = vld [vmem:[#allocation55_spill] sm:$0xff]  ;;  %vm787_vm12 = vcmp.gt.f32.partialorder %v8875_v43, 0.0  ;;  %v8876_v18 = vld [vmem:[#allocation52_spill] sm:$0xff] }
 0x794   : > { %v4970_v47 = vsel %vm778_vm0, %v4874_v33, 0.0  ;;  %v4803_v15 = vpop.permute.xlu1 %4802  ;;  %vm781_vm8 = vcmp.gt.f32.partialorder %v8861_v60, 0.0  ;;  %v8873_v31 = vld [vmem:[#allocation51_spill] sm:$0xff] }
 0x795   : > { %5192 = vst.msk [vmem:[%s8336_s14 + $0xa0] sm:$0xff] %vm659_vm5, %v5160_v54  ;;  %v5130_v61 = vadd.f32 %v8310_v44, %v4970_v47  ;;  %v5161_v57 = vmax.f32 %v5129_v53, 0.0  ;;  %v4875_v19 = vsel %vm349_vm1, %v8860_v29, %v4803_v15  ;;  %v8874_v21 = vld [vmem:[#allocation63_spill] sm:$0xff] }
 0x796   : > { %v4805_v26 = vpop.permute.xlu0 %4804  ;;  %v4971_v8 = vsel %vm779_vm6, %v4875_v19, 0.0 }
 0x797   : > { %v5162_v36 = vmax.f32 %v5130_v61, 0.0  ;;  %v4876_v39 = vsel %vm349_vm1, %v8859_v16, %v4805_v26  ;;  %5193 = vst.msk [vmem:[%s8336_s14 + $0xa8] sm:$0xff] %vm659_vm5, %v5161_v57  ;;  %v5131_v6 = vadd.f32 %v8308_v40, %v4971_v8 }
 0x798   : > { %v4972_v63 = vsel %vm780_vm4, %v4876_v39, 0.0  ;;  %v4807_v44 = vpop.permute.xlu1 %4806 }
 0x799   : > { %5194 = vst.msk [vmem:[%s8336_s14 + $0xb0] sm:$0xff] %vm659_vm5, %v5162_v36  ;;  %v5132_v59 = vadd.f32 %v8314_v45, %v4972_v63  ;;  %v5163_v37 = vmax.f32 %v5131_v6, 0.0  ;;  %v4877_v2 = vsel %vm349_vm1, %v8862_v46, %v4807_v44 }
 0x79a   : > { %v4809_v1 = vpop.permute.xlu0 %4808  ;;  %v4973_v27 = vsel %vm781_vm8, %v4877_v2, 0.0 }
 0x79b   : > { %v5164_v56 = vmax.f32 %v5132_v59, 0.0  ;;  %v4878_v51 = vsel %vm349_vm1, %v8863_v34, %v4809_v1  ;;  %5195 = vst.msk [vmem:[%s8336_s14 + $0xb8] sm:$0xff] %vm659_vm5, %v5163_v37  ;;  %v5133_v40 = vadd.f32 %v8864_v9, %v4973_v27 }
 0x79c   : > { %v4974_v42 = vsel %vm782_vm7, %v4878_v51, 0.0  ;;  %v4811_v41 = vpop.permute.xlu1 %4810 }
 0x79d   : > { %5196 = vst.msk [vmem:[%s8336_s14 + $0xc0] sm:$0xff] %vm659_vm5, %v5164_v56  ;;  %v5134_v45 = vadd.f32 %v8318_v58, %v4974_v42  ;;  %v5165_v13 = vmax.f32 %v5133_v40, 0.0  ;;  %v4879_v50 = vsel %vm349_vm1, %v8868_v20, %v4811_v41 }
 0x79e   : > { %v4813_v25 = vpop.permute.xlu0 %4812  ;;  %v4975_v7 = vsel %vm783_vm2, %v4879_v50, 0.0 }
 0x79f   : > { %v5166_v12 = vmax.f32 %v5134_v45, 0.0  ;;  %v4880_v22 = vsel %vm349_vm1, %v8867_v10, %v4813_v25  ;;  %5197 = vst.msk [vmem:[%s8336_s14 + $0xc8] sm:$0xff] %vm659_vm5, %v5165_v13  ;;  %v5135_v23 = vadd.f32 %v8869_v3, %v4975_v7 }
 0x7a0   : > { %v4976_v5 = vsel %vm784_vm9, %v4880_v22, 0.0  ;;  %v4815_v4 = vpop.permute.xlu1 %4814 }
 0x7a1   : > { %5198 = vst.msk [vmem:[%s8336_s14 + $0xd0] sm:$0xff] %vm659_vm5, %v5166_v12  ;;  %v5136_v58 = vadd.f32 %v8322_v0, %v4976_v5  ;;  %v5167_v28 = vmax.f32 %v5135_v23, 0.0  ;;  %v4881_v24 = vsel %vm349_vm1, %v8872_v17, %v4815_v4 }
 0x7a2   : > { %v4817_v14 = vpop.permute.xlu0 %4816  ;;  %v4977_v49 = vsel %vm785_vm11, %v4881_v24, 0.0 }
 0x7a3   : > { %v5168_v48 = vmax.f32 %v5136_v58, 0.0  ;;  %v4882_v55 = vsel %vm349_vm1, %v8873_v31, %v4817_v14  ;;  %5199 = vst.msk [vmem:[%s8336_s14 + $0xd8] sm:$0xff] %vm659_vm5, %v5167_v28  ;;  %v5137_v54 = vadd.f32 %v8874_v21, %v4977_v49 }
 0x7a4   : > { %v4978_v0 = vsel %vm786_vm10, %v4882_v55, 0.0  ;;  %v4819_v38 = vpop.permute.xlu1 %4818 }
 0x7a5   : > { %5200 = vst.msk [vmem:[%s8336_s14 + $0xe0] sm:$0xff] %vm659_vm5, %v5168_v48  ;;  %v5169_v11 = vmax.f32 %v5137_v54, 0.0  ;;  %v4883_v47 = vsel %vm349_vm1, %v8876_v18, %v4819_v38 }
 0x7a6   : > { %v5073_v32 = vpop.permute.xlu0 %5072  ;;  %v4979_v53 = vsel %vm787_vm12, %v4883_v47, 0.0 }
 0x7a7   : > { %v5138_v33 = vadd.f32 %v5073_v32, %v4978_v0  ;;  %5201 = vst.msk [vmem:[%s8336_s14 + $0xe8] sm:$0xff] %vm659_vm5, %v5169_v11 }
 0x7a8   : > { %v5075_v26 = vpop.permute.xlu1 %5074 }
 0x7a9   : > { %v5170_v61 = vmax.f32 %v5138_v33, 0.0  ;;  %v5139_v15 = vadd.f32 %v5075_v26, %v4979_v53 }
 0x7ab   : > { %5202 = vst.msk [vmem:[%s8336_s14 + $0xf0] sm:$0xff] %vm659_vm5, %v5170_v61  ;;  %v5171_v57 = vmax.f32 %v5139_v15, 0.0 }
 0x7ad   : > { %5203 = vst.msk [vmem:[%s8336_s14 + $0xf8] sm:$0xff] %vm659_vm5, %v5171_v57 }
 0x7ae PF: > { %s14_s15 = sadd.s32 1, %s6280_s15  }
 0x7af   : > { %p11_p5 = scmp.ge.s32.totalorder %s14_s15, 4  }
 0x7b1   :  { %13 = sbr.rel (!%p11_p5) target bundleno = 1 (0x1), region = 69 }

</bundles_post_ra>
